<compile_context>
chip_gen: v7x
topology: tpu7x:2x2x1
jax: 0.10.0
libtpu: 0.0.40
codegen_flags: <defaults>
</compile_context>

<pallas_src>
import functools

import jax
import jax.numpy as jnp
from jax.experimental import pallas as pl
from jax.experimental.pallas import tpu as pltpu


def _round_up(a, b):
    return (a + b - 1) // b * b


# ----------------------------------------------------------------------------
# Fused conv3x3 + bias + ReLU + feature-L1 + gram-L1 (+ pixel-L1) kernel
# ----------------------------------------------------------------------------
def _conv_feat_gram_kernel(x_ref, w_ref, b_ref, m_ref,
                           feat_ref, fsum_ref, gsum_ref, psum_ref,
                           xk_ref, *, H, W, LP, compute_pixel):
    """One grid step = one (target, input) image pair.

    x_ref    : (1, 2, Cin, HWp)  f32/bf16  flat-padded layer input
                                           (LP zero lanes each side; 0=target, 1=input)
    w_ref    : (Cout, 9*Cin)     bf16      w[o, i, dy, dx] -> col (dy*3+dx)*Cin + i
    b_ref    : (Cout, 1)         f32
    m_ref    : (2, HW)           f32       {0,1} wrap masks (row0: col!=0, row1: col!=W-1)
    feat_ref : (1, 2, Cout, HWp) bf16      flat-padded post-ReLU features (next layer)
    fsum_ref : (1, 1, 1) SMEM    f32       sum|feat_in - feat_tgt|   (this pair)
    gsum_ref : (1, 1, 1) SMEM    f32       sum|gram_in - gram_tgt|   (this pair)
    psum_ref : (1, 1, 1) SMEM    f32       sum|x_in - x_tgt|         (first layer only)
    xk_ref   : (9*Cin, 2*HW) VMEM f32      stacked shifted windows, both images
    """
    HW = H * W
    Cin = x_ref.shape[2]
    Cout = w_ref.shape[0]

    # --- pixel L1 fused into the first conv block (pad columns are zero) ----
    if compute_pixel:
        d = x_ref[0, 1].astype(jnp.float32) - x_ref[0, 0].astype(jnp.float32)
        psum_ref[0, 0, 0] = jnp.sum(jnp.abs(d))
    else:
        psum_ref[0, 0, 0] = jnp.float32(0.0)

    masks = m_ref[...]                 # (2, HW) f32, built once outside
    ml = masks[0:1]                    # zero where col == 0      (dx = -1 wrap)
    mr = masks[1:2]                    # zero where col == W - 1  (dx = +1 wrap)

    # --- build the (9*Cin, 2*HW) stacked-window RHS --------------------------
    # Only the 3 dy-aligned windows are loaded; dx = +/-1 come from a circular
    # lane roll (the wrapped element is exactly the one the mask zeroes).
    for img in range(2):
        lane0 = img * HW
        for dy in range(3):
            c = x_ref[0, img, :, pl.ds(LP + (dy - 1) * W, HW)].astype(jnp.float32)
            row0 = dy * 3 * Cin
            xk_ref[pl.ds(row0, Cin), pl.ds(lane0, HW)] = (
                pltpu.roll(c, shift=1, axis=1) * ml)            # dx = -1
            xk_ref[pl.ds(row0 + Cin, Cin), pl.ds(lane0, HW)] = c  # dx = 0
            xk_ref[pl.ds(row0 + 2 * Cin, Cin), pl.ds(lane0, HW)] = (
                pltpu.roll(c, shift=HW - 1, axis=1) * mr)       # dx = +1

    # --- one big-K MXU matmul does the tap accumulation for both images -----
    acc = jnp.dot(w_ref[...], xk_ref[...].astype(jnp.bfloat16),
                  preferred_element_type=jnp.float32)            # (Cout, 2*HW)
    fb = jnp.maximum(acc + b_ref[...], 0.0).astype(jnp.bfloat16)
    ft = fb[:, :HW]                                              # target feats
    fi = fb[:, HW:]                                              # input feats

    # --- store flat-padded bf16 features (all stores lane-aligned) ----------
    zpad = jnp.zeros((Cout, LP), jnp.bfloat16)
    for img, f in ((0, ft), (1, fi)):
        feat_ref[0, img, :, pl.ds(0, LP)] = zpad
        feat_ref[0, img, :, pl.ds(LP, HW)] = f
        feat_ref[0, img, :, pl.ds(LP + HW, LP)] = zpad

    # --- feature L1 + gram L1 partial sums (f32) -----------------------------
    fsum_ref[0, 0, 0] = jnp.sum(
        jnp.abs(fi.astype(jnp.float32) - ft.astype(jnp.float32)))

    scale = 1.0 / float(Cout * HW)

    def gram(f):
        # (Cout, Cout) grams are tiny; contraction over the lane (HW) axes.
        return jax.lax.dot_general(f, f, (((1,), (1,)), ((), ())),
                                   preferred_element_type=jnp.float32) * scale

    gsum_ref[0, 0, 0] = jnp.sum(jnp.abs(gram(fi) - gram(ft)))


def conv_block(x, w, b, masks, *, H, W, LP, compute_pixel):
    """x: (N, 2, Cin, HWp) flat-padded (target, input) pair features.

    Returns (feat (N,2,Cout,HWp) bf16, sum|feat_in-feat_tgt|,
             sum|gram_in-gram_tgt|, sum|x_in-x_tgt|)."""
    N, _, Cin, HWp = x.shape
    HW = H * W
    Cout = w.shape[0]

    wflat = jnp.transpose(w, (0, 2, 3, 1)).reshape(Cout, 9 * Cin).astype(jnp.bfloat16)
    b2 = b.reshape(Cout, 1).astype(jnp.float32)

    def smem_spec():
        return pl.BlockSpec((1, 1, 1), lambda n: (n, 0, 0),
                            memory_space=pltpu.MemorySpace.SMEM)

    feat, fsum, gsum, psum = pl.pallas_call(
        functools.partial(_conv_feat_gram_kernel, H=H, W=W, LP=LP,
                          compute_pixel=compute_pixel),
        out_shape=(
            jax.ShapeDtypeStruct((N, 2, Cout, HWp), jnp.bfloat16),
            jax.ShapeDtypeStruct((N, 1, 1), jnp.float32),
            jax.ShapeDtypeStruct((N, 1, 1), jnp.float32),
            jax.ShapeDtypeStruct((N, 1, 1), jnp.float32),
        ),
        grid=(N,),
        in_specs=[
            pl.BlockSpec((1, 2, Cin, HWp), lambda n: (n, 0, 0, 0)),
            pl.BlockSpec((Cout, 9 * Cin), lambda n: (0, 0)),
            pl.BlockSpec((Cout, 1), lambda n: (0, 0)),
            pl.BlockSpec((2, HW), lambda n: (0, 0)),
        ],
        out_specs=(
            pl.BlockSpec((1, 2, Cout, HWp), lambda n: (n, 0, 0, 0)),
            smem_spec(), smem_spec(), smem_spec(),
        ),
        scratch_shapes=[pltpu.VMEM((9 * Cin, 2 * HW), jnp.float32)],
        # Per-pair partial sums -> no cross-step state -> the batch axis can be
        # sharded across TensorCores (v7x megacore); partials reduced in JAX.
        compiler_params=pltpu.CompilerParams(
            dimension_semantics=("parallel",)),
    )(x, wflat, b2, masks)
    return feat, jnp.sum(fsum), jnp.sum(gsum), jnp.sum(psum)


# ----------------------------------------------------------------------------
# PerceptualLoss
# ----------------------------------------------------------------------------
class PerceptualLoss:
    """Mirror of the PyTorch module.  The feature model m_feat is a synthetic
    stack of (conv3x3 + ReLU) blocks; `layer_ids` index the hooked (post-ReLU)
    block outputs, `layer_wgts` are the per-layer weights."""

    def __init__(self, m_feat_params, layer_ids, layer_wgts):
        self.params = list(m_feat_params)        # [(w, b), ...]
        self.layer_ids = list(layer_ids)
        self.wgts = list(layer_wgts)
        self.metric_names = (['pixel']
                             + [f'feat_{i}' for i in range(len(layer_ids))]
                             + [f'gram_{i}' for i in range(len(layer_ids))])

    def forward(self, input, target):
        N, Cin, H, W = input.shape
        HW = H * W
        assert HW % 128 == 0, "H*W must be a multiple of 128 for lane-dense tiles"
        LP = _round_up(W + 1, 128)               # lane-aligned flat padding
        # Horizontal-wrap masks, built once (row 0: col != 0, row 1: col != W-1).
        col = jnp.arange(HW, dtype=jnp.int32) % W
        masks = jnp.stack([(col != 0), (col != W - 1)]).astype(jnp.float32)

        # (N, 2, C, HWp) pair stack, index 0 = target, 1 = input.  Only the raw
        # images are padded here; feature maps come back already padded.
        pair = jnp.stack([target, input], axis=1).reshape(N, 2, Cin, HW)
        h = jnp.pad(pair.astype(jnp.float32),
                    ((0, 0), (0, 0), (0, 0), (LP, LP)))

        pixel_sum = None
        feat_l1, gram_l1 = [], []
        for li, (w, b) in enumerate(self.params):
            Cout = w.shape[0]
            h, fsum, gsum, psum = conv_block(h, w, b, masks, H=H, W=W, LP=LP,
                                             compute_pixel=(li == 0))
            if li == 0:
                pixel_sum = psum
            feat_l1.append(fsum / (N * Cout * HW))
            gram_l1.append(gsum / (N * Cout * Cout))

        losses = [pixel_sum / (N * Cin * HW)]
        losses += [feat_l1[i] * w for i, w in zip(self.layer_ids, self.wgts)]
        losses += [gram_l1[i] * (w ** 2) * 5000.0
                   for i, w in zip(self.layer_ids, self.wgts)]
        self.metrics = dict(zip(self.metric_names, losses))
        return sum(losses)


# ----------------------------------------------------------------------------
# Pure-JAX reference mirroring the kernel's (intentional) dtype policy:
# bf16 matmul operands and bf16 inter-layer features, f32 accumulation.
# ----------------------------------------------------------------------------
def _ref_total(params, layer_ids, wgts, x, y):
    def feats(z):
        h = z.astype(jnp.bfloat16)
        outs = []
        for (w, b) in params:
            c = jax.lax.conv_general_dilated(
                h, w.astype(jnp.bfloat16), (1, 1), 'SAME',
                dimension_numbers=('NCHW', 'OIHW', 'NCHW'),
                preferred_element_type=jnp.float32)
            h = jnp.maximum(c + b[None, :, None, None], 0.0).astype(jnp.bfloat16)
            outs.append(h)
        return [outs[i] for i in layer_ids]

    def gram(f):
        n, c, hh, ww = f.shape
        fm = f.reshape(n, c, hh * ww)
        g = jnp.einsum('ncx,ndx->ncd', fm, fm, preferred_element_type=jnp.float32)
        return g / (c * hh * ww)

    f_out, f_in = feats(y), feats(x)
    losses = [jnp.mean(jnp.abs(x - y))]
    losses += [jnp.mean(jnp.abs(fi.astype(jnp.float32) - fo.astype(jnp.float32))) * w
               for fi, fo, w in zip(f_in, f_out, wgts)]
    losses += [jnp.mean(jnp.abs(gram(fi) - gram(fo))) * (w ** 2) * 5000.0
               for fi, fo, w in zip(f_in, f_out, wgts)]
    return sum(losses)


# ----------------------------------------------------------------------------
if __name__ == "__main__":
    key = jax.random.PRNGKey(0)
    keys = jax.random.split(key, 8)

    N, Cin, H, W = 2, 4, 16, 16
    chans = [Cin, 8, 16, 16]

    # Deterministic synthetic feature-extractor weights (3 conv+ReLU blocks).
    params = []
    for i in range(3):
        w = 0.1 * jax.random.normal(keys[i], (chans[i + 1], chans[i], 3, 3),
                                    jnp.float32)
        b = 0.01 * jax.random.normal(keys[3 + i], (chans[i + 1],), jnp.float32)
        params.append((w, b))

    x = jax.random.normal(keys[6], (N, Cin, H, W), jnp.float32)   # input
    y = jax.random.normal(keys[7], (N, Cin, H, W), jnp.float32)   # target

    layer_ids = [0, 1, 2]
    layer_wgts = [5.0, 15.0, 2.0]

    loss_mod = PerceptualLoss(params, layer_ids, layer_wgts)
    total = jax.block_until_ready(jax.jit(loss_mod.forward)(x, y))

    ref = jax.block_until_ready(_ref_total(params, layer_ids, layer_wgts, x, y))
    rel = abs(float(total) - float(ref)) / max(1.0, abs(float(ref)))
    assert rel <= 5e-3, (float(total), float(ref), rel)

    print("KERNEL_OK")
</pallas_src>

<mosaic_0001>
module attributes {stable_mosaic.version = 11 : i64} {
  func.func @_conv_feat_gram_kernel(%arg0: i32, %arg1: memref<1x2x16x512xbf16, #tpu.memory_space<vmem>>, %arg2: memref<16x144xbf16, #tpu.memory_space<vmem>>, %arg3: memref<16x1xf32, #tpu.memory_space<vmem>>, %arg4: memref<2x256xf32, #tpu.memory_space<vmem>>, %arg5: memref<1x2x16x512xbf16, #tpu.memory_space<vmem>>, %arg6: memref<1x1x1xf32, #tpu.memory_space<smem>>, %arg7: memref<1x1x1xf32, #tpu.memory_space<smem>>, %arg8: memref<1x1x1xf32, #tpu.memory_space<smem>>, %arg9: memref<144x512xf32, #tpu.memory_space<vmem>>) attributes {dimension_semantics = [#tpu.dimension_semantics<parallel>], iteration_bounds = array<i64: 2>, scalar_prefetch = 0 : i64, scratch_operands = 1 : i64, tpu.core_type = #tpu.core_type<tc>, window_params = [{transform_indices = @transform_0, window_bounds = array<i64: 1, 2, 16, 512>}, {pipeline_mode = #tpu.pipeline_mode<synchronous>, transform_indices = @transform_1, window_bounds = array<i64: 16, 144>}, {pipeline_mode = #tpu.pipeline_mode<synchronous>, transform_indices = @transform_2, window_bounds = array<i64: 16, 1>}, {pipeline_mode = #tpu.pipeline_mode<synchronous>, transform_indices = @transform_3, window_bounds = array<i64: 2, 256>}, {transform_indices = @transform_4, window_bounds = array<i64: 1, 2, 16, 512>}, {transform_indices = @transform_5, window_bounds = array<i64: 1, 1, 1>}, {transform_indices = @transform_6, window_bounds = array<i64: 1, 1, 1>}, {transform_indices = @transform_7, window_bounds = array<i64: 1, 1, 1>}]} {
    %cst = arith.constant 0.000000e+00 : f32
    %c0 = arith.constant 0 : index
    %c0_0 = arith.constant 0 : index
    %c0_1 = arith.constant 0 : index
    %0 = memref.load %arg8[%c0, %c0_0, %c0_1] : memref<1x1x1xf32, #tpu.memory_space<smem>>
    memref.store %cst, %arg8[%c0, %c0_0, %c0_1] : memref<1x1x1xf32, #tpu.memory_space<smem>>
    %c0_2 = arith.constant 0 : index
    %c0_3 = arith.constant 0 : index
    %1 = vector.load %arg4[%c0_2, %c0_3] : memref<2x256xf32, #tpu.memory_space<vmem>>, vector<2x256xf32>
    %2 = vector.extract_strided_slice %1 {offsets = [0, 0], sizes = [1, 256], strides = [1, 1]} : vector<2x256xf32> to vector<1x256xf32>
    %3 = vector.extract_strided_slice %1 {offsets = [1, 0], sizes = [1, 256], strides = [1, 1]} : vector<2x256xf32> to vector<1x256xf32>
    %c0_4 = arith.constant 0 : index
    %c0_5 = arith.constant 0 : index
    %c0_6 = arith.constant 0 : index
    %c112 = arith.constant 112 : index
    %4 = vector.load %arg1[%c0_4, %c0_5, %c0_6, %c112] : memref<1x2x16x512xbf16, #tpu.memory_space<vmem>>, vector<1x1x16x256xbf16>
    %5 = vector.shape_cast %4 : vector<1x1x16x256xbf16> to vector<16x256xbf16>
    %6 = arith.extf %5 : vector<16x256xbf16> to vector<16x256xf32>
    %c1_i32 = arith.constant 1 : i32
    %7 = tpu.dynamic_rotate %6 by %c1_i32 dim 1 : vector<16x256xf32>, i32 -> vector<16x256xf32>
    %8 = vector.broadcast %2 : vector<1x256xf32> to vector<16x256xf32>
    %9 = arith.mulf %7, %8 : vector<16x256xf32>
    %c0_7 = arith.constant 0 : index
    %c0_8 = arith.constant 0 : index
    %10 = vector.load %arg9[%c0_7, %c0_8] : memref<144x512xf32, #tpu.memory_space<vmem>>, vector<16x256xf32>
    tpu.vector_store %arg9[%c0_7, %c0_8], %9 {strides = array<i32>} : memref<144x512xf32, #tpu.memory_space<vmem>>, vector<16x256xf32>,
    %c16 = arith.constant 16 : index
    %c0_9 = arith.constant 0 : index
    %11 = vector.load %arg9[%c16, %c0_9] : memref<144x512xf32, #tpu.memory_space<vmem>>, vector<16x256xf32>
    tpu.vector_store %arg9[%c16, %c0_9], %6 {strides = array<i32>} : memref<144x512xf32, #tpu.memory_space<vmem>>, vector<16x256xf32>,
    %c255_i32 = arith.constant 255 : i32
    %12 = tpu.dynamic_rotate %6 by %c255_i32 dim 1 : vector<16x256xf32>, i32 -> vector<16x256xf32>
    %13 = vector.broadcast %3 : vector<1x256xf32> to vector<16x256xf32>
    %14 = arith.mulf %12, %13 : vector<16x256xf32>
    %c32 = arith.constant 32 : index
    %c0_10 = arith.constant 0 : index
    %15 = vector.load %arg9[%c32, %c0_10] : memref<144x512xf32, #tpu.memory_space<vmem>>, vector<16x256xf32>
    tpu.vector_store %arg9[%c32, %c0_10], %14 {strides = array<i32>} : memref<144x512xf32, #tpu.memory_space<vmem>>, vector<16x256xf32>,
    %c0_11 = arith.constant 0 : index
    %c0_12 = arith.constant 0 : index
    %c0_13 = arith.constant 0 : index
    %c128 = arith.constant 128 : index
    %16 = vector.load %arg1[%c0_11, %c0_12, %c0_13, %c128] : memref<1x2x16x512xbf16, #tpu.memory_space<vmem>>, vector<1x1x16x256xbf16>
    %17 = vector.shape_cast %16 : vector<1x1x16x256xbf16> to vector<16x256xbf16>
    %18 = arith.extf %17 : vector<16x256xbf16> to vector<16x256xf32>
    %c1_i32_14 = arith.constant 1 : i32
    %19 = tpu.dynamic_rotate %18 by %c1_i32_14 dim 1 : vector<16x256xf32>, i32 -> vector<16x256xf32>
    %20 = vector.broadcast %2 : vector<1x256xf32> to vector<16x256xf32>
    %21 = arith.mulf %19, %20 : vector<16x256xf32>
    %c48 = arith.constant 48 : index
    %c0_15 = arith.constant 0 : index
    %22 = vector.load %arg9[%c48, %c0_15] : memref<144x512xf32, #tpu.memory_space<vmem>>, vector<16x256xf32>
    tpu.vector_store %arg9[%c48, %c0_15], %21 {strides = array<i32>} : memref<144x512xf32, #tpu.memory_space<vmem>>, vector<16x256xf32>,
    %c64 = arith.constant 64 : index
    %c0_16 = arith.constant 0 : index
    %23 = vector.load %arg9[%c64, %c0_16] : memref<144x512xf32, #tpu.memory_space<vmem>>, vector<16x256xf32>
    tpu.vector_store %arg9[%c64, %c0_16], %18 {strides = array<i32>} : memref<144x512xf32, #tpu.memory_space<vmem>>, vector<16x256xf32>,
    %c255_i32_17 = arith.constant 255 : i32
    %24 = tpu.dynamic_rotate %18 by %c255_i32_17 dim 1 : vector<16x256xf32>, i32 -> vector<16x256xf32>
    %25 = vector.broadcast %3 : vector<1x256xf32> to vector<16x256xf32>
    %26 = arith.mulf %24, %25 : vector<16x256xf32>
    %c80 = arith.constant 80 : index
    %c0_18 = arith.constant 0 : index
    %27 = vector.load %arg9[%c80, %c0_18] : memref<144x512xf32, #tpu.memory_space<vmem>>, vector<16x256xf32>
    tpu.vector_store %arg9[%c80, %c0_18], %26 {strides = array<i32>} : memref<144x512xf32, #tpu.memory_space<vmem>>, vector<16x256xf32>,
    %c0_19 = arith.constant 0 : index
    %c0_20 = arith.constant 0 : index
    %c0_21 = arith.constant 0 : index
    %c144 = arith.constant 144 : index
    %28 = vector.load %arg1[%c0_19, %c0_20, %c0_21, %c144] : memref<1x2x16x512xbf16, #tpu.memory_space<vmem>>, vector<1x1x16x256xbf16>
    %29 = vector.shape_cast %28 : vector<1x1x16x256xbf16> to vector<16x256xbf16>
    %30 = arith.extf %29 : vector<16x256xbf16> to vector<16x256xf32>
    %c1_i32_22 = arith.constant 1 : i32
    %31 = tpu.dynamic_rotate %30 by %c1_i32_22 dim 1 : vector<16x256xf32>, i32 -> vector<16x256xf32>
    %32 = vector.broadcast %2 : vector<1x256xf32> to vector<16x256xf32>
    %33 = arith.mulf %31, %32 : vector<16x256xf32>
    %c96 = arith.constant 96 : index
    %c0_23 = arith.constant 0 : index
    %34 = vector.load %arg9[%c96, %c0_23] : memref<144x512xf32, #tpu.memory_space<vmem>>, vector<16x256xf32>
    tpu.vector_store %arg9[%c96, %c0_23], %33 {strides = array<i32>} : memref<144x512xf32, #tpu.memory_space<vmem>>, vector<16x256xf32>,
    %c112_24 = arith.constant 112 : index
    %c0_25 = arith.constant 0 : index
    %35 = vector.load %arg9[%c112_24, %c0_25] : memref<144x512xf32, #tpu.memory_space<vmem>>, vector<16x256xf32>
    tpu.vector_store %arg9[%c112_24, %c0_25], %30 {strides = array<i32>} : memref<144x512xf32, #tpu.memory_space<vmem>>, vector<16x256xf32>,
    %c255_i32_26 = arith.constant 255 : i32
    %36 = tpu.dynamic_rotate %30 by %c255_i32_26 dim 1 : vector<16x256xf32>, i32 -> vector<16x256xf32>
    %37 = vector.broadcast %3 : vector<1x256xf32> to vector<16x256xf32>
    %38 = arith.mulf %36, %37 : vector<16x256xf32>
    %c128_27 = arith.constant 128 : index
    %c0_28 = arith.constant 0 : index
    %39 = vector.load %arg9[%c128_27, %c0_28] : memref<144x512xf32, #tpu.memory_space<vmem>>, vector<16x256xf32>
    tpu.vector_store %arg9[%c128_27, %c0_28], %38 {strides = array<i32>} : memref<144x512xf32, #tpu.memory_space<vmem>>, vector<16x256xf32>,
    %c0_29 = arith.constant 0 : index
    %c1 = arith.constant 1 : index
    %c0_30 = arith.constant 0 : index
    %c112_31 = arith.constant 112 : index
    %40 = vector.load %arg1[%c0_29, %c1, %c0_30, %c112_31] : memref<1x2x16x512xbf16, #tpu.memory_space<vmem>>, vector<1x1x16x256xbf16>
    %41 = vector.shape_cast %40 : vector<1x1x16x256xbf16> to vector<16x256xbf16>
    %42 = arith.extf %41 : vector<16x256xbf16> to vector<16x256xf32>
    %c1_i32_32 = arith.constant 1 : i32
    %43 = tpu.dynamic_rotate %42 by %c1_i32_32 dim 1 : vector<16x256xf32>, i32 -> vector<16x256xf32>
    %44 = vector.broadcast %2 : vector<1x256xf32> to vector<16x256xf32>
    %45 = arith.mulf %43, %44 : vector<16x256xf32>
    %c0_33 = arith.constant 0 : index
    %c256 = arith.constant 256 : index
    %46 = vector.load %arg9[%c0_33, %c256] : memref<144x512xf32, #tpu.memory_space<vmem>>, vector<16x256xf32>
    tpu.vector_store %arg9[%c0_33, %c256], %45 {strides = array<i32>} : memref<144x512xf32, #tpu.memory_space<vmem>>, vector<16x256xf32>,
    %c16_34 = arith.constant 16 : index
    %c256_35 = arith.constant 256 : index
    %47 = vector.load %arg9[%c16_34, %c256_35] : memref<144x512xf32, #tpu.memory_space<vmem>>, vector<16x256xf32>
    tpu.vector_store %arg9[%c16_34, %c256_35], %42 {strides = array<i32>} : memref<144x512xf32, #tpu.memory_space<vmem>>, vector<16x256xf32>,
    %c255_i32_36 = arith.constant 255 : i32
    %48 = tpu.dynamic_rotate %42 by %c255_i32_36 dim 1 : vector<16x256xf32>, i32 -> vector<16x256xf32>
    %49 = vector.broadcast %3 : vector<1x256xf32> to vector<16x256xf32>
    %50 = arith.mulf %48, %49 : vector<16x256xf32>
    %c32_37 = arith.constant 32 : index
    %c256_38 = arith.constant 256 : index
    %51 = vector.load %arg9[%c32_37, %c256_38] : memref<144x512xf32, #tpu.memory_space<vmem>>, vector<16x256xf32>
    tpu.vector_store %arg9[%c32_37, %c256_38], %50 {strides = array<i32>} : memref<144x512xf32, #tpu.memory_space<vmem>>, vector<16x256xf32>,
    %c0_39 = arith.constant 0 : index
    %c1_40 = arith.constant 1 : index
    %c0_41 = arith.constant 0 : index
    %c128_42 = arith.constant 128 : index
    %52 = vector.load %arg1[%c0_39, %c1_40, %c0_41, %c128_42] : memref<1x2x16x512xbf16, #tpu.memory_space<vmem>>, vector<1x1x16x256xbf16>
    %53 = vector.shape_cast %52 : vector<1x1x16x256xbf16> to vector<16x256xbf16>
    %54 = arith.extf %53 : vector<16x256xbf16> to vector<16x256xf32>
    %c1_i32_43 = arith.constant 1 : i32
    %55 = tpu.dynamic_rotate %54 by %c1_i32_43 dim 1 : vector<16x256xf32>, i32 -> vector<16x256xf32>
    %56 = vector.broadcast %2 : vector<1x256xf32> to vector<16x256xf32>
    %57 = arith.mulf %55, %56 : vector<16x256xf32>
    %c48_44 = arith.constant 48 : index
    %c256_45 = arith.constant 256 : index
    %58 = vector.load %arg9[%c48_44, %c256_45] : memref<144x512xf32, #tpu.memory_space<vmem>>, vector<16x256xf32>
    tpu.vector_store %arg9[%c48_44, %c256_45], %57 {strides = array<i32>} : memref<144x512xf32, #tpu.memory_space<vmem>>, vector<16x256xf32>,
    %c64_46 = arith.constant 64 : index
    %c256_47 = arith.constant 256 : index
    %59 = vector.load %arg9[%c64_46, %c256_47] : memref<144x512xf32, #tpu.memory_space<vmem>>, vector<16x256xf32>
    tpu.vector_store %arg9[%c64_46, %c256_47], %54 {strides = array<i32>} : memref<144x512xf32, #tpu.memory_space<vmem>>, vector<16x256xf32>,
    %c255_i32_48 = arith.constant 255 : i32
    %60 = tpu.dynamic_rotate %54 by %c255_i32_48 dim 1 : vector<16x256xf32>, i32 -> vector<16x256xf32>
    %61 = vector.broadcast %3 : vector<1x256xf32> to vector<16x256xf32>
    %62 = arith.mulf %60, %61 : vector<16x256xf32>
    %c80_49 = arith.constant 80 : index
    %c256_50 = arith.constant 256 : index
    %63 = vector.load %arg9[%c80_49, %c256_50] : memref<144x512xf32, #tpu.memory_space<vmem>>, vector<16x256xf32>
    tpu.vector_store %arg9[%c80_49, %c256_50], %62 {strides = array<i32>} : memref<144x512xf32, #tpu.memory_space<vmem>>, vector<16x256xf32>,
    %c0_51 = arith.constant 0 : index
    %c1_52 = arith.constant 1 : index
    %c0_53 = arith.constant 0 : index
    %c144_54 = arith.constant 144 : index
    %64 = vector.load %arg1[%c0_51, %c1_52, %c0_53, %c144_54] : memref<1x2x16x512xbf16, #tpu.memory_space<vmem>>, vector<1x1x16x256xbf16>
    %65 = vector.shape_cast %64 : vector<1x1x16x256xbf16> to vector<16x256xbf16>
    %66 = arith.extf %65 : vector<16x256xbf16> to vector<16x256xf32>
    %c1_i32_55 = arith.constant 1 : i32
    %67 = tpu.dynamic_rotate %66 by %c1_i32_55 dim 1 : vector<16x256xf32>, i32 -> vector<16x256xf32>
    %68 = vector.broadcast %2 : vector<1x256xf32> to vector<16x256xf32>
    %69 = arith.mulf %67, %68 : vector<16x256xf32>
    %c96_56 = arith.constant 96 : index
    %c256_57 = arith.constant 256 : index
    %70 = vector.load %arg9[%c96_56, %c256_57] : memref<144x512xf32, #tpu.memory_space<vmem>>, vector<16x256xf32>
    tpu.vector_store %arg9[%c96_56, %c256_57], %69 {strides = array<i32>} : memref<144x512xf32, #tpu.memory_space<vmem>>, vector<16x256xf32>,
    %c112_58 = arith.constant 112 : index
    %c256_59 = arith.constant 256 : index
    %71 = vector.load %arg9[%c112_58, %c256_59] : memref<144x512xf32, #tpu.memory_space<vmem>>, vector<16x256xf32>
    tpu.vector_store %arg9[%c112_58, %c256_59], %66 {strides = array<i32>} : memref<144x512xf32, #tpu.memory_space<vmem>>, vector<16x256xf32>,
    %c255_i32_60 = arith.constant 255 : i32
    %72 = tpu.dynamic_rotate %66 by %c255_i32_60 dim 1 : vector<16x256xf32>, i32 -> vector<16x256xf32>
    %73 = vector.broadcast %3 : vector<1x256xf32> to vector<16x256xf32>
    %74 = arith.mulf %72, %73 : vector<16x256xf32>
    %c128_61 = arith.constant 128 : index
    %c256_62 = arith.constant 256 : index
    %75 = vector.load %arg9[%c128_61, %c256_62] : memref<144x512xf32, #tpu.memory_space<vmem>>, vector<16x256xf32>
    tpu.vector_store %arg9[%c128_61, %c256_62], %74 {strides = array<i32>} : memref<144x512xf32, #tpu.memory_space<vmem>>, vector<16x256xf32>,
    %c0_63 = arith.constant 0 : index
    %c0_64 = arith.constant 0 : index
    %76 = vector.load %arg2[%c0_63, %c0_64] : memref<16x144xbf16, #tpu.memory_space<vmem>>, vector<16x144xbf16>
    %c0_65 = arith.constant 0 : index
    %c0_66 = arith.constant 0 : index
    %77 = vector.load %arg9[%c0_65, %c0_66] : memref<144x512xf32, #tpu.memory_space<vmem>>, vector<144x512xf32>
    %78 = arith.truncf %77 : vector<144x512xf32> to vector<144x512xbf16>
    %cst_67 = arith.constant dense<0.000000e+00> : vector<16x512xf32>
    %79 = tpu.matmul %76, %78, %cst_67 {dimension_numbers = #tpu.dot_dimension_numbers<[1], [0], [0], [1], [0, 0, 1, 1], [], []>} : vector<16x144xbf16>, vector<144x512xbf16>, vector<16x512xf32> -> vector<16x512xf32>
    %c0_68 = arith.constant 0 : index
    %c0_69 = arith.constant 0 : index
    %80 = vector.load %arg3[%c0_68, %c0_69] : memref<16x1xf32, #tpu.memory_space<vmem>>, vector<16x1xf32>
    %81 = vector.broadcast %80 : vector<16x1xf32> to vector<16x512xf32>
    %82 = arith.addf %79, %81 : vector<16x512xf32>
    %cst_70 = arith.constant 0.000000e+00 : f32
    %83 = vector.broadcast %cst_70 : f32 to vector<16x512xf32>
    %84 = arith.maximumf %82, %83 : vector<16x512xf32>
    %85 = arith.truncf %84 : vector<16x512xf32> to vector<16x512xbf16>
    %86 = vector.extract_strided_slice %85 {offsets = [0, 0], sizes = [16, 256], strides = [1, 1]} : vector<16x512xbf16> to vector<16x256xbf16>
    %87 = vector.extract_strided_slice %85 {offsets = [0, 256], sizes = [16, 256], strides = [1, 1]} : vector<16x512xbf16> to vector<16x256xbf16>
    %cst_71 = arith.constant 0.000000e+00 : bf16
    %88 = vector.broadcast %cst_71 : bf16 to vector<16x128xbf16>
    %c0_72 = arith.constant 0 : index
    %c0_73 = arith.constant 0 : index
    %c0_74 = arith.constant 0 : index
    %c0_75 = arith.constant 0 : index
    %89 = vector.load %arg5[%c0_72, %c0_73, %c0_74, %c0_75] : memref<1x2x16x512xbf16, #tpu.memory_space<vmem>>, vector<1x1x16x128xbf16>
    %90 = vector.shape_cast %89 : vector<1x1x16x128xbf16> to vector<16x128xbf16>
    %91 = vector.shape_cast %88 : vector<16x128xbf16> to vector<1x1x16x128xbf16>
    tpu.vector_store %arg5[%c0_72, %c0_73, %c0_74, %c0_75], %91 {strides = array<i32>} : memref<1x2x16x512xbf16, #tpu.memory_space<vmem>>, vector<1x1x16x128xbf16>,
    %c0_76 = arith.constant 0 : index
    %c0_77 = arith.constant 0 : index
    %c0_78 = arith.constant 0 : index
    %c128_79 = arith.constant 128 : index
    %92 = vector.load %arg5[%c0_76, %c0_77, %c0_78, %c128_79] : memref<1x2x16x512xbf16, #tpu.memory_space<vmem>>, vector<1x1x16x256xbf16>
    %93 = vector.shape_cast %92 : vector<1x1x16x256xbf16> to vector<16x256xbf16>
    %94 = vector.shape_cast %86 : vector<16x256xbf16> to vector<1x1x16x256xbf16>
    tpu.vector_store %arg5[%c0_76, %c0_77, %c0_78, %c128_79], %94 {strides = array<i32>} : memref<1x2x16x512xbf16, #tpu.memory_space<vmem>>, vector<1x1x16x256xbf16>,
    %c0_80 = arith.constant 0 : index
    %c0_81 = arith.constant 0 : index
    %c0_82 = arith.constant 0 : index
    %c384 = arith.constant 384 : index
    %95 = vector.load %arg5[%c0_80, %c0_81, %c0_82, %c384] : memref<1x2x16x512xbf16, #tpu.memory_space<vmem>>, vector<1x1x16x128xbf16>
    %96 = vector.shape_cast %95 : vector<1x1x16x128xbf16> to vector<16x128xbf16>
    %97 = vector.shape_cast %88 : vector<16x128xbf16> to vector<1x1x16x128xbf16>
    tpu.vector_store %arg5[%c0_80, %c0_81, %c0_82, %c384], %97 {strides = array<i32>} : memref<1x2x16x512xbf16, #tpu.memory_space<vmem>>, vector<1x1x16x128xbf16>,
    %c0_83 = arith.constant 0 : index
    %c1_84 = arith.constant 1 : index
    %c0_85 = arith.constant 0 : index
    %c0_86 = arith.constant 0 : index
    %98 = vector.load %arg5[%c0_83, %c1_84, %c0_85, %c0_86] : memref<1x2x16x512xbf16, #tpu.memory_space<vmem>>, vector<1x1x16x128xbf16>
    %99 = vector.shape_cast %98 : vector<1x1x16x128xbf16> to vector<16x128xbf16>
    %100 = vector.shape_cast %88 : vector<16x128xbf16> to vector<1x1x16x128xbf16>
    tpu.vector_store %arg5[%c0_83, %c1_84, %c0_85, %c0_86], %100 {strides = array<i32>} : memref<1x2x16x512xbf16, #tpu.memory_space<vmem>>, vector<1x1x16x128xbf16>,
    %c0_87 = arith.constant 0 : index
    %c1_88 = arith.constant 1 : index
    %c0_89 = arith.constant 0 : index
    %c128_90 = arith.constant 128 : index
    %101 = vector.load %arg5[%c0_87, %c1_88, %c0_89, %c128_90] : memref<1x2x16x512xbf16, #tpu.memory_space<vmem>>, vector<1x1x16x256xbf16>
    %102 = vector.shape_cast %101 : vector<1x1x16x256xbf16> to vector<16x256xbf16>
    %103 = vector.shape_cast %87 : vector<16x256xbf16> to vector<1x1x16x256xbf16>
    tpu.vector_store %arg5[%c0_87, %c1_88, %c0_89, %c128_90], %103 {strides = array<i32>} : memref<1x2x16x512xbf16, #tpu.memory_space<vmem>>, vector<1x1x16x256xbf16>,
    %c0_91 = arith.constant 0 : index
    %c1_92 = arith.constant 1 : index
    %c0_93 = arith.constant 0 : index
    %c384_94 = arith.constant 384 : index
    %104 = vector.load %arg5[%c0_91, %c1_92, %c0_93, %c384_94] : memref<1x2x16x512xbf16, #tpu.memory_space<vmem>>, vector<1x1x16x128xbf16>
    %105 = vector.shape_cast %104 : vector<1x1x16x128xbf16> to vector<16x128xbf16>
    %106 = vector.shape_cast %88 : vector<16x128xbf16> to vector<1x1x16x128xbf16>
    tpu.vector_store %arg5[%c0_91, %c1_92, %c0_93, %c384_94], %106 {strides = array<i32>} : memref<1x2x16x512xbf16, #tpu.memory_space<vmem>>, vector<1x1x16x128xbf16>,
    %107 = arith.extf %87 : vector<16x256xbf16> to vector<16x256xf32>
    %108 = arith.extf %86 : vector<16x256xbf16> to vector<16x256xf32>
    %109 = arith.subf %107, %108 : vector<16x256xf32>
    %110 = math.absf %109 : vector<16x256xf32>
    %111 = vector.shape_cast %110 : vector<16x256xf32> to vector<1x16x256xf32>
    %cst_95 = arith.constant dense<0.000000e+00> : vector<1xf32>
    %112 = vector.multi_reduction <add>, %111, %cst_95 [1, 2] : vector<1x16x256xf32> to vector<1xf32>
    %113 = vector.shape_cast %112 : vector<1xf32> to vector<1x1x1xf32>
    %114 = vector.extract %113[0, 0, 0] : f32 from vector<1x1x1xf32>
    %c0_96 = arith.constant 0 : index
    %c0_97 = arith.constant 0 : index
    %c0_98 = arith.constant 0 : index
    %115 = memref.load %arg6[%c0_96, %c0_97, %c0_98] : memref<1x1x1xf32, #tpu.memory_space<smem>>
    memref.store %114, %arg6[%c0_96, %c0_97, %c0_98] : memref<1x1x1xf32, #tpu.memory_space<smem>>
    %cst_99 = arith.constant dense<0.000000e+00> : vector<16x16xf32>
    %116 = tpu.matmul %87, %87, %cst_99 {dimension_numbers = #tpu.dot_dimension_numbers<[1], [1], [0], [0], [0, 0, 1, 0], [], []>} : vector<16x256xbf16>, vector<16x256xbf16>, vector<16x16xf32> -> vector<16x16xf32>
    %cst_100 = arith.constant 2.44140625E-4 : f32
    %117 = vector.broadcast %cst_100 : f32 to vector<16x16xf32>
    %118 = arith.mulf %116, %117 : vector<16x16xf32>
    %cst_101 = arith.constant dense<0.000000e+00> : vector<16x16xf32>
    %119 = tpu.matmul %86, %86, %cst_101 {dimension_numbers = #tpu.dot_dimension_numbers<[1], [1], [0], [0], [0, 0, 1, 0], [], []>} : vector<16x256xbf16>, vector<16x256xbf16>, vector<16x16xf32> -> vector<16x16xf32>
    %cst_102 = arith.constant 2.44140625E-4 : f32
    %120 = vector.broadcast %cst_102 : f32 to vector<16x16xf32>
    %121 = arith.mulf %119, %120 : vector<16x16xf32>
    %122 = arith.subf %118, %121 : vector<16x16xf32>
    %123 = math.absf %122 : vector<16x16xf32>
    %124 = vector.shape_cast %123 : vector<16x16xf32> to vector<1x16x16xf32>
    %cst_103 = arith.constant dense<0.000000e+00> : vector<1xf32>
    %125 = vector.multi_reduction <add>, %124, %cst_103 [1, 2] : vector<1x16x16xf32> to vector<1xf32>
    %126 = vector.shape_cast %125 : vector<1xf32> to vector<1x1x1xf32>
    %127 = vector.extract %126[0, 0, 0] : f32 from vector<1x1x1xf32>
    %c0_104 = arith.constant 0 : index
    %c0_105 = arith.constant 0 : index
    %c0_106 = arith.constant 0 : index
    %128 = memref.load %arg7[%c0_104, %c0_105, %c0_106] : memref<1x1x1xf32, #tpu.memory_space<smem>>
    memref.store %127, %arg7[%c0_104, %c0_105, %c0_106] : memref<1x1x1xf32, #tpu.memory_space<smem>>
    return
  }
  func.func @transform_0(%arg0: i32) -> (i32, i32, i32, i32) {
    %c0_i32 = arith.constant 0 : i32
    %c0_i32_0 = arith.constant 0 : i32
    %c0_i32_1 = arith.constant 0 : i32
    %c0_i32_2 = arith.constant 0 : i32
    return %arg0, %c0_i32, %c0_i32_0, %c0_i32_1 : i32, i32, i32, i32
  }
  func.func @transform_1(%arg0: i32) -> (i32, i32) {
    %c0_i32 = arith.constant 0 : i32
    %c0_i32_0 = arith.constant 0 : i32
    %c0_i32_1 = arith.constant 0 : i32
    return %c0_i32, %c0_i32_0 : i32, i32
  }
  func.func @transform_2(%arg0: i32) -> (i32, i32) {
    %c0_i32 = arith.constant 0 : i32
    %c0_i32_0 = arith.constant 0 : i32
    %c0_i32_1 = arith.constant 0 : i32
    return %c0_i32, %c0_i32_0 : i32, i32
  }
  func.func @transform_3(%arg0: i32) -> (i32, i32) {
    %c0_i32 = arith.constant 0 : i32
    %c0_i32_0 = arith.constant 0 : i32
    %c0_i32_1 = arith.constant 0 : i32
    return %c0_i32, %c0_i32_0 : i32, i32
  }
  func.func @transform_4(%arg0: i32) -> (i32, i32, i32, i32) {
    %c0_i32 = arith.constant 0 : i32
    %c0_i32_0 = arith.constant 0 : i32
    %c0_i32_1 = arith.constant 0 : i32
    %c0_i32_2 = arith.constant 0 : i32
    return %arg0, %c0_i32, %c0_i32_0, %c0_i32_1 : i32, i32, i32, i32
  }
  func.func @transform_5(%arg0: i32) -> (i32, i32, i32) {
    %c0_i32 = arith.constant 0 : i32
    %c0_i32_0 = arith.constant 0 : i32
    %c0_i32_1 = arith.constant 0 : i32
    return %arg0, %c0_i32, %c0_i32_0 : i32, i32, i32
  }
  func.func @transform_6(%arg0: i32) -> (i32, i32, i32) {
    %c0_i32 = arith.constant 0 : i32
    %c0_i32_0 = arith.constant 0 : i32
    %c0_i32_1 = arith.constant 0 : i32
    return %arg0, %c0_i32, %c0_i32_0 : i32, i32, i32
  }
  func.func @transform_7(%arg0: i32) -> (i32, i32, i32) {
    %c0_i32 = arith.constant 0 : i32
    %c0_i32_0 = arith.constant 0 : i32
    %c0_i32_1 = arith.constant 0 : i32
    return %arg0, %c0_i32, %c0_i32_0 : i32, i32, i32
  }
}

module attributes {stable_mosaic.version = 11 : i64} {
  func.func @_conv_feat_gram_kernel(%arg0: i32, %arg1: memref<1x2x8x512xbf16, #tpu.memory_space<vmem>>, %arg2: memref<16x72xbf16, #tpu.memory_space<vmem>>, %arg3: memref<16x1xf32, #tpu.memory_space<vmem>>, %arg4: memref<2x256xf32, #tpu.memory_space<vmem>>, %arg5: memref<1x2x16x512xbf16, #tpu.memory_space<vmem>>, %arg6: memref<1x1x1xf32, #tpu.memory_space<smem>>, %arg7: memref<1x1x1xf32, #tpu.memory_space<smem>>, %arg8: memref<1x1x1xf32, #tpu.memory_space<smem>>, %arg9: memref<72x512xf32, #tpu.memory_space<vmem>>) attributes {dimension_semantics = [#tpu.dimension_semantics<parallel>], iteration_bounds = array<i64: 2>, scalar_prefetch = 0 : i64, scratch_operands = 1 : i64, tpu.core_type = #tpu.core_type<tc>, window_params = [{transform_indices = @transform_0, window_bounds = array<i64: 1, 2, 8, 512>}, {pipeline_mode = #tpu.pipeline_mode<synchronous>, transform_indices = @transform_1, window_bounds = array<i64: 16, 72>}, {pipeline_mode = #tpu.pipeline_mode<synchronous>, transform_indices = @transform_2, window_bounds = array<i64: 16, 1>}, {pipeline_mode = #tpu.pipeline_mode<synchronous>, transform_indices = @transform_3, window_bounds = array<i64: 2, 256>}, {transform_indices = @transform_4, window_bounds = array<i64: 1, 2, 16, 512>}, {transform_indices = @transform_5, window_bounds = array<i64: 1, 1, 1>}, {transform_indices = @transform_6, window_bounds = array<i64: 1, 1, 1>}, {transform_indices = @transform_7, window_bounds = array<i64: 1, 1, 1>}]} {
    %cst = arith.constant 0.000000e+00 : f32
    %c0 = arith.constant 0 : index
    %c0_0 = arith.constant 0 : index
    %c0_1 = arith.constant 0 : index
    %0 = memref.load %arg8[%c0, %c0_0, %c0_1] : memref<1x1x1xf32, #tpu.memory_space<smem>>
    memref.store %cst, %arg8[%c0, %c0_0, %c0_1] : memref<1x1x1xf32, #tpu.memory_space<smem>>
    %c0_2 = arith.constant 0 : index
    %c0_3 = arith.constant 0 : index
    %1 = vector.load %arg4[%c0_2, %c0_3] : memref<2x256xf32, #tpu.memory_space<vmem>>, vector<2x256xf32>
    %2 = vector.extract_strided_slice %1 {offsets = [0, 0], sizes = [1, 256], strides = [1, 1]} : vector<2x256xf32> to vector<1x256xf32>
    %3 = vector.extract_strided_slice %1 {offsets = [1, 0], sizes = [1, 256], strides = [1, 1]} : vector<2x256xf32> to vector<1x256xf32>
    %c0_4 = arith.constant 0 : index
    %c0_5 = arith.constant 0 : index
    %c0_6 = arith.constant 0 : index
    %c112 = arith.constant 112 : index
    %4 = vector.load %arg1[%c0_4, %c0_5, %c0_6, %c112] : memref<1x2x8x512xbf16, #tpu.memory_space<vmem>>, vector<1x1x8x256xbf16>
    %5 = vector.shape_cast %4 : vector<1x1x8x256xbf16> to vector<8x256xbf16>
    %6 = arith.extf %5 : vector<8x256xbf16> to vector<8x256xf32>
    %c1_i32 = arith.constant 1 : i32
    %7 = tpu.dynamic_rotate %6 by %c1_i32 dim 1 : vector<8x256xf32>, i32 -> vector<8x256xf32>
    %8 = vector.broadcast %2 : vector<1x256xf32> to vector<8x256xf32>
    %9 = arith.mulf %7, %8 : vector<8x256xf32>
    %c0_7 = arith.constant 0 : index
    %c0_8 = arith.constant 0 : index
    %10 = vector.load %arg9[%c0_7, %c0_8] : memref<72x512xf32, #tpu.memory_space<vmem>>, vector<8x256xf32>
    tpu.vector_store %arg9[%c0_7, %c0_8], %9 {strides = array<i32>} : memref<72x512xf32, #tpu.memory_space<vmem>>, vector<8x256xf32>,
    %c8 = arith.constant 8 : index
    %c0_9 = arith.constant 0 : index
    %11 = vector.load %arg9[%c8, %c0_9] : memref<72x512xf32, #tpu.memory_space<vmem>>, vector<8x256xf32>
    tpu.vector_store %arg9[%c8, %c0_9], %6 {strides = array<i32>} : memref<72x512xf32, #tpu.memory_space<vmem>>, vector<8x256xf32>,
    %c255_i32 = arith.constant 255 : i32
    %12 = tpu.dynamic_rotate %6 by %c255_i32 dim 1 : vector<8x256xf32>, i32 -> vector<8x256xf32>
    %13 = vector.broadcast %3 : vector<1x256xf32> to vector<8x256xf32>
    %14 = arith.mulf %12, %13 : vector<8x256xf32>
    %c16 = arith.constant 16 : index
    %c0_10 = arith.constant 0 : index
    %15 = vector.load %arg9[%c16, %c0_10] : memref<72x512xf32, #tpu.memory_space<vmem>>, vector<8x256xf32>
    tpu.vector_store %arg9[%c16, %c0_10], %14 {strides = array<i32>} : memref<72x512xf32, #tpu.memory_space<vmem>>, vector<8x256xf32>,
    %c0_11 = arith.constant 0 : index
    %c0_12 = arith.constant 0 : index
    %c0_13 = arith.constant 0 : index
    %c128 = arith.constant 128 : index
    %16 = vector.load %arg1[%c0_11, %c0_12, %c0_13, %c128] : memref<1x2x8x512xbf16, #tpu.memory_space<vmem>>, vector<1x1x8x256xbf16>
    %17 = vector.shape_cast %16 : vector<1x1x8x256xbf16> to vector<8x256xbf16>
    %18 = arith.extf %17 : vector<8x256xbf16> to vector<8x256xf32>
    %c1_i32_14 = arith.constant 1 : i32
    %19 = tpu.dynamic_rotate %18 by %c1_i32_14 dim 1 : vector<8x256xf32>, i32 -> vector<8x256xf32>
    %20 = vector.broadcast %2 : vector<1x256xf32> to vector<8x256xf32>
    %21 = arith.mulf %19, %20 : vector<8x256xf32>
    %c24 = arith.constant 24 : index
    %c0_15 = arith.constant 0 : index
    %22 = vector.load %arg9[%c24, %c0_15] : memref<72x512xf32, #tpu.memory_space<vmem>>, vector<8x256xf32>
    tpu.vector_store %arg9[%c24, %c0_15], %21 {strides = array<i32>} : memref<72x512xf32, #tpu.memory_space<vmem>>, vector<8x256xf32>,
    %c32 = arith.constant 32 : index
    %c0_16 = arith.constant 0 : index
    %23 = vector.load %arg9[%c32, %c0_16] : memref<72x512xf32, #tpu.memory_space<vmem>>, vector<8x256xf32>
    tpu.vector_store %arg9[%c32, %c0_16], %18 {strides = array<i32>} : memref<72x512xf32, #tpu.memory_space<vmem>>, vector<8x256xf32>,
    %c255_i32_17 = arith.constant 255 : i32
    %24 = tpu.dynamic_rotate %18 by %c255_i32_17 dim 1 : vector<8x256xf32>, i32 -> vector<8x256xf32>
    %25 = vector.broadcast %3 : vector<1x256xf32> to vector<8x256xf32>
    %26 = arith.mulf %24, %25 : vector<8x256xf32>
    %c40 = arith.constant 40 : index
    %c0_18 = arith.constant 0 : index
    %27 = vector.load %arg9[%c40, %c0_18] : memref<72x512xf32, #tpu.memory_space<vmem>>, vector<8x256xf32>
    tpu.vector_store %arg9[%c40, %c0_18], %26 {strides = array<i32>} : memref<72x512xf32, #tpu.memory_space<vmem>>, vector<8x256xf32>,
    %c0_19 = arith.constant 0 : index
    %c0_20 = arith.constant 0 : index
    %c0_21 = arith.constant 0 : index
    %c144 = arith.constant 144 : index
    %28 = vector.load %arg1[%c0_19, %c0_20, %c0_21, %c144] : memref<1x2x8x512xbf16, #tpu.memory_space<vmem>>, vector<1x1x8x256xbf16>
    %29 = vector.shape_cast %28 : vector<1x1x8x256xbf16> to vector<8x256xbf16>
    %30 = arith.extf %29 : vector<8x256xbf16> to vector<8x256xf32>
    %c1_i32_22 = arith.constant 1 : i32
    %31 = tpu.dynamic_rotate %30 by %c1_i32_22 dim 1 : vector<8x256xf32>, i32 -> vector<8x256xf32>
    %32 = vector.broadcast %2 : vector<1x256xf32> to vector<8x256xf32>
    %33 = arith.mulf %31, %32 : vector<8x256xf32>
    %c48 = arith.constant 48 : index
    %c0_23 = arith.constant 0 : index
    %34 = vector.load %arg9[%c48, %c0_23] : memref<72x512xf32, #tpu.memory_space<vmem>>, vector<8x256xf32>
    tpu.vector_store %arg9[%c48, %c0_23], %33 {strides = array<i32>} : memref<72x512xf32, #tpu.memory_space<vmem>>, vector<8x256xf32>,
    %c56 = arith.constant 56 : index
    %c0_24 = arith.constant 0 : index
    %35 = vector.load %arg9[%c56, %c0_24] : memref<72x512xf32, #tpu.memory_space<vmem>>, vector<8x256xf32>
    tpu.vector_store %arg9[%c56, %c0_24], %30 {strides = array<i32>} : memref<72x512xf32, #tpu.memory_space<vmem>>, vector<8x256xf32>,
    %c255_i32_25 = arith.constant 255 : i32
    %36 = tpu.dynamic_rotate %30 by %c255_i32_25 dim 1 : vector<8x256xf32>, i32 -> vector<8x256xf32>
    %37 = vector.broadcast %3 : vector<1x256xf32> to vector<8x256xf32>
    %38 = arith.mulf %36, %37 : vector<8x256xf32>
    %c64 = arith.constant 64 : index
    %c0_26 = arith.constant 0 : index
    %39 = vector.load %arg9[%c64, %c0_26] : memref<72x512xf32, #tpu.memory_space<vmem>>, vector<8x256xf32>
    tpu.vector_store %arg9[%c64, %c0_26], %38 {strides = array<i32>} : memref<72x512xf32, #tpu.memory_space<vmem>>, vector<8x256xf32>,
    %c0_27 = arith.constant 0 : index
    %c1 = arith.constant 1 : index
    %c0_28 = arith.constant 0 : index
    %c112_29 = arith.constant 112 : index
    %40 = vector.load %arg1[%c0_27, %c1, %c0_28, %c112_29] : memref<1x2x8x512xbf16, #tpu.memory_space<vmem>>, vector<1x1x8x256xbf16>
    %41 = vector.shape_cast %40 : vector<1x1x8x256xbf16> to vector<8x256xbf16>
    %42 = arith.extf %41 : vector<8x256xbf16> to vector<8x256xf32>
    %c1_i32_30 = arith.constant 1 : i32
    %43 = tpu.dynamic_rotate %42 by %c1_i32_30 dim 1 : vector<8x256xf32>, i32 -> vector<8x256xf32>
    %44 = vector.broadcast %2 : vector<1x256xf32> to vector<8x256xf32>
    %45 = arith.mulf %43, %44 : vector<8x256xf32>
    %c0_31 = arith.constant 0 : index
    %c256 = arith.constant 256 : index
    %46 = vector.load %arg9[%c0_31, %c256] : memref<72x512xf32, #tpu.memory_space<vmem>>, vector<8x256xf32>
    tpu.vector_store %arg9[%c0_31, %c256], %45 {strides = array<i32>} : memref<72x512xf32, #tpu.memory_space<vmem>>, vector<8x256xf32>,
    %c8_32 = arith.constant 8 : index
    %c256_33 = arith.constant 256 : index
    %47 = vector.load %arg9[%c8_32, %c256_33] : memref<72x512xf32, #tpu.memory_space<vmem>>, vector<8x256xf32>
    tpu.vector_store %arg9[%c8_32, %c256_33], %42 {strides = array<i32>} : memref<72x512xf32, #tpu.memory_space<vmem>>, vector<8x256xf32>,
    %c255_i32_34 = arith.constant 255 : i32
    %48 = tpu.dynamic_rotate %42 by %c255_i32_34 dim 1 : vector<8x256xf32>, i32 -> vector<8x256xf32>
    %49 = vector.broadcast %3 : vector<1x256xf32> to vector<8x256xf32>
    %50 = arith.mulf %48, %49 : vector<8x256xf32>
    %c16_35 = arith.constant 16 : index
    %c256_36 = arith.constant 256 : index
    %51 = vector.load %arg9[%c16_35, %c256_36] : memref<72x512xf32, #tpu.memory_space<vmem>>, vector<8x256xf32>
    tpu.vector_store %arg9[%c16_35, %c256_36], %50 {strides = array<i32>} : memref<72x512xf32, #tpu.memory_space<vmem>>, vector<8x256xf32>,
    %c0_37 = arith.constant 0 : index
    %c1_38 = arith.constant 1 : index
    %c0_39 = arith.constant 0 : index
    %c128_40 = arith.constant 128 : index
    %52 = vector.load %arg1[%c0_37, %c1_38, %c0_39, %c128_40] : memref<1x2x8x512xbf16, #tpu.memory_space<vmem>>, vector<1x1x8x256xbf16>
    %53 = vector.shape_cast %52 : vector<1x1x8x256xbf16> to vector<8x256xbf16>
    %54 = arith.extf %53 : vector<8x256xbf16> to vector<8x256xf32>
    %c1_i32_41 = arith.constant 1 : i32
    %55 = tpu.dynamic_rotate %54 by %c1_i32_41 dim 1 : vector<8x256xf32>, i32 -> vector<8x256xf32>
    %56 = vector.broadcast %2 : vector<1x256xf32> to vector<8x256xf32>
    %57 = arith.mulf %55, %56 : vector<8x256xf32>
    %c24_42 = arith.constant 24 : index
    %c256_43 = arith.constant 256 : index
    %58 = vector.load %arg9[%c24_42, %c256_43] : memref<72x512xf32, #tpu.memory_space<vmem>>, vector<8x256xf32>
    tpu.vector_store %arg9[%c24_42, %c256_43], %57 {strides = array<i32>} : memref<72x512xf32, #tpu.memory_space<vmem>>, vector<8x256xf32>,
    %c32_44 = arith.constant 32 : index
    %c256_45 = arith.constant 256 : index
    %59 = vector.load %arg9[%c32_44, %c256_45] : memref<72x512xf32, #tpu.memory_space<vmem>>, vector<8x256xf32>
    tpu.vector_store %arg9[%c32_44, %c256_45], %54 {strides = array<i32>} : memref<72x512xf32, #tpu.memory_space<vmem>>, vector<8x256xf32>,
    %c255_i32_46 = arith.constant 255 : i32
    %60 = tpu.dynamic_rotate %54 by %c255_i32_46 dim 1 : vector<8x256xf32>, i32 -> vector<8x256xf32>
    %61 = vector.broadcast %3 : vector<1x256xf32> to vector<8x256xf32>
    %62 = arith.mulf %60, %61 : vector<8x256xf32>
    %c40_47 = arith.constant 40 : index
    %c256_48 = arith.constant 256 : index
    %63 = vector.load %arg9[%c40_47, %c256_48] : memref<72x512xf32, #tpu.memory_space<vmem>>, vector<8x256xf32>
    tpu.vector_store %arg9[%c40_47, %c256_48], %62 {strides = array<i32>} : memref<72x512xf32, #tpu.memory_space<vmem>>, vector<8x256xf32>,
    %c0_49 = arith.constant 0 : index
    %c1_50 = arith.constant 1 : index
    %c0_51 = arith.constant 0 : index
    %c144_52 = arith.constant 144 : index
    %64 = vector.load %arg1[%c0_49, %c1_50, %c0_51, %c144_52] : memref<1x2x8x512xbf16, #tpu.memory_space<vmem>>, vector<1x1x8x256xbf16>
    %65 = vector.shape_cast %64 : vector<1x1x8x256xbf16> to vector<8x256xbf16>
    %66 = arith.extf %65 : vector<8x256xbf16> to vector<8x256xf32>
    %c1_i32_53 = arith.constant 1 : i32
    %67 = tpu.dynamic_rotate %66 by %c1_i32_53 dim 1 : vector<8x256xf32>, i32 -> vector<8x256xf32>
    %68 = vector.broadcast %2 : vector<1x256xf32> to vector<8x256xf32>
    %69 = arith.mulf %67, %68 : vector<8x256xf32>
    %c48_54 = arith.constant 48 : index
    %c256_55 = arith.constant 256 : index
    %70 = vector.load %arg9[%c48_54, %c256_55] : memref<72x512xf32, #tpu.memory_space<vmem>>, vector<8x256xf32>
    tpu.vector_store %arg9[%c48_54, %c256_55], %69 {strides = array<i32>} : memref<72x512xf32, #tpu.memory_space<vmem>>, vector<8x256xf32>,
    %c56_56 = arith.constant 56 : index
    %c256_57 = arith.constant 256 : index
    %71 = vector.load %arg9[%c56_56, %c256_57] : memref<72x512xf32, #tpu.memory_space<vmem>>, vector<8x256xf32>
    tpu.vector_store %arg9[%c56_56, %c256_57], %66 {strides = array<i32>} : memref<72x512xf32, #tpu.memory_space<vmem>>, vector<8x256xf32>,
    %c255_i32_58 = arith.constant 255 : i32
    %72 = tpu.dynamic_rotate %66 by %c255_i32_58 dim 1 : vector<8x256xf32>, i32 -> vector<8x256xf32>
    %73 = vector.broadcast %3 : vector<1x256xf32> to vector<8x256xf32>
    %74 = arith.mulf %72, %73 : vector<8x256xf32>
    %c64_59 = arith.constant 64 : index
    %c256_60 = arith.constant 256 : index
    %75 = vector.load %arg9[%c64_59, %c256_60] : memref<72x512xf32, #tpu.memory_space<vmem>>, vector<8x256xf32>
    tpu.vector_store %arg9[%c64_59, %c256_60], %74 {strides = array<i32>} : memref<72x512xf32, #tpu.memory_space<vmem>>, vector<8x256xf32>,
    %c0_61 = arith.constant 0 : index
    %c0_62 = arith.constant 0 : index
    %76 = vector.load %arg2[%c0_61, %c0_62] : memref<16x72xbf16, #tpu.memory_space<vmem>>, vector<16x72xbf16>
    %c0_63 = arith.constant 0 : index
    %c0_64 = arith.constant 0 : index
    %77 = vector.load %arg9[%c0_63, %c0_64] : memref<72x512xf32, #tpu.memory_space<vmem>>, vector<72x512xf32>
    %78 = arith.truncf %77 : vector<72x512xf32> to vector<72x512xbf16>
    %cst_65 = arith.constant dense<0.000000e+00> : vector<16x512xf32>
    %79 = tpu.matmul %76, %78, %cst_65 {dimension_numbers = #tpu.dot_dimension_numbers<[1], [0], [0], [1], [0, 0, 1, 1], [], []>} : vector<16x72xbf16>, vector<72x512xbf16>, vector<16x512xf32> -> vector<16x512xf32>
    %c0_66 = arith.constant 0 : index
    %c0_67 = arith.constant 0 : index
    %80 = vector.load %arg3[%c0_66, %c0_67] : memref<16x1xf32, #tpu.memory_space<vmem>>, vector<16x1xf32>
    %81 = vector.broadcast %80 : vector<16x1xf32> to vector<16x512xf32>
    %82 = arith.addf %79, %81 : vector<16x512xf32>
    %cst_68 = arith.constant 0.000000e+00 : f32
    %83 = vector.broadcast %cst_68 : f32 to vector<16x512xf32>
    %84 = arith.maximumf %82, %83 : vector<16x512xf32>
    %85 = arith.truncf %84 : vector<16x512xf32> to vector<16x512xbf16>
    %86 = vector.extract_strided_slice %85 {offsets = [0, 0], sizes = [16, 256], strides = [1, 1]} : vector<16x512xbf16> to vector<16x256xbf16>
    %87 = vector.extract_strided_slice %85 {offsets = [0, 256], sizes = [16, 256], strides = [1, 1]} : vector<16x512xbf16> to vector<16x256xbf16>
    %cst_69 = arith.constant 0.000000e+00 : bf16
    %88 = vector.broadcast %cst_69 : bf16 to vector<16x128xbf16>
    %c0_70 = arith.constant 0 : index
    %c0_71 = arith.constant 0 : index
    %c0_72 = arith.constant 0 : index
    %c0_73 = arith.constant 0 : index
    %89 = vector.load %arg5[%c0_70, %c0_71, %c0_72, %c0_73] : memref<1x2x16x512xbf16, #tpu.memory_space<vmem>>, vector<1x1x16x128xbf16>
    %90 = vector.shape_cast %89 : vector<1x1x16x128xbf16> to vector<16x128xbf16>
    %91 = vector.shape_cast %88 : vector<16x128xbf16> to vector<1x1x16x128xbf16>
    tpu.vector_store %arg5[%c0_70, %c0_71, %c0_72, %c0_73], %91 {strides = array<i32>} : memref<1x2x16x512xbf16, #tpu.memory_space<vmem>>, vector<1x1x16x128xbf16>,
    %c0_74 = arith.constant 0 : index
    %c0_75 = arith.constant 0 : index
    %c0_76 = arith.constant 0 : index
    %c128_77 = arith.constant 128 : index
    %92 = vector.load %arg5[%c0_74, %c0_75, %c0_76, %c128_77] : memref<1x2x16x512xbf16, #tpu.memory_space<vmem>>, vector<1x1x16x256xbf16>
    %93 = vector.shape_cast %92 : vector<1x1x16x256xbf16> to vector<16x256xbf16>
    %94 = vector.shape_cast %86 : vector<16x256xbf16> to vector<1x1x16x256xbf16>
    tpu.vector_store %arg5[%c0_74, %c0_75, %c0_76, %c128_77], %94 {strides = array<i32>} : memref<1x2x16x512xbf16, #tpu.memory_space<vmem>>, vector<1x1x16x256xbf16>,
    %c0_78 = arith.constant 0 : index
    %c0_79 = arith.constant 0 : index
    %c0_80 = arith.constant 0 : index
    %c384 = arith.constant 384 : index
    %95 = vector.load %arg5[%c0_78, %c0_79, %c0_80, %c384] : memref<1x2x16x512xbf16, #tpu.memory_space<vmem>>, vector<1x1x16x128xbf16>
    %96 = vector.shape_cast %95 : vector<1x1x16x128xbf16> to vector<16x128xbf16>
    %97 = vector.shape_cast %88 : vector<16x128xbf16> to vector<1x1x16x128xbf16>
    tpu.vector_store %arg5[%c0_78, %c0_79, %c0_80, %c384], %97 {strides = array<i32>} : memref<1x2x16x512xbf16, #tpu.memory_space<vmem>>, vector<1x1x16x128xbf16>,
    %c0_81 = arith.constant 0 : index
    %c1_82 = arith.constant 1 : index
    %c0_83 = arith.constant 0 : index
    %c0_84 = arith.constant 0 : index
    %98 = vector.load %arg5[%c0_81, %c1_82, %c0_83, %c0_84] : memref<1x2x16x512xbf16, #tpu.memory_space<vmem>>, vector<1x1x16x128xbf16>
    %99 = vector.shape_cast %98 : vector<1x1x16x128xbf16> to vector<16x128xbf16>
    %100 = vector.shape_cast %88 : vector<16x128xbf16> to vector<1x1x16x128xbf16>
    tpu.vector_store %arg5[%c0_81, %c1_82, %c0_83, %c0_84], %100 {strides = array<i32>} : memref<1x2x16x512xbf16, #tpu.memory_space<vmem>>, vector<1x1x16x128xbf16>,
    %c0_85 = arith.constant 0 : index
    %c1_86 = arith.constant 1 : index
    %c0_87 = arith.constant 0 : index
    %c128_88 = arith.constant 128 : index
    %101 = vector.load %arg5[%c0_85, %c1_86, %c0_87, %c128_88] : memref<1x2x16x512xbf16, #tpu.memory_space<vmem>>, vector<1x1x16x256xbf16>
    %102 = vector.shape_cast %101 : vector<1x1x16x256xbf16> to vector<16x256xbf16>
    %103 = vector.shape_cast %87 : vector<16x256xbf16> to vector<1x1x16x256xbf16>
    tpu.vector_store %arg5[%c0_85, %c1_86, %c0_87, %c128_88], %103 {strides = array<i32>} : memref<1x2x16x512xbf16, #tpu.memory_space<vmem>>, vector<1x1x16x256xbf16>,
    %c0_89 = arith.constant 0 : index
    %c1_90 = arith.constant 1 : index
    %c0_91 = arith.constant 0 : index
    %c384_92 = arith.constant 384 : index
    %104 = vector.load %arg5[%c0_89, %c1_90, %c0_91, %c384_92] : memref<1x2x16x512xbf16, #tpu.memory_space<vmem>>, vector<1x1x16x128xbf16>
    %105 = vector.shape_cast %104 : vector<1x1x16x128xbf16> to vector<16x128xbf16>
    %106 = vector.shape_cast %88 : vector<16x128xbf16> to vector<1x1x16x128xbf16>
    tpu.vector_store %arg5[%c0_89, %c1_90, %c0_91, %c384_92], %106 {strides = array<i32>} : memref<1x2x16x512xbf16, #tpu.memory_space<vmem>>, vector<1x1x16x128xbf16>,
    %107 = arith.extf %87 : vector<16x256xbf16> to vector<16x256xf32>
    %108 = arith.extf %86 : vector<16x256xbf16> to vector<16x256xf32>
    %109 = arith.subf %107, %108 : vector<16x256xf32>
    %110 = math.absf %109 : vector<16x256xf32>
    %111 = vector.shape_cast %110 : vector<16x256xf32> to vector<1x16x256xf32>
    %cst_93 = arith.constant dense<0.000000e+00> : vector<1xf32>
    %112 = vector.multi_reduction <add>, %111, %cst_93 [1, 2] : vector<1x16x256xf32> to vector<1xf32>
    %113 = vector.shape_cast %112 : vector<1xf32> to vector<1x1x1xf32>
    %114 = vector.extract %113[0, 0, 0] : f32 from vector<1x1x1xf32>
    %c0_94 = arith.constant 0 : index
    %c0_95 = arith.constant 0 : index
    %c0_96 = arith.constant 0 : index
    %115 = memref.load %arg6[%c0_94, %c0_95, %c0_96] : memref<1x1x1xf32, #tpu.memory_space<smem>>
    memref.store %114, %arg6[%c0_94, %c0_95, %c0_96] : memref<1x1x1xf32, #tpu.memory_space<smem>>
    %cst_97 = arith.constant dense<0.000000e+00> : vector<16x16xf32>
    %116 = tpu.matmul %87, %87, %cst_97 {dimension_numbers = #tpu.dot_dimension_numbers<[1], [1], [0], [0], [0, 0, 1, 0], [], []>} : vector<16x256xbf16>, vector<16x256xbf16>, vector<16x16xf32> -> vector<16x16xf32>
    %cst_98 = arith.constant 2.44140625E-4 : f32
    %117 = vector.broadcast %cst_98 : f32 to vector<16x16xf32>
    %118 = arith.mulf %116, %117 : vector<16x16xf32>
    %cst_99 = arith.constant dense<0.000000e+00> : vector<16x16xf32>
    %119 = tpu.matmul %86, %86, %cst_99 {dimension_numbers = #tpu.dot_dimension_numbers<[1], [1], [0], [0], [0, 0, 1, 0], [], []>} : vector<16x256xbf16>, vector<16x256xbf16>, vector<16x16xf32> -> vector<16x16xf32>
    %cst_100 = arith.constant 2.44140625E-4 : f32
    %120 = vector.broadcast %cst_100 : f32 to vector<16x16xf32>
    %121 = arith.mulf %119, %120 : vector<16x16xf32>
    %122 = arith.subf %118, %121 : vector<16x16xf32>
    %123 = math.absf %122 : vector<16x16xf32>
    %124 = vector.shape_cast %123 : vector<16x16xf32> to vector<1x16x16xf32>
    %cst_101 = arith.constant dense<0.000000e+00> : vector<1xf32>
    %125 = vector.multi_reduction <add>, %124, %cst_101 [1, 2] : vector<1x16x16xf32> to vector<1xf32>
    %126 = vector.shape_cast %125 : vector<1xf32> to vector<1x1x1xf32>
    %127 = vector.extract %126[0, 0, 0] : f32 from vector<1x1x1xf32>
    %c0_102 = arith.constant 0 : index
    %c0_103 = arith.constant 0 : index
    %c0_104 = arith.constant 0 : index
    %128 = memref.load %arg7[%c0_102, %c0_103, %c0_104] : memref<1x1x1xf32, #tpu.memory_space<smem>>
    memref.store %127, %arg7[%c0_102, %c0_103, %c0_104] : memref<1x1x1xf32, #tpu.memory_space<smem>>
    return
  }
  func.func @transform_0(%arg0: i32) -> (i32, i32, i32, i32) {
    %c0_i32 = arith.constant 0 : i32
    %c0_i32_0 = arith.constant 0 : i32
    %c0_i32_1 = arith.constant 0 : i32
    %c0_i32_2 = arith.constant 0 : i32
    return %arg0, %c0_i32, %c0_i32_0, %c0_i32_1 : i32, i32, i32, i32
  }
  func.func @transform_1(%arg0: i32) -> (i32, i32) {
    %c0_i32 = arith.constant 0 : i32
    %c0_i32_0 = arith.constant 0 : i32
    %c0_i32_1 = arith.constant 0 : i32
    return %c0_i32, %c0_i32_0 : i32, i32
  }
  func.func @transform_2(%arg0: i32) -> (i32, i32) {
    %c0_i32 = arith.constant 0 : i32
    %c0_i32_0 = arith.constant 0 : i32
    %c0_i32_1 = arith.constant 0 : i32
    return %c0_i32, %c0_i32_0 : i32, i32
  }
  func.func @transform_3(%arg0: i32) -> (i32, i32) {
    %c0_i32 = arith.constant 0 : i32
    %c0_i32_0 = arith.constant 0 : i32
    %c0_i32_1 = arith.constant 0 : i32
    return %c0_i32, %c0_i32_0 : i32, i32
  }
  func.func @transform_4(%arg0: i32) -> (i32, i32, i32, i32) {
    %c0_i32 = arith.constant 0 : i32
    %c0_i32_0 = arith.constant 0 : i32
    %c0_i32_1 = arith.constant 0 : i32
    %c0_i32_2 = arith.constant 0 : i32
    return %arg0, %c0_i32, %c0_i32_0, %c0_i32_1 : i32, i32, i32, i32
  }
  func.func @transform_5(%arg0: i32) -> (i32, i32, i32) {
    %c0_i32 = arith.constant 0 : i32
    %c0_i32_0 = arith.constant 0 : i32
    %c0_i32_1 = arith.constant 0 : i32
    return %arg0, %c0_i32, %c0_i32_0 : i32, i32, i32
  }
  func.func @transform_6(%arg0: i32) -> (i32, i32, i32) {
    %c0_i32 = arith.constant 0 : i32
    %c0_i32_0 = arith.constant 0 : i32
    %c0_i32_1 = arith.constant 0 : i32
    return %arg0, %c0_i32, %c0_i32_0 : i32, i32, i32
  }
  func.func @transform_7(%arg0: i32) -> (i32, i32, i32) {
    %c0_i32 = arith.constant 0 : i32
    %c0_i32_0 = arith.constant 0 : i32
    %c0_i32_1 = arith.constant 0 : i32
    return %arg0, %c0_i32, %c0_i32_0 : i32, i32, i32
  }
}

module attributes {stable_mosaic.version = 11 : i64} {
  func.func @_conv_feat_gram_kernel(%arg0: i32, %arg1: memref<1x2x4x512xf32, #tpu.memory_space<vmem>>, %arg2: memref<8x36xbf16, #tpu.memory_space<vmem>>, %arg3: memref<8x1xf32, #tpu.memory_space<vmem>>, %arg4: memref<2x256xf32, #tpu.memory_space<vmem>>, %arg5: memref<1x2x8x512xbf16, #tpu.memory_space<vmem>>, %arg6: memref<1x1x1xf32, #tpu.memory_space<smem>>, %arg7: memref<1x1x1xf32, #tpu.memory_space<smem>>, %arg8: memref<1x1x1xf32, #tpu.memory_space<smem>>, %arg9: memref<36x512xf32, #tpu.memory_space<vmem>>) attributes {dimension_semantics = [#tpu.dimension_semantics<parallel>], iteration_bounds = array<i64: 2>, scalar_prefetch = 0 : i64, scratch_operands = 1 : i64, tpu.core_type = #tpu.core_type<tc>, window_params = [{transform_indices = @transform_0, window_bounds = array<i64: 1, 2, 4, 512>}, {pipeline_mode = #tpu.pipeline_mode<synchronous>, transform_indices = @transform_1, window_bounds = array<i64: 8, 36>}, {pipeline_mode = #tpu.pipeline_mode<synchronous>, transform_indices = @transform_2, window_bounds = array<i64: 8, 1>}, {pipeline_mode = #tpu.pipeline_mode<synchronous>, transform_indices = @transform_3, window_bounds = array<i64: 2, 256>}, {transform_indices = @transform_4, window_bounds = array<i64: 1, 2, 8, 512>}, {transform_indices = @transform_5, window_bounds = array<i64: 1, 1, 1>}, {transform_indices = @transform_6, window_bounds = array<i64: 1, 1, 1>}, {transform_indices = @transform_7, window_bounds = array<i64: 1, 1, 1>}]} {
    %c0 = arith.constant 0 : index
    %c1 = arith.constant 1 : index
    %c0_0 = arith.constant 0 : index
    %c0_1 = arith.constant 0 : index
    %0 = vector.load %arg1[%c0, %c1, %c0_0, %c0_1] : memref<1x2x4x512xf32, #tpu.memory_space<vmem>>, vector<1x1x4x512xf32>
    %1 = vector.shape_cast %0 : vector<1x1x4x512xf32> to vector<4x512xf32>
    %c0_2 = arith.constant 0 : index
    %c0_3 = arith.constant 0 : index
    %c0_4 = arith.constant 0 : index
    %c0_5 = arith.constant 0 : index
    %2 = vector.load %arg1[%c0_2, %c0_3, %c0_4, %c0_5] : memref<1x2x4x512xf32, #tpu.memory_space<vmem>>, vector<1x1x4x512xf32>
    %3 = vector.shape_cast %2 : vector<1x1x4x512xf32> to vector<4x512xf32>
    %4 = arith.subf %1, %3 : vector<4x512xf32>
    %5 = math.absf %4 : vector<4x512xf32>
    %6 = vector.shape_cast %5 : vector<4x512xf32> to vector<1x4x512xf32>
    %cst = arith.constant dense<0.000000e+00> : vector<1xf32>
    %7 = vector.multi_reduction <add>, %6, %cst [1, 2] : vector<1x4x512xf32> to vector<1xf32>
    %8 = vector.shape_cast %7 : vector<1xf32> to vector<1x1x1xf32>
    %9 = vector.extract %8[0, 0, 0] : f32 from vector<1x1x1xf32>
    %c0_6 = arith.constant 0 : index
    %c0_7 = arith.constant 0 : index
    %c0_8 = arith.constant 0 : index
    %10 = memref.load %arg8[%c0_6, %c0_7, %c0_8] : memref<1x1x1xf32, #tpu.memory_space<smem>>
    memref.store %9, %arg8[%c0_6, %c0_7, %c0_8] : memref<1x1x1xf32, #tpu.memory_space<smem>>
    %c0_9 = arith.constant 0 : index
    %c0_10 = arith.constant 0 : index
    %11 = vector.load %arg4[%c0_9, %c0_10] : memref<2x256xf32, #tpu.memory_space<vmem>>, vector<2x256xf32>
    %12 = vector.extract_strided_slice %11 {offsets = [0, 0], sizes = [1, 256], strides = [1, 1]} : vector<2x256xf32> to vector<1x256xf32>
    %13 = vector.extract_strided_slice %11 {offsets = [1, 0], sizes = [1, 256], strides = [1, 1]} : vector<2x256xf32> to vector<1x256xf32>
    %c0_11 = arith.constant 0 : index
    %c0_12 = arith.constant 0 : index
    %c0_13 = arith.constant 0 : index
    %c112 = arith.constant 112 : index
    %14 = vector.load %arg1[%c0_11, %c0_12, %c0_13, %c112] : memref<1x2x4x512xf32, #tpu.memory_space<vmem>>, vector<1x1x4x256xf32>
    %15 = vector.shape_cast %14 : vector<1x1x4x256xf32> to vector<4x256xf32>
    %c1_i32 = arith.constant 1 : i32
    %16 = tpu.dynamic_rotate %15 by %c1_i32 dim 1 : vector<4x256xf32>, i32 -> vector<4x256xf32>
    %17 = vector.broadcast %12 : vector<1x256xf32> to vector<4x256xf32>
    %18 = arith.mulf %16, %17 : vector<4x256xf32>
    %c0_14 = arith.constant 0 : index
    %c0_15 = arith.constant 0 : index
    %19 = vector.load %arg9[%c0_14, %c0_15] : memref<36x512xf32, #tpu.memory_space<vmem>>, vector<4x256xf32>
    tpu.vector_store %arg9[%c0_14, %c0_15], %18 {strides = array<i32>} : memref<36x512xf32, #tpu.memory_space<vmem>>, vector<4x256xf32>,
    %c4 = arith.constant 4 : index
    %c0_16 = arith.constant 0 : index
    %20 = vector.load %arg9[%c4, %c0_16] : memref<36x512xf32, #tpu.memory_space<vmem>>, vector<4x256xf32>
    tpu.vector_store %arg9[%c4, %c0_16], %15 {strides = array<i32>} : memref<36x512xf32, #tpu.memory_space<vmem>>, vector<4x256xf32>,
    %c255_i32 = arith.constant 255 : i32
    %21 = tpu.dynamic_rotate %15 by %c255_i32 dim 1 : vector<4x256xf32>, i32 -> vector<4x256xf32>
    %22 = vector.broadcast %13 : vector<1x256xf32> to vector<4x256xf32>
    %23 = arith.mulf %21, %22 : vector<4x256xf32>
    %c8 = arith.constant 8 : index
    %c0_17 = arith.constant 0 : index
    %24 = vector.load %arg9[%c8, %c0_17] : memref<36x512xf32, #tpu.memory_space<vmem>>, vector<4x256xf32>
    tpu.vector_store %arg9[%c8, %c0_17], %23 {strides = array<i32>} : memref<36x512xf32, #tpu.memory_space<vmem>>, vector<4x256xf32>,
    %c0_18 = arith.constant 0 : index
    %c0_19 = arith.constant 0 : index
    %c0_20 = arith.constant 0 : index
    %c128 = arith.constant 128 : index
    %25 = vector.load %arg1[%c0_18, %c0_19, %c0_20, %c128] : memref<1x2x4x512xf32, #tpu.memory_space<vmem>>, vector<1x1x4x256xf32>
    %26 = vector.shape_cast %25 : vector<1x1x4x256xf32> to vector<4x256xf32>
    %c1_i32_21 = arith.constant 1 : i32
    %27 = tpu.dynamic_rotate %26 by %c1_i32_21 dim 1 : vector<4x256xf32>, i32 -> vector<4x256xf32>
    %28 = vector.broadcast %12 : vector<1x256xf32> to vector<4x256xf32>
    %29 = arith.mulf %27, %28 : vector<4x256xf32>
    %c12 = arith.constant 12 : index
    %c0_22 = arith.constant 0 : index
    %30 = vector.load %arg9[%c12, %c0_22] : memref<36x512xf32, #tpu.memory_space<vmem>>, vector<4x256xf32>
    tpu.vector_store %arg9[%c12, %c0_22], %29 {strides = array<i32>} : memref<36x512xf32, #tpu.memory_space<vmem>>, vector<4x256xf32>,
    %c16 = arith.constant 16 : index
    %c0_23 = arith.constant 0 : index
    %31 = vector.load %arg9[%c16, %c0_23] : memref<36x512xf32, #tpu.memory_space<vmem>>, vector<4x256xf32>
    tpu.vector_store %arg9[%c16, %c0_23], %26 {strides = array<i32>} : memref<36x512xf32, #tpu.memory_space<vmem>>, vector<4x256xf32>,
    %c255_i32_24 = arith.constant 255 : i32
    %32 = tpu.dynamic_rotate %26 by %c255_i32_24 dim 1 : vector<4x256xf32>, i32 -> vector<4x256xf32>
    %33 = vector.broadcast %13 : vector<1x256xf32> to vector<4x256xf32>
    %34 = arith.mulf %32, %33 : vector<4x256xf32>
    %c20 = arith.constant 20 : index
    %c0_25 = arith.constant 0 : index
    %35 = vector.load %arg9[%c20, %c0_25] : memref<36x512xf32, #tpu.memory_space<vmem>>, vector<4x256xf32>
    tpu.vector_store %arg9[%c20, %c0_25], %34 {strides = array<i32>} : memref<36x512xf32, #tpu.memory_space<vmem>>, vector<4x256xf32>,
    %c0_26 = arith.constant 0 : index
    %c0_27 = arith.constant 0 : index
    %c0_28 = arith.constant 0 : index
    %c144 = arith.constant 144 : index
    %36 = vector.load %arg1[%c0_26, %c0_27, %c0_28, %c144] : memref<1x2x4x512xf32, #tpu.memory_space<vmem>>, vector<1x1x4x256xf32>
    %37 = vector.shape_cast %36 : vector<1x1x4x256xf32> to vector<4x256xf32>
    %c1_i32_29 = arith.constant 1 : i32
    %38 = tpu.dynamic_rotate %37 by %c1_i32_29 dim 1 : vector<4x256xf32>, i32 -> vector<4x256xf32>
    %39 = vector.broadcast %12 : vector<1x256xf32> to vector<4x256xf32>
    %40 = arith.mulf %38, %39 : vector<4x256xf32>
    %c24 = arith.constant 24 : index
    %c0_30 = arith.constant 0 : index
    %41 = vector.load %arg9[%c24, %c0_30] : memref<36x512xf32, #tpu.memory_space<vmem>>, vector<4x256xf32>
    tpu.vector_store %arg9[%c24, %c0_30], %40 {strides = array<i32>} : memref<36x512xf32, #tpu.memory_space<vmem>>, vector<4x256xf32>,
    %c28 = arith.constant 28 : index
    %c0_31 = arith.constant 0 : index
    %42 = vector.load %arg9[%c28, %c0_31] : memref<36x512xf32, #tpu.memory_space<vmem>>, vector<4x256xf32>
    tpu.vector_store %arg9[%c28, %c0_31], %37 {strides = array<i32>} : memref<36x512xf32, #tpu.memory_space<vmem>>, vector<4x256xf32>,
    %c255_i32_32 = arith.constant 255 : i32
    %43 = tpu.dynamic_rotate %37 by %c255_i32_32 dim 1 : vector<4x256xf32>, i32 -> vector<4x256xf32>
    %44 = vector.broadcast %13 : vector<1x256xf32> to vector<4x256xf32>
    %45 = arith.mulf %43, %44 : vector<4x256xf32>
    %c32 = arith.constant 32 : index
    %c0_33 = arith.constant 0 : index
    %46 = vector.load %arg9[%c32, %c0_33] : memref<36x512xf32, #tpu.memory_space<vmem>>, vector<4x256xf32>
    tpu.vector_store %arg9[%c32, %c0_33], %45 {strides = array<i32>} : memref<36x512xf32, #tpu.memory_space<vmem>>, vector<4x256xf32>,
    %c0_34 = arith.constant 0 : index
    %c1_35 = arith.constant 1 : index
    %c0_36 = arith.constant 0 : index
    %c112_37 = arith.constant 112 : index
    %47 = vector.load %arg1[%c0_34, %c1_35, %c0_36, %c112_37] : memref<1x2x4x512xf32, #tpu.memory_space<vmem>>, vector<1x1x4x256xf32>
    %48 = vector.shape_cast %47 : vector<1x1x4x256xf32> to vector<4x256xf32>
    %c1_i32_38 = arith.constant 1 : i32
    %49 = tpu.dynamic_rotate %48 by %c1_i32_38 dim 1 : vector<4x256xf32>, i32 -> vector<4x256xf32>
    %50 = vector.broadcast %12 : vector<1x256xf32> to vector<4x256xf32>
    %51 = arith.mulf %49, %50 : vector<4x256xf32>
    %c0_39 = arith.constant 0 : index
    %c256 = arith.constant 256 : index
    %52 = vector.load %arg9[%c0_39, %c256] : memref<36x512xf32, #tpu.memory_space<vmem>>, vector<4x256xf32>
    tpu.vector_store %arg9[%c0_39, %c256], %51 {strides = array<i32>} : memref<36x512xf32, #tpu.memory_space<vmem>>, vector<4x256xf32>,
    %c4_40 = arith.constant 4 : index
    %c256_41 = arith.constant 256 : index
    %53 = vector.load %arg9[%c4_40, %c256_41] : memref<36x512xf32, #tpu.memory_space<vmem>>, vector<4x256xf32>
    tpu.vector_store %arg9[%c4_40, %c256_41], %48 {strides = array<i32>} : memref<36x512xf32, #tpu.memory_space<vmem>>, vector<4x256xf32>,
    %c255_i32_42 = arith.constant 255 : i32
    %54 = tpu.dynamic_rotate %48 by %c255_i32_42 dim 1 : vector<4x256xf32>, i32 -> vector<4x256xf32>
    %55 = vector.broadcast %13 : vector<1x256xf32> to vector<4x256xf32>
    %56 = arith.mulf %54, %55 : vector<4x256xf32>
    %c8_43 = arith.constant 8 : index
    %c256_44 = arith.constant 256 : index
    %57 = vector.load %arg9[%c8_43, %c256_44] : memref<36x512xf32, #tpu.memory_space<vmem>>, vector<4x256xf32>
    tpu.vector_store %arg9[%c8_43, %c256_44], %56 {strides = array<i32>} : memref<36x512xf32, #tpu.memory_space<vmem>>, vector<4x256xf32>,
    %c0_45 = arith.constant 0 : index
    %c1_46 = arith.constant 1 : index
    %c0_47 = arith.constant 0 : index
    %c128_48 = arith.constant 128 : index
    %58 = vector.load %arg1[%c0_45, %c1_46, %c0_47, %c128_48] : memref<1x2x4x512xf32, #tpu.memory_space<vmem>>, vector<1x1x4x256xf32>
    %59 = vector.shape_cast %58 : vector<1x1x4x256xf32> to vector<4x256xf32>
    %c1_i32_49 = arith.constant 1 : i32
    %60 = tpu.dynamic_rotate %59 by %c1_i32_49 dim 1 : vector<4x256xf32>, i32 -> vector<4x256xf32>
    %61 = vector.broadcast %12 : vector<1x256xf32> to vector<4x256xf32>
    %62 = arith.mulf %60, %61 : vector<4x256xf32>
    %c12_50 = arith.constant 12 : index
    %c256_51 = arith.constant 256 : index
    %63 = vector.load %arg9[%c12_50, %c256_51] : memref<36x512xf32, #tpu.memory_space<vmem>>, vector<4x256xf32>
    tpu.vector_store %arg9[%c12_50, %c256_51], %62 {strides = array<i32>} : memref<36x512xf32, #tpu.memory_space<vmem>>, vector<4x256xf32>,
    %c16_52 = arith.constant 16 : index
    %c256_53 = arith.constant 256 : index
    %64 = vector.load %arg9[%c16_52, %c256_53] : memref<36x512xf32, #tpu.memory_space<vmem>>, vector<4x256xf32>
    tpu.vector_store %arg9[%c16_52, %c256_53], %59 {strides = array<i32>} : memref<36x512xf32, #tpu.memory_space<vmem>>, vector<4x256xf32>,
    %c255_i32_54 = arith.constant 255 : i32
    %65 = tpu.dynamic_rotate %59 by %c255_i32_54 dim 1 : vector<4x256xf32>, i32 -> vector<4x256xf32>
    %66 = vector.broadcast %13 : vector<1x256xf32> to vector<4x256xf32>
    %67 = arith.mulf %65, %66 : vector<4x256xf32>
    %c20_55 = arith.constant 20 : index
    %c256_56 = arith.constant 256 : index
    %68 = vector.load %arg9[%c20_55, %c256_56] : memref<36x512xf32, #tpu.memory_space<vmem>>, vector<4x256xf32>
    tpu.vector_store %arg9[%c20_55, %c256_56], %67 {strides = array<i32>} : memref<36x512xf32, #tpu.memory_space<vmem>>, vector<4x256xf32>,
    %c0_57 = arith.constant 0 : index
    %c1_58 = arith.constant 1 : index
    %c0_59 = arith.constant 0 : index
    %c144_60 = arith.constant 144 : index
    %69 = vector.load %arg1[%c0_57, %c1_58, %c0_59, %c144_60] : memref<1x2x4x512xf32, #tpu.memory_space<vmem>>, vector<1x1x4x256xf32>
    %70 = vector.shape_cast %69 : vector<1x1x4x256xf32> to vector<4x256xf32>
    %c1_i32_61 = arith.constant 1 : i32
    %71 = tpu.dynamic_rotate %70 by %c1_i32_61 dim 1 : vector<4x256xf32>, i32 -> vector<4x256xf32>
    %72 = vector.broadcast %12 : vector<1x256xf32> to vector<4x256xf32>
    %73 = arith.mulf %71, %72 : vector<4x256xf32>
    %c24_62 = arith.constant 24 : index
    %c256_63 = arith.constant 256 : index
    %74 = vector.load %arg9[%c24_62, %c256_63] : memref<36x512xf32, #tpu.memory_space<vmem>>, vector<4x256xf32>
    tpu.vector_store %arg9[%c24_62, %c256_63], %73 {strides = array<i32>} : memref<36x512xf32, #tpu.memory_space<vmem>>, vector<4x256xf32>,
    %c28_64 = arith.constant 28 : index
    %c256_65 = arith.constant 256 : index
    %75 = vector.load %arg9[%c28_64, %c256_65] : memref<36x512xf32, #tpu.memory_space<vmem>>, vector<4x256xf32>
    tpu.vector_store %arg9[%c28_64, %c256_65], %70 {strides = array<i32>} : memref<36x512xf32, #tpu.memory_space<vmem>>, vector<4x256xf32>,
    %c255_i32_66 = arith.constant 255 : i32
    %76 = tpu.dynamic_rotate %70 by %c255_i32_66 dim 1 : vector<4x256xf32>, i32 -> vector<4x256xf32>
    %77 = vector.broadcast %13 : vector<1x256xf32> to vector<4x256xf32>
    %78 = arith.mulf %76, %77 : vector<4x256xf32>
    %c32_67 = arith.constant 32 : index
    %c256_68 = arith.constant 256 : index
    %79 = vector.load %arg9[%c32_67, %c256_68] : memref<36x512xf32, #tpu.memory_space<vmem>>, vector<4x256xf32>
    tpu.vector_store %arg9[%c32_67, %c256_68], %78 {strides = array<i32>} : memref<36x512xf32, #tpu.memory_space<vmem>>, vector<4x256xf32>,
    %c0_69 = arith.constant 0 : index
    %c0_70 = arith.constant 0 : index
    %80 = vector.load %arg2[%c0_69, %c0_70] : memref<8x36xbf16, #tpu.memory_space<vmem>>, vector<8x36xbf16>
    %c0_71 = arith.constant 0 : index
    %c0_72 = arith.constant 0 : index
    %81 = vector.load %arg9[%c0_71, %c0_72] : memref<36x512xf32, #tpu.memory_space<vmem>>, vector<36x512xf32>
    %82 = arith.truncf %81 : vector<36x512xf32> to vector<36x512xbf16>
    %cst_73 = arith.constant dense<0.000000e+00> : vector<8x512xf32>
    %83 = tpu.matmul %80, %82, %cst_73 {dimension_numbers = #tpu.dot_dimension_numbers<[1], [0], [0], [1], [0, 0, 1, 1], [], []>} : vector<8x36xbf16>, vector<36x512xbf16>, vector<8x512xf32> -> vector<8x512xf32>
    %c0_74 = arith.constant 0 : index
    %c0_75 = arith.constant 0 : index
    %84 = vector.load %arg3[%c0_74, %c0_75] : memref<8x1xf32, #tpu.memory_space<vmem>>, vector<8x1xf32>
    %85 = vector.broadcast %84 : vector<8x1xf32> to vector<8x512xf32>
    %86 = arith.addf %83, %85 : vector<8x512xf32>
    %cst_76 = arith.constant 0.000000e+00 : f32
    %87 = vector.broadcast %cst_76 : f32 to vector<8x512xf32>
    %88 = arith.maximumf %86, %87 : vector<8x512xf32>
    %89 = arith.truncf %88 : vector<8x512xf32> to vector<8x512xbf16>
    %90 = vector.extract_strided_slice %89 {offsets = [0, 0], sizes = [8, 256], strides = [1, 1]} : vector<8x512xbf16> to vector<8x256xbf16>
    %91 = vector.extract_strided_slice %89 {offsets = [0, 256], sizes = [8, 256], strides = [1, 1]} : vector<8x512xbf16> to vector<8x256xbf16>
    %cst_77 = arith.constant 0.000000e+00 : bf16
    %92 = vector.broadcast %cst_77 : bf16 to vector<8x128xbf16>
    %c0_78 = arith.constant 0 : index
    %c0_79 = arith.constant 0 : index
    %c0_80 = arith.constant 0 : index
    %c0_81 = arith.constant 0 : index
    %93 = vector.load %arg5[%c0_78, %c0_79, %c0_80, %c0_81] : memref<1x2x8x512xbf16, #tpu.memory_space<vmem>>, vector<1x1x8x128xbf16>
    %94 = vector.shape_cast %93 : vector<1x1x8x128xbf16> to vector<8x128xbf16>
    %95 = vector.shape_cast %92 : vector<8x128xbf16> to vector<1x1x8x128xbf16>
    tpu.vector_store %arg5[%c0_78, %c0_79, %c0_80, %c0_81], %95 {strides = array<i32>} : memref<1x2x8x512xbf16, #tpu.memory_space<vmem>>, vector<1x1x8x128xbf16>,
    %c0_82 = arith.constant 0 : index
    %c0_83 = arith.constant 0 : index
    %c0_84 = arith.constant 0 : index
    %c128_85 = arith.constant 128 : index
    %96 = vector.load %arg5[%c0_82, %c0_83, %c0_84, %c128_85] : memref<1x2x8x512xbf16, #tpu.memory_space<vmem>>, vector<1x1x8x256xbf16>
    %97 = vector.shape_cast %96 : vector<1x1x8x256xbf16> to vector<8x256xbf16>
    %98 = vector.shape_cast %90 : vector<8x256xbf16> to vector<1x1x8x256xbf16>
    tpu.vector_store %arg5[%c0_82, %c0_83, %c0_84, %c128_85], %98 {strides = array<i32>} : memref<1x2x8x512xbf16, #tpu.memory_space<vmem>>, vector<1x1x8x256xbf16>,
    %c0_86 = arith.constant 0 : index
    %c0_87 = arith.constant 0 : index
    %c0_88 = arith.constant 0 : index
    %c384 = arith.constant 384 : index
    %99 = vector.load %arg5[%c0_86, %c0_87, %c0_88, %c384] : memref<1x2x8x512xbf16, #tpu.memory_space<vmem>>, vector<1x1x8x128xbf16>
    %100 = vector.shape_cast %99 : vector<1x1x8x128xbf16> to vector<8x128xbf16>
    %101 = vector.shape_cast %92 : vector<8x128xbf16> to vector<1x1x8x128xbf16>
    tpu.vector_store %arg5[%c0_86, %c0_87, %c0_88, %c384], %101 {strides = array<i32>} : memref<1x2x8x512xbf16, #tpu.memory_space<vmem>>, vector<1x1x8x128xbf16>,
    %c0_89 = arith.constant 0 : index
    %c1_90 = arith.constant 1 : index
    %c0_91 = arith.constant 0 : index
    %c0_92 = arith.constant 0 : index
    %102 = vector.load %arg5[%c0_89, %c1_90, %c0_91, %c0_92] : memref<1x2x8x512xbf16, #tpu.memory_space<vmem>>, vector<1x1x8x128xbf16>
    %103 = vector.shape_cast %102 : vector<1x1x8x128xbf16> to vector<8x128xbf16>
    %104 = vector.shape_cast %92 : vector<8x128xbf16> to vector<1x1x8x128xbf16>
    tpu.vector_store %arg5[%c0_89, %c1_90, %c0_91, %c0_92], %104 {strides = array<i32>} : memref<1x2x8x512xbf16, #tpu.memory_space<vmem>>, vector<1x1x8x128xbf16>,
    %c0_93 = arith.constant 0 : index
    %c1_94 = arith.constant 1 : index
    %c0_95 = arith.constant 0 : index
    %c128_96 = arith.constant 128 : index
    %105 = vector.load %arg5[%c0_93, %c1_94, %c0_95, %c128_96] : memref<1x2x8x512xbf16, #tpu.memory_space<vmem>>, vector<1x1x8x256xbf16>
    %106 = vector.shape_cast %105 : vector<1x1x8x256xbf16> to vector<8x256xbf16>
    %107 = vector.shape_cast %91 : vector<8x256xbf16> to vector<1x1x8x256xbf16>
    tpu.vector_store %arg5[%c0_93, %c1_94, %c0_95, %c128_96], %107 {strides = array<i32>} : memref<1x2x8x512xbf16, #tpu.memory_space<vmem>>, vector<1x1x8x256xbf16>,
    %c0_97 = arith.constant 0 : index
    %c1_98 = arith.constant 1 : index
    %c0_99 = arith.constant 0 : index
    %c384_100 = arith.constant 384 : index
    %108 = vector.load %arg5[%c0_97, %c1_98, %c0_99, %c384_100] : memref<1x2x8x512xbf16, #tpu.memory_space<vmem>>, vector<1x1x8x128xbf16>
    %109 = vector.shape_cast %108 : vector<1x1x8x128xbf16> to vector<8x128xbf16>
    %110 = vector.shape_cast %92 : vector<8x128xbf16> to vector<1x1x8x128xbf16>
    tpu.vector_store %arg5[%c0_97, %c1_98, %c0_99, %c384_100], %110 {strides = array<i32>} : memref<1x2x8x512xbf16, #tpu.memory_space<vmem>>, vector<1x1x8x128xbf16>,
    %111 = arith.extf %91 : vector<8x256xbf16> to vector<8x256xf32>
    %112 = arith.extf %90 : vector<8x256xbf16> to vector<8x256xf32>
    %113 = arith.subf %111, %112 : vector<8x256xf32>
    %114 = math.absf %113 : vector<8x256xf32>
    %115 = vector.shape_cast %114 : vector<8x256xf32> to vector<1x8x256xf32>
    %cst_101 = arith.constant dense<0.000000e+00> : vector<1xf32>
    %116 = vector.multi_reduction <add>, %115, %cst_101 [1, 2] : vector<1x8x256xf32> to vector<1xf32>
    %117 = vector.shape_cast %116 : vector<1xf32> to vector<1x1x1xf32>
    %118 = vector.extract %117[0, 0, 0] : f32 from vector<1x1x1xf32>
    %c0_102 = arith.constant 0 : index
    %c0_103 = arith.constant 0 : index
    %c0_104 = arith.constant 0 : index
    %119 = memref.load %arg6[%c0_102, %c0_103, %c0_104] : memref<1x1x1xf32, #tpu.memory_space<smem>>
    memref.store %118, %arg6[%c0_102, %c0_103, %c0_104] : memref<1x1x1xf32, #tpu.memory_space<smem>>
    %cst_105 = arith.constant dense<0.000000e+00> : vector<8x8xf32>
    %120 = tpu.matmul %91, %91, %cst_105 {dimension_numbers = #tpu.dot_dimension_numbers<[1], [1], [0], [0], [0, 0, 1, 0], [], []>} : vector<8x256xbf16>, vector<8x256xbf16>, vector<8x8xf32> -> vector<8x8xf32>
    %cst_106 = arith.constant 4.8828125E-4 : f32
    %121 = vector.broadcast %cst_106 : f32 to vector<8x8xf32>
    %122 = arith.mulf %120, %121 : vector<8x8xf32>
    %cst_107 = arith.constant dense<0.000000e+00> : vector<8x8xf32>
    %123 = tpu.matmul %90, %90, %cst_107 {dimension_numbers = #tpu.dot_dimension_numbers<[1], [1], [0], [0], [0, 0, 1, 0], [], []>} : vector<8x256xbf16>, vector<8x256xbf16>, vector<8x8xf32> -> vector<8x8xf32>
    %cst_108 = arith.constant 4.8828125E-4 : f32
    %124 = vector.broadcast %cst_108 : f32 to vector<8x8xf32>
    %125 = arith.mulf %123, %124 : vector<8x8xf32>
    %126 = arith.subf %122, %125 : vector<8x8xf32>
    %127 = math.absf %126 : vector<8x8xf32>
    %128 = vector.shape_cast %127 : vector<8x8xf32> to vector<1x8x8xf32>
    %cst_109 = arith.constant dense<0.000000e+00> : vector<1xf32>
    %129 = vector.multi_reduction <add>, %128, %cst_109 [1, 2] : vector<1x8x8xf32> to vector<1xf32>
    %130 = vector.shape_cast %129 : vector<1xf32> to vector<1x1x1xf32>
    %131 = vector.extract %130[0, 0, 0] : f32 from vector<1x1x1xf32>
    %c0_110 = arith.constant 0 : index
    %c0_111 = arith.constant 0 : index
    %c0_112 = arith.constant 0 : index
    %132 = memref.load %arg7[%c0_110, %c0_111, %c0_112] : memref<1x1x1xf32, #tpu.memory_space<smem>>
    memref.store %131, %arg7[%c0_110, %c0_111, %c0_112] : memref<1x1x1xf32, #tpu.memory_space<smem>>
    return
  }
  func.func @transform_0(%arg0: i32) -> (i32, i32, i32, i32) {
    %c0_i32 = arith.constant 0 : i32
    %c0_i32_0 = arith.constant 0 : i32
    %c0_i32_1 = arith.constant 0 : i32
    %c0_i32_2 = arith.constant 0 : i32
    return %arg0, %c0_i32, %c0_i32_0, %c0_i32_1 : i32, i32, i32, i32
  }
  func.func @transform_1(%arg0: i32) -> (i32, i32) {
    %c0_i32 = arith.constant 0 : i32
    %c0_i32_0 = arith.constant 0 : i32
    %c0_i32_1 = arith.constant 0 : i32
    return %c0_i32, %c0_i32_0 : i32, i32
  }
  func.func @transform_2(%arg0: i32) -> (i32, i32) {
    %c0_i32 = arith.constant 0 : i32
    %c0_i32_0 = arith.constant 0 : i32
    %c0_i32_1 = arith.constant 0 : i32
    return %c0_i32, %c0_i32_0 : i32, i32
  }
  func.func @transform_3(%arg0: i32) -> (i32, i32) {
    %c0_i32 = arith.constant 0 : i32
    %c0_i32_0 = arith.constant 0 : i32
    %c0_i32_1 = arith.constant 0 : i32
    return %c0_i32, %c0_i32_0 : i32, i32
  }
  func.func @transform_4(%arg0: i32) -> (i32, i32, i32, i32) {
    %c0_i32 = arith.constant 0 : i32
    %c0_i32_0 = arith.constant 0 : i32
    %c0_i32_1 = arith.constant 0 : i32
    %c0_i32_2 = arith.constant 0 : i32
    return %arg0, %c0_i32, %c0_i32_0, %c0_i32_1 : i32, i32, i32, i32
  }
  func.func @transform_5(%arg0: i32) -> (i32, i32, i32) {
    %c0_i32 = arith.constant 0 : i32
    %c0_i32_0 = arith.constant 0 : i32
    %c0_i32_1 = arith.constant 0 : i32
    return %arg0, %c0_i32, %c0_i32_0 : i32, i32, i32
  }
  func.func @transform_6(%arg0: i32) -> (i32, i32, i32) {
    %c0_i32 = arith.constant 0 : i32
    %c0_i32_0 = arith.constant 0 : i32
    %c0_i32_1 = arith.constant 0 : i32
    return %arg0, %c0_i32, %c0_i32_0 : i32, i32, i32
  }
  func.func @transform_7(%arg0: i32) -> (i32, i32, i32) {
    %c0_i32 = arith.constant 0 : i32
    %c0_i32_0 = arith.constant 0 : i32
    %c0_i32_1 = arith.constant 0 : i32
    return %arg0, %c0_i32, %c0_i32_0 : i32, i32, i32
  }
}

</mosaic_0001>

<bundles_post_ra>
// kernel: forward.4
= control target key start
LH: loop header
LB: loop body
LE: loop exit
PB: predicated region body
PF: predicated region fallthrough
CT: control target
= control target key end

     0   :  { %s1763_s0 = inlined_call_operand.vmem [shape: bf16[2,2,8,512], index: 0, kind: input, shape index: {}]   ;;  %s1764_s1 = inlined_call_operand.vmem [shape: bf16[16,72], index: 1, kind: input, shape index: {}]   ;;  %s1765_s2 = inlined_call_operand.vmem [shape: f32[16,1], index: 2, kind: input, shape index: {}]   ;;  %s1766_s3 = inlined_call_operand.vmem [shape: f32[2,256], index: 3, kind: input, shape index: {}]   ;;  %s1767_s4 = inlined_call_operand.vmem [shape: bf16[2,2,16,512], index: 4, kind: output, shape index: {0}]   ;;  %s1768_s5 = inlined_call_operand.vmem [shape: f32[2,1,1], index: 5, kind: output, shape index: {1}]   ;;  %s1769_s6 = inlined_call_operand.vmem [shape: f32[2,1,1], index: 6, kind: output, shape index: {2}]   ;;  %s1770_s7 = inlined_call_operand.hbm [shape: f32[2,1,1], index: 7, kind: output, shape index: {3}]  }
   0x1   :  { %1771 = sst [smem:[#allocation12_spill]] %s1763_s0 }
   0x2   :  { %1772 = sst [smem:[#allocation13_spill]] %s1764_s1 }
   0x3   :  { %1773 = sst [smem:[#allocation14_spill]] %s1765_s2 }
   0x4   :  { %13 = vsyncpa [#allocation5], 0 }
   0x5   :  { %15 = vsyncpa [#allocation5 + $0x1], 0 }
   0x6   :  { %16 = vsyncpa [#allocation7], 0 }
   0x7   :  { %18 = vsyncpa [#allocation7 + $0x1], 0 }
   0x8   :  { %19 = vsyncpa [#allocation4], 0 }
   0x9   :  { %21 = vsyncpa [#allocation4 + $0x1], 0  ;;  %s1442_s24 = smov 0   ;;  %s1444_s25 = smov 0  }
   0xa   :  { %s1446_s26 = smov 0   ;;  %s1448_s27 = smov 0  }
   0xb LB: > { %s1463_s28 = sadd.s32 4294967295, %s1394_s27   ;;  %s1126_s29 = sadd.s32 4294967294, %s1394_s27   ;;  %s1394_s27 = sphi %s1448_s27, %s1782_s27   ;;  %s1390_s26 = sphi %s1446_s26, %s1781_s26   ;;  %s1386_s25 = sphi %s1444_s25, %s1780_s25   ;;  %s1382_s24 = sphi %s1442_s24, %s1779_s24  }
   0xc   : > { %s1467_s30 = sadd.s32 1, %s1394_s27   ;;  %s149_s8 = sadd.s32 1, %s1390_s26 }
   0xd   : > { %s146_s9 = ssub.s32 %s1394_s27, %s1467_s30  ;;  %p159_p0 = scmp.ne.s32.totalorder %s1390_s26, %s1386_s25 }
   0xe   : > { %p147_p1 = scmp.eq.s32.totalorder %s146_s9, 0  ;;  %p160_p2 = scmp.eq.s32.totalorder %s1463_s28, 1 }
   0xf   : > { %p165_p3 = scmp.ne.s32.totalorder %s1386_s25, %s1382_s24  ;;  %p166_p4 = scmp.eq.s32.totalorder %s1126_s29, 1 }
  0x10   : > { %s1478_s10 = scalar_select %p147_p1, %s1390_s26, %s149_s8  }
  0x11   : > { %p1480_p5 = por %p160_p2, %p159_p0  ;;  %p1484_p6 = por %p166_p4, %p165_p3 }
  0x12   : > { %p1129_p7 = scmp.ge.s32.totalorder %s1394_s27, 1  ;;  %p253_p8 = scmp.lt.s32.totalorder %s1394_s27, 3 }
  0x14   : > { %p254_p9 = pnand %p1129_p7, %p253_p8 }
  0x15   : > { %p300_p10 = scmp.lt.s32.totalorder (!%p254_p9), %s1463_s28, 1  ;;  %s1776_s0 = sld [smem:[#allocation12_spill]] (!%p254_p9)  ;;  %vm328_vm0 = vcmask (!%p254_p9), 130048   ;;  %vm435_vm1 = vcmask (!%p254_p9), 916480   ;;  %v1400_v55 = vmov (!%p254_p9), 0   ;;  %v337_v58 = vlaneseq (!%p254_p9) }
  0x16   : > { %257 = sbr.rel (%p254_p9) target bundleno = 968 (0x3c8), region = 36  ;;  %s1396_s18 = smov (!%p254_p9), 16   ;;  %692 = vmatprep.mubr.bf16.mxu0 (!%p254_p9), %v1400_v55  ;;  %735 = vmatprep.mubr.bf16.mxu1 (!%p254_p9), %v1400_v55  ;;  %v313_v61 = vld [vmem:[%s1766_s3] sm:$0xf] (!%p254_p9)  ;;  %vm647_vm4 = vcmask (!%p254_p9), 1043456   ;;  %vm643_vm5 = vcmask (!%p254_p9), 588800  }
  0x17   : > { %s1397_s19 = smov (!%p254_p9), 112   ;;  %s1398_s20 = smov (!%p254_p9), 1   ;;  %1307 = vset.pattern.permute.xlu0 (!%p254_p9), %v1400_v55  ;;  %1308 = vset.pattern.permute.xlu1 (!%p254_p9), %v1400_v55  ;;  %v344_v59 = vshrl.u32 (!%p254_p9), %v337_v58, 7  ;;  %v1577_v62 = vand.u32 (!%p254_p9), 127, %v337_v58 }
  0x18   : > { %s1399_s21 = smov (!%p254_p9), 127   ;;  %s1777_s2 = sld [smem:[#allocation14_spill]] (!%p254_p9) }
  0x19   : > { %v349_v60 = vsub.s32 (!%p254_p9), 2, %v344_v59  ;;  %v345_v63 = vsub.s32 (!%p254_p9), 0, %v344_v59  ;;  %vm339_vm2 = vcmp.lt.s32.totalorder (!%p254_p9), %v1577_v62, 1  ;;  %vm371_vm3 = vcmp.lt.s32.totalorder (!%p254_p9), %v1577_v62, 127  ;;  %s1778_s1 = sld [smem:[#allocation13_spill]] (!%p254_p9)  ;;  %s954_s9 = scalar_lea.vmem (!%p254_p9), %s1768_s5, %s1463_s28 }
  0x1d   : > { %s1492_s13 = scalar_select %p300_p10, %s1463_s28, 1 }
  0x1e   : > { %v627_v56 = vld [vmem:[%s1777_s2 + $0x8] sm:$0xff]  ;;  %v626_v57 = vld [vmem:[%s1777_s2] sm:$0xff] }
  0x1f   : > { %s1163_s14 = sshll.u32 %s1492_s13, 5  ;;  %s1164_s22 = sshll.u32 %s1492_s13, 6 }
  0x20   : > { %s304_s17 = scalar_lea.vmem %s1776_s0, %s1163_s14  ;;  %s1555_s8 = scalar_lea.vmem %s1767_s4, %s1164_s22 }
  0x21   : > { %v314_v0 = vld [vmem:[%s304_s17] sm:$0xff]  ;;  %v1137_v1 = vld [vmem:[%s304_s17 + $0x10] sm:$0xff]  ;;  %v1138_v2 = vld [vmem:[%s304_s17 + $0x18] sm:$0xff]   ;;  %758 = vst [vmem:[%s1555_s8] sm:$0xf] %v1400_v55  ;;  %s956_s13 = sshll.u32 %s954_s9, 4  ;;  %s957_s13 = int_to_ptr.vmem [resolvable:$true] %s956_s13 }
  0x22   : > { %v316_v3 = vunpack.c.l.bf16 %v314_v0  ;;  %v317_v4 = vunpack.c.h.bf16 %v314_v0  ;;  %v466_v5 = vunpack.c.h.bf16 %v1137_v1  ;;  %v467_v6 = vunpack.c.l.bf16 %v1138_v2  ;;  %v315_v7 = vld [vmem:[%s304_s17 + $0x8] sm:$0xff]   ;;  %v1140_v9 = vld [vmem:[%s304_s17 + $0x14] sm:$0xff]  ;;  %759 = vst [vmem:[%s1555_s8 + $0x10] sm:$0xf] %v1400_v55  ;;  %772 = vst [vmem:[%s1555_s8 + $0xc] sm:$0xf] %v1400_v55 }
  0x23   : > { %v1498_v8 = vld [vmem:[%s304_s17 + $0x4] sm:$0xff]  ;;  %v465_v10 = vunpack.c.l.bf16 %v1137_v1  ;;  %v318_v11 = vunpack.c.l.bf16 %v315_v7  ;;  %v1502_v16 = vunpack.c.h.bf16 %v1140_v9  ;;  %v532_v17 = vunpack.c.h.bf16 %v1138_v2  ;;  %773 = vst [vmem:[%s1555_s8 + $0x1c] sm:$0xf] %v1400_v55  ;;  %1149 = vst [vmem:[%s1555_s8 + $0x20] sm:$0xf] %v1400_v55  ;;  %s1310_s15 = scalar_lea.vmem %s957_s13, 16 }
  0x24   : > { %v423_v12 = vunpack.c.l.bf16 %v1498_v8  ;;  %v424_v13 = vunpack.c.h.bf16 %v1498_v8  ;;  %v1217_v14 = vpack.i.bf16 %v317_v4, %v316_v3  ;;  %v1227_v15 = vpack.i.bf16 %v467_v6, %v466_v5  ;;  %1150 = vst [vmem:[%s1555_s8 + $0x30] sm:$0xf] %v1400_v55  ;;  %1155 = vst [vmem:[%s1555_s8 + $0x2c] sm:$0xf] %v1400_v55  ;;  %p1311_p11 = scmp.ne.s32.totalorder %s957_s13, %s1310_s15 }
  0x25   : > { %v1222_v18 = vpack.i.bf16 %v465_v10, %v318_v11  ;;  %v425_v20 = vunpack.c.h.bf16 %v315_v7  ;;  %v1508_v21 = vunpack.c.l.bf16 %v1140_v9  ;;  %v1242_v22 = vpack.i.bf16 %v532_v17, %v1502_v16  ;;  %1156 = vst [vmem:[%s1555_s8 + $0x3c] sm:$0xf] %v1400_v55 }
  0x26   : > { %1218 = vrot.lane.b32.xlu0 %v1217_v14, %s1396_s18  ;;  %1228 = vrot.lane.b32.xlu1 %v1227_v15, %s1396_s18  ;;  %v1232_v19 = vpack.i.bf16 %v424_v13, %v423_v12  ;;  %v350_v1 = vrot.slane %v313_v61, %v349_v60  ;;  %v376_v2 = vsub.s32 1, %v344_v59  ;;  %v380_v3 = vsub.s32 3, %v344_v59  ;;  %p1312_p12 = pnand %p1311_p11, %p1480_p5 }
  0x27   : > { %v1237_v23 = vpack.i.bf16 %v1508_v21, %v425_v20  ;;  %v1262_v42 = vpack.i.bf16 %v1502_v16, %v1508_v21  ;;  %v346_v6 = vrot.slane %v313_v61, %v345_v63 }
  0x28   : > { %v1580_v7 = vrot.slane %v350_v1, %v345_v63  ;;  %v381_v9 = vrot.slane %v313_v61, %v380_v3  ;;  %v377_v10 = vrot.slane %v313_v61, %v376_v2  ;;  %p1313_p13 = pneg %p1312_p12 }
  0x29   : > { %v1585_v17 = vrot.slane %v346_v6, %v345_v63 }
  0x2a   : > { %1223 = vrot.lane.b32.xlu0 %v1222_v18, %s1396_s18  ;;  %1233 = vrot.lane.b32.xlu1 %v1232_v19, %s1397_s19  ;;  %s1314_s18 = sshll.u32 %s1768_s5, 4  ;;  %s1315_s18 = int_to_ptr.vmem [resolvable:$false] %s1314_s18 }
  0x2b   : > { %p1317_p0 = scmp.lt.s32.totalorder %s957_s13, %s1315_s18 }
  0x2e   : > { %1243 = vrot.lane.b32.xlu1 %v1242_v22, %s1397_s19  ;;  %1238 = vrot.lane.b32.xlu0 %v1237_v23, %s1397_s19  ;;  %s1316_s19 = scalar_lea.vmem %s1315_s18, 32 }
  0x2f   : > { %p1318_p1 = scmp.lt.s32.totalorder %s1316_s19, %s1310_s15 }
  0x31   : > { %p1319_p2 = por %p1318_p1, %p1317_p0 }
  0x32   : > { %1248 = vrot.lane.b32.xlu1 %v1232_v19, %s1398_s20 }
  0x33   : > { %p1320_p3 = pnand %p1319_p2, %p1313_p13 }
  0x98   : > { %v1219_v24 = vpop.permute.xlu0 %1218  ;;  %v1229_v25 = vpop.permute.xlu1 %1228 }
  0x99   : > { %v1231_v26 = vunpack.i.h.bf16 %v1229_v25  ;;  %v1230_v27 = vunpack.i.l.bf16 %v1229_v25  ;;  %v1221_v28 = vunpack.i.h.bf16 %v1219_v24  ;;  %v1220_v29 = vunpack.i.l.bf16 %v1219_v24 }
  0x9a   : > { %v1589_v24 = vrot.slane %v381_v9, %v376_v2 }
  0x9b   : > { %v1514_v34 = vsel %vm328_vm0, %v1230_v27, %v1231_v26  ;;  %v1520_v36 = vsel %vm328_vm0, %v1220_v29, %v1221_v28  ;;  %v1592_v26 = vrot.slane %v377_v10, %v376_v2 }
  0x9c   : > { %v1224_v30 = vpop.permute.xlu0 %1223  ;;  %v1234_v31 = vpop.permute.xlu1 %1233 }
  0x9d   : > { %v1226_v32 = vunpack.i.h.bf16 %v1224_v30  ;;  %v1225_v33 = vunpack.i.l.bf16 %v1224_v30  ;;  %v1236_v48 = vunpack.i.h.bf16 %v1234_v31  ;;  %v1235_v49 = vunpack.i.l.bf16 %v1234_v31 }
  0x9f   : > { %v1517_v35 = vsel %vm328_vm0, %v1226_v32, %v1230_v27  ;;  %v1523_v37 = vsel %vm328_vm0, %v1221_v28, %v1225_v33  ;;  %v1543_v52 = vsel %vm435_vm1, %v1235_v49, %v1236_v48 }
  0xa0   : > { %v1257_v38 = vpack.i.bf16 %v1514_v34, %v1517_v35  ;;  %v1252_v39 = vpack.i.bf16 %v1523_v37, %v1520_v36  ;;  %v1244_v40 = vpop.permute.xlu1 %1243  ;;  %v1239_v41 = vpop.permute.xlu0 %1238 }
  0xa1   : > { %v1246_v43 = vunpack.i.h.bf16 %v1244_v40  ;;  %v1245_v44 = vunpack.i.l.bf16 %v1244_v40  ;;  %v1241_v45 = vunpack.i.h.bf16 %v1239_v41  ;;  %v1240_v50 = vunpack.i.l.bf16 %v1239_v41 }
  0xa2   : > { %1258 = vrot.lane.b32.xlu1 %v1257_v38, %s1398_s20  ;;  %1253 = vrot.lane.b32.xlu0 %v1252_v39, %s1398_s20 }
  0xa3   : > { %v1535_v46 = vsel %vm435_vm1, %v1241_v45, %v1245_v44  ;;  %v1537_v47 = vsel %vm435_vm1, %v1245_v44, %v1246_v43  ;;  %v1545_v53 = vsel %vm435_vm1, %v1236_v48, %v1240_v50 }
  0xa4   : > { %v1292_v51 = vpack.i.bf16 %v1537_v47, %v1535_v46  ;;  %v1287_v54 = vpack.i.bf16 %v1545_v53, %v1543_v52  ;;  %v1249_v0 = vpop.permute.xlu1 %1248 }
  0xa5   : > { %v1251_v4 = vunpack.i.h.bf16 %v1249_v0  ;;  %v1250_v5 = vunpack.i.l.bf16 %v1249_v0 }
  0xa6   : > { %1263 = vrot.lane.b32.xlu1 %v1262_v42, %s1398_s20  ;;  %1268 = vrot.lane.b32.xlu0 %v1252_v39, %s1399_s21 }
  0xa7   : > { %v403_v11 = vsel %vm339_vm2, %v1250_v5, %v1251_v4  ;;  %v404_v23 = vsel %vm339_vm2, %v1251_v4, %v1250_v5 }
  0xa8   : > { %v406_v25 = vmul.f32 %v403_v11, %v1580_v7 }
  0xaa   : > { %1283 = vrot.lane.b32.xlu1 %v1262_v42, %s1399_s21  ;;  %1273 = vrot.lane.b32.xlu0 %v1257_v38, %s1399_s21 }
  0xae   : > { %1293 = vrot.lane.b32.xlu1 %v1292_v51, %s1398_s20  ;;  %1278 = vrot.lane.b32.xlu0 %v1232_v19, %s1399_s21 }
  0xb2   : > { %1303 = vrot.lane.b32.xlu1 %v1292_v51, %s1399_s21  ;;  %1288 = vrot.lane.b32.xlu0 %v1287_v54, %s1398_s20  ;;  %s1683_s20 = sand.u32 1, %s1386_s25  }
  0xb3   : > { %s931_s14 = scalar_lea.sflag [#allocation5], %s1683_s20 }
  0xb6   : > { %1298 = vrot.lane.b32.xlu0 %v1287_v54, %s1399_s21  ;;  %635 = vperm.xlu1 %1308, %v627_v56   ;;  %s1686_s21 = sshll.u32 %s1683_s20, 7 }
  0xb7   : > { %s285_s23 = scalar_lea.smem [#allocation3], %s1686_s21 }
  0xba   : > { %630 = vperm.xlu0 %1307, %v626_v57  }
 0x114   : > { %v1259_v14 = vpop.permute.xlu1 %1258  ;;  %v1254_v15 = vpop.permute.xlu0 %1253 }
 0x115   : > { %v1261_v18 = vunpack.i.h.bf16 %v1259_v14  ;;  %v1260_v19 = vunpack.i.l.bf16 %v1259_v14  ;;  %v1256_v20 = vunpack.i.h.bf16 %v1254_v15  ;;  %v1255_v22 = vunpack.i.l.bf16 %v1254_v15 }
 0x117   : > { %v485_v27 = vsel %vm339_vm2, %v1260_v19, %v1261_v18  ;;  %v340_v28 = vsel %vm339_vm2, %v1255_v22, %v1256_v20  ;;  %v341_v29 = vsel %vm339_vm2, %v1256_v20, %v1255_v22  ;;  %v486_v30 = vsel %vm339_vm2, %v1261_v18, %v1260_v19 }
 0x118   : > { %v1264_v31 = vpop.permute.xlu1 %1263  ;;  %v1269_v32 = vpop.permute.xlu0 %1268  ;;  %v488_v33 = vmul.f32 %v485_v27, %v1580_v7  ;;  %v362_v38 = vmul.f32 %v1580_v7, %v340_v28  ;;  %v361_v39 = vmul.f32 %v1585_v17, %v341_v29  ;;  %v487_v40 = vmul.f32 %v486_v30, %v1585_v17 }
 0x119   : > { %v1266_v41 = vunpack.i.h.bf16 %v1264_v31  ;;  %v1265_v42 = vunpack.i.l.bf16 %v1264_v31  ;;  %v1271_v43 = vunpack.i.h.bf16 %v1269_v32  ;;  %v1270_v44 = vunpack.i.l.bf16 %v1269_v32 }
 0x11a   : > { %v609_v45 = vpack.c.bf16 %v1514_v34, %v488_v33  ;;  %v607_v48 = vpack.c.bf16 %v1523_v37, %v362_v38  ;;  %v606_v49 = vpack.c.bf16 %v1520_v36, %v361_v39  ;;  %v608_v50 = vpack.c.bf16 %v1517_v35, %v487_v40 }
 0x11b   : > { %v510_v51 = vsel %vm339_vm2, %v1265_v42, %v1266_v41  ;;  %v511_v54 = vsel %vm339_vm2, %v1266_v41, %v1265_v42  ;;  %v372_v55 = vsel %vm371_vm3, %v1270_v44, %v1271_v43  ;;  %v373_v56 = vsel %vm371_vm3, %v1271_v43, %v1270_v44 }
 0x11c   : > { %v1284_v57 = vpop.permute.xlu1 %1283  ;;  %703 = vmatprep.subr.bf16.mxu1 %v609_v45  ;;  %v1274_v34 = vpop.permute.xlu0 %1273  ;;  %660 = vmatprep.subr.bf16.mxu0 %v607_v48  ;;  %v393_v36 = vmul.f32 %v1589_v24, %v373_v56  ;;  %v392_v35 = vmul.f32 %v1592_v26, %v372_v55  ;;  %v405_v37 = vmul.f32 %v404_v23, %v1585_v17 }
 0x11d   : > { %v1286_v58 = vunpack.i.h.bf16 %v1284_v57  ;;  %v1285_v59 = vunpack.i.l.bf16 %v1284_v57  ;;  %v1276_v60 = vunpack.i.h.bf16 %v1274_v34  ;;  %v1275_v61 = vunpack.i.l.bf16 %v1274_v34  ;;  %661 = vmatpush1.bf16.msra.mxu0 %v606_v49  ;;  %704 = vmatpush1.bf16.msra.mxu1 %v608_v50 }
 0x11e   : > { %v611_v63 = vpack.c.bf16 %v406_v25, %v393_v36  ;;  %v610_v0 = vpack.c.bf16 %v405_v37, %v392_v35  ;;  %v513_v1 = vmul.f32 %v510_v51, %v1580_v7  ;;  %v512_v2 = vmul.f32 %v511_v54, %v1585_v17 }
 0x11f   : > { %v522_v3 = vsel %vm371_vm3, %v1285_v59, %v1286_v58  ;;  %v523_v4 = vsel %vm371_vm3, %v1286_v58, %v1285_v59  ;;  %v497_v5 = vsel %vm371_vm3, %v1275_v61, %v1276_v60  ;;  %v498_v6 = vsel %vm371_vm3, %v1276_v60, %v1275_v61 }
 0x120   : > { %v1294_v9 = vpop.permute.xlu1 %1293  ;;  %v1279_v10 = vpop.permute.xlu0 %1278  ;;  %662 = vmatprep.subr.bf16.mxu0 %v611_v63  ;;  %v500_v11 = vmul.f32 %v498_v6, %v1589_v24  ;;  %v499_v14 = vmul.f32 %v497_v5, %v1592_v26  ;;  %v525_v15 = vmul.f32 %v523_v4, %v1589_v24  ;;  %v524_v18 = vmul.f32 %v522_v3, %v1592_v26 }
 0x121   : > { %v1296_v19 = vunpack.i.h.bf16 %v1294_v9  ;;  %v1295_v20 = vunpack.i.l.bf16 %v1294_v9  ;;  %v1281_v22 = vunpack.i.h.bf16 %v1279_v10  ;;  %v1280_v23 = vunpack.i.l.bf16 %v1279_v10  ;;  %663 = vmatpush1.bf16.msra.mxu0 %v610_v0 }
 0x122   : > { %v613_v25 = vpack.c.bf16 %v513_v1, %v500_v11  ;;  %v612_v27 = vpack.c.bf16 %v512_v2, %v499_v14  ;;  %v617_v28 = vpack.c.bf16 %v525_v15, %v1502_v16  ;;  %v616_v16 = vpack.c.bf16 %v524_v18, %v1508_v21 }
 0x123   : > { %v550_v29 = vsel %vm339_vm2, %v1295_v20, %v1296_v19  ;;  %v551_v30 = vsel %vm339_vm2, %v1296_v19, %v1295_v20  ;;  %v415_v31 = vsel %vm371_vm3, %v1280_v23, %v1281_v22  ;;  %v416_v32 = vsel %vm371_vm3, %v1281_v22, %v1280_v23 }
 0x124   : > { %v1304_v33 = vpop.permute.xlu1 %1303  ;;  %v1289_v38 = vpop.permute.xlu0 %1288  ;;  %705 = vmatprep.subr.bf16.mxu1 %v613_v25  ;;  %v418_v39 = vmul.f32 %v416_v32, %v1589_v24  ;;  %v417_v40 = vmul.f32 %v415_v31, %v1592_v26  ;;  %v553_v41 = vmul.f32 %v550_v29, %v1580_v7  ;;  %v552_v51 = vmul.f32 %v551_v30, %v1585_v17 }
 0x125   : > { %v1306_v42 = vunpack.i.h.bf16 %v1304_v33  ;;  %v1305_v43 = vunpack.i.l.bf16 %v1304_v33  ;;  %v1291_v44 = vunpack.i.h.bf16 %v1289_v38  ;;  %v1290_v45 = vunpack.i.l.bf16 %v1289_v38  ;;  %706 = vmatpush1.bf16.msra.mxu1 %v612_v27 }
 0x126   : > { %v615_v48 = vpack.c.bf16 %v418_v39, %v424_v13  ;;  %707 = vmatprep.subr.bf16.mxu1 %v617_v28  ;;  %v614_v49 = vpack.c.bf16 %v417_v40, %v423_v12  ;;  %v621_v50 = vpack.c.bf16 %v1537_v47, %v553_v41  ;;  %v620_v59 = vpack.c.bf16 %v1535_v46, %v552_v51  ;;  %v1309_v46 = vld [vmem:[%s1778_s1] sm:$0xff]  }
 0x127   : > { %v563_v21 = vsel %vm371_vm3, %v1306_v42, %v1305_v43  ;;  %v444_v54 = vsel %vm339_vm2, %v1290_v45, %v1291_v44  ;;  %v445_v55 = vsel %vm339_vm2, %v1291_v44, %v1290_v45  ;;  %v562_v13 = vsel %vm371_vm3, %v1305_v43, %v1306_v42 }
 0x128   : > { %v565_v56 = vmul.f32 %v563_v21, %v1589_v24  ;;  %v1299_v8 = vpop.permute.xlu0 %1298  ;;  %664 = vmatprep.subr.bf16.mxu0 %v615_v48  ;;  %v447_v12 = vmul.f32 %v444_v54, %v1580_v7  ;;  %v446_v47 = vmul.f32 %v445_v55, %v1585_v17  ;;  %v564_v57 = vmul.f32 %v562_v13, %v1592_v26 }
 0x129   : > { %v1301_v34 = vunpack.i.h.bf16 %v1299_v8  ;;  %v1300_v36 = vunpack.i.l.bf16 %v1299_v8  ;;  %665 = vmatpush1.bf16.msra.mxu0 %v614_v49  ;;  %708 = vmatpush1.bf16.msra.mxu1 %v616_v16 }
 0x12a   : > { %709 = vmatprep.subr.bf16.mxu1 %v621_v50  ;;  %v619_v35 = vpack.c.bf16 %v1545_v53, %v447_v12  ;;  %v618_v37 = vpack.c.bf16 %v1543_v52, %v446_v47  ;;  %v625_v60 = vpack.c.bf16 %v565_v56, %v565_v56  ;;  %v624_v63 = vpack.c.bf16 %v564_v57, %v564_v57 }
 0x12b   : > { %v457_v58 = vsel %vm371_vm3, %v1301_v34, %v1300_v36  ;;  %v456_v7 = vsel %vm371_vm3, %v1300_v36, %v1301_v34 }
 0x12c   : > { %v459_v17 = vmul.f32 %v457_v58, %v1589_v24  ;;  %666 = vmatprep.subr.bf16.mxu0 %v619_v35  ;;  %v458_v61 = vmul.f32 %v456_v7, %v1592_v26  ;;  %v655_v1 = vsel %vm647_vm4, %v624_v63, 0 }
 0x12d   : > { %667 = vmatpush1.bf16.msra.mxu0 %v618_v37  ;;  %710 = vmatpush1.bf16.msra.mxu1 %v620_v59 }
 0x12e   : > { %1145 = vmatprep.subr.msk.bf16.mxu1 %vm647_vm4, %v625_v60  ;;  %v623_v52 = vpack.c.bf16 %v459_v17, %v459_v17  ;;  %v622_v53 = vpack.c.bf16 %v458_v61, %v458_v61 }
 0x130   : > { %1143 = vmatprep.subr.msk.bf16.mxu0 %vm647_vm4, %v623_v52  ;;  %v649_v0 = vsel %vm647_vm4, %v622_v53, 0 }
 0x131   : > { %669 = vmatpush1.bf16.msra.mxu0 %v649_v0  ;;  %712 = vmatpush1.bf16.msra.mxu1 %v655_v1 }
 0x134   : > { %1144 = vmatmul.mubr.msk.bf16.vlgmr.msra.gmra.mrb[0].mxu0 %vm643_vm5, %v1309_v46  ;;  %1146 = vmatmul.mubr.msk.bf16.vlgmr.msra.gmra.mrb[0].mxu1 %vm643_vm5, %v1309_v46 }
 0x135   : > { %v636_v24 = vpop.permute.xlu1 %635 }
 0x139   : > { %v631_v62 = vpop.permute.xlu0 %630 }
 0x207   : > { %v694_v26 = vpop.f32.mrb[0].mxu0  ;;  %v737_v2 = vpop.f32.mrb[0].mxu1 }
 0x208   : > { %v695_v3 = vadd.f32 %v694_v26, %v631_v62  ;;  %v738_v4 = vadd.f32 %v737_v2, %v631_v62  ;;  %v696_v5 = vpop.f32.mrb[1].mxu0  ;;  %v739_v6 = vpop.f32.mrb[1].mxu1 }
 0x209   : > { %v697_v9 = vadd.f32 %v696_v5, %v631_v62  ;;  %v740_v10 = vadd.f32 %v739_v6, %v631_v62  ;;  %v698_v11 = vpop.f32.mrb[2].mxu0  ;;  %v741_v14 = vpop.f32.mrb[2].mxu1 }
 0x20a   : > { %v746_v15 = vmax.f32 %v695_v3, 0.0  ;;  %v748_v18 = vmax.f32 %v738_v4, 0.0  ;;  %v699_v19 = vadd.f32 %v698_v11, %v636_v24  ;;  %v742_v20 = vadd.f32 %v741_v14, %v636_v24  ;;  %v700_v22 = vpop.f32.mrb[3].mxu0  ;;  %v743_v23 = vpop.f32.mrb[3].mxu1 }
 0x20b   : > { %v747_v25 = vmax.f32 %v697_v9, 0.0  ;;  %v749_v27 = vmax.f32 %v740_v10, 0.0  ;;  %v701_v28 = vadd.f32 %v700_v22, %v636_v24  ;;  %v744_v29 = vadd.f32 %v743_v23, %v636_v24 }
 0x20c   : > { %v750_v30 = vmax.f32 %v699_v19, 0.0  ;;  %v752_v31 = vmax.f32 %v742_v20, 0.0 }
 0x20d   : > { %v1165_v32 = vpack.c.bf16 %v747_v25, %v746_v15  ;;  %v1167_v33 = vpack.c.bf16 %v749_v27, %v748_v18  ;;  %v751_v38 = vmax.f32 %v701_v28, 0.0  ;;  %v753_v39 = vmax.f32 %v744_v29, 0.0 }
 0x20e   : > { %v754_v40 = vpack.c.bf16 %v750_v30, %v746_v15  ;;  %v756_v16 = vpack.c.bf16 %v752_v31, %v748_v18 }
 0x20f   : > { %770 = vst [vmem:[%s1555_s8 + $0x4] sm:$0xff] %v1165_v32  ;;  %1153 = vst [vmem:[%s1555_s8 + $0x24] sm:$0xff] %v1167_v33  ;;  %v755_v41 = vpack.c.bf16 %v751_v38, %v747_v25  ;;  %v1166_v42 = vpack.c.bf16 %v751_v38, %v750_v30  ;;  %v757_v43 = vpack.c.bf16 %v753_v39, %v749_v27 }
 0x210   : > { %v1168_v44 = vpack.c.bf16 %v753_v39, %v752_v31  ;;  %v791_v45 = vunpack.c.l.bf16 %v756_v16  ;;  %v793_v48 = vunpack.c.h.bf16 %v756_v16  ;;  %v795_v49 = vunpack.c.l.bf16 %v754_v40 }
 0x211   : > { %v797_v50 = vunpack.c.h.bf16 %v754_v40  ;;  %771 = vst [vmem:[%s1555_s8 + $0x14] sm:$0xff] %v1166_v42  ;;  %821 = vmatprep.subr.bf16.mxu0 %v757_v43  ;;  %853 = vmatprep.mubr.bf16.mxu0 %v757_v43  ;;  %v792_v51 = vunpack.c.l.bf16 %v757_v43  ;;  %v794_v21 = vunpack.c.h.bf16 %v757_v43  ;;  %v796_v54 = vunpack.c.l.bf16 %v755_v41 }
 0x212   : > { %1154 = vst [vmem:[%s1555_s8 + $0x34] sm:$0xff] %v1168_v44  ;;  %v798_v55 = vunpack.c.h.bf16 %v755_v41  ;;  %864 = vmatprep.subr.bf16.mxu1 %v755_v41  ;;  %896 = vmatprep.mubr.bf16.mxu1 %v755_v41  ;;  %v799_v13 = vsub.f32 %v791_v45, %v795_v49 }
 0x213   : > { %v801_v56 = vsub.f32 %v793_v48, %v797_v50  ;;  %822 = vmatpush1.bf16.xpose.msra.mxu0 %v756_v16  ;;  %865 = vmatpush1.bf16.xpose.msra.mxu1 %v754_v40  ;;  %v800_v8 = vsub.f32 %v792_v51, %v796_v54 }
 0x214   : > { %v802_v12 = vsub.f32 %v794_v21, %v798_v55  ;;  %v803_v47 = vand.u32 2147483647, %v799_v13 }
 0x215   : > { %v804_v57 = vand.u32 2147483647, %v800_v8  ;;  %v805_v34 = vand.u32 2147483647, %v801_v56 }
 0x216   : > { %v806_v35 = vand.u32 2147483647, %v802_v12 }
 0x217   : > { %v807_v36 = vadd.f32 %v804_v57, %v803_v47 }
 0x219   : > { %v808_v37 = vadd.f32 %v807_v36, %v805_v34 }
 0x21a   : > { %854 = vmatmul.mubr.bf16.vlgmr.msra.gmra.mrb[4].mxu0 %v756_v16  ;;  %897 = vmatmul.mubr.bf16.vlgmr.msra.gmra.mrb[4].mxu1 %v754_v40 }
 0x21b   : > { %v809_v58 = vadd.f32 %v808_v37, %v806_v35 }
 0x21d   : > { %810 = vadd.xlane.f32.xlu1 %v809_v58 }
 0x2aa   : > { %v811_v59 = vpop.xlane.xlu1 %810 }
 0x2ab   : > { %v812_v7 = vrot.slane %v811_v59, 4 }
 0x2ad   : > { %v813_v17 = vadd.f32 %v812_v7, %v811_v59 }
 0x2af   : > { %v814_v60 = vrot.slane %v813_v17, 2 }
 0x2b1   : > { %v815_v61 = vadd.f32 %v814_v60, %v813_v17 }
 0x2b3   : > { %v816_v63 = vrot.slane %v815_v61, 1 }
 0x2b5   : > { %v817_v52 = vadd.f32 %v816_v63, %v815_v61 }
 0x2b7   : > { %1169 = vpush %v817_v52 }
 0x2e8   : > { %s1170_s22 = spop %1169 }
 0x2e9   : > { %820 = sst [smem:[%s285_s23]] %s1170_s22 }
 0x2ed   : > { %v855_v53 = vpop.f32.mrb[4].mxu0  ;;  %v898_v0 = vpop.f32.mrb[4].mxu1 }
 0x2ee   : > { %v862_v1 = vmul.f32 0.00024414063, %v855_v53  ;;  %v905_v46 = vmul.f32 0.00024414063, %v898_v0  ;;  %v857_v62 = vpop.f32.mrb[5].mxu0  ;;  %v900_v24 = vpop.f32.mrb[5].mxu1 }
 0x2ef   : > { %v858_v26 = vpop.f32.mrb[6].mxu0  ;;  %v901_v2 = vpop.f32.mrb[6].mxu1 }
 0x2f0   : > { %v907_v3 = vsub.f32 %v862_v1, %v905_v46  ;;  %v863_v4 = vmul.f32 0.00024414063, %v858_v26  ;;  %v906_v5 = vmul.f32 0.00024414063, %v901_v2  ;;  %v860_v6 = vpop.f32.mrb[7].mxu0  ;;  %v903_v9 = vpop.f32.mrb[7].mxu1 }
 0x2f2   : > { %v909_v10 = vand.u32 2147483647, %v907_v3  ;;  %v908_v11 = vsub.f32 %v863_v4, %v906_v5 }
 0x2f4   : > { %v910_v14 = vand.u32 2147483647, %v908_v11  ;;  %v911_v15 = vsel %vm328_vm0, %v909_v10, 0.0 }
 0x2f6   : > { %v912_v18 = vsel %vm328_vm0, %v910_v14, 0.0 }
 0x2f7   : > { %v913_v19 = vadd.f32 %v912_v18, %v911_v15 }
 0x2f9   : > { %914 = vadd.xlane.f32.xlu0 %v913_v19 }
 0x2fa   : > { %1323 = shalt.err (!%p1320_p3)
}
 0x2fb   : > { %1173 = dma.smem_to_vmem (%p1480_p5), %s285_s23, 16, %s957_s13, %s931_s14  }
 0x2fc   : > { %s299_s22 = scalar_lea.smem [#allocation8], %s1686_s21  ;;  %s1401_s29 = smov 0.0  }
 0x2fd   : > { %312 = sst [smem:[%s299_s22]] %s1401_s29  ;;  %s1160_s8 = sshll.u32 %s1463_s28, 4 }
 0x2fe   : > { %s979_s15 = scalar_lea.hbm %s1770_s7, %s1160_s8  ;;  %s941_s17 = scalar_lea.sflag [#allocation4], %s1683_s20 }
 0x2ff   : > { %s1324_s18 = scalar_lea.hbm %s979_s15, 16  ;;  %s1328_s1 = scalar_lea.hbm %s1770_s7, 32 }
 0x300   : > { %p1325_p4 = scmp.ne.s32.totalorder %s979_s15, %s1324_s18  ;;  %p1329_p9 = scmp.lt.u32.totalorder %s979_s15, %s1770_s7 }
 0x301   : > { %p1330_p10 = scmp.lt.u32.totalorder %s1328_s1, %s1324_s18  ;;  %p1332_p12 = scmp.lt.u32.totalorder %s1324_s18, %s979_s15 }
 0x302   : > { %p1326_p7 = pnand %p1325_p4, %p1480_p5 }
 0x303   : > { %p1331_p11 = por %p1330_p10, %p1329_p9 }
 0x304   : > { %p1327_p8 = pneg %p1326_p7 }
 0x305   : > { %p1333_p13 = por %p1332_p12, %p1331_p11 }
 0x307   : > { %p1334_p0 = pnand %p1333_p13, %p1327_p8 }
 0x309   : > { %1337 = shalt.err (!%p1334_p0)
}
 0x30a   : > { %1175 = dma.smem_to_hbm (%p1480_p5), %s299_s22, 16, %s979_s15, %s941_s17  }
 0x30b   : > { %s966_s2 = scalar_lea.vmem %s1769_s6, %s1463_s28  ;;  %s292_s29 = scalar_lea.smem [#allocation6], %s1686_s21 }
 0x30c   : > { %s968_s13 = sshll.u32 %s966_s2, 4  ;;  %s936_s8 = scalar_lea.sflag [#allocation7], %s1683_s20  ;;  %s969_s13 = int_to_ptr.vmem [resolvable:$true] %s968_s13 }
 0x30d   : > { %s1338_s22 = scalar_lea.vmem %s969_s13, 16  ;;  %s1342_s15 = sshll.u32 %s1769_s6, 4  ;;  %s1343_s15 = int_to_ptr.vmem [resolvable:$false] %s1342_s15 }
 0x30e   : > { %p1339_p1 = scmp.ne.s32.totalorder %s969_s13, %s1338_s22  ;;  %s1344_s17 = scalar_lea.vmem %s1343_s15, 32 }
 0x30f   : > { %p1345_p4 = scmp.lt.s32.totalorder %s969_s13, %s1343_s15  ;;  %p1346_p7 = scmp.lt.s32.totalorder %s1344_s17, %s1338_s22 }
 0x310   : > { %p1340_p2 = pnand %p1339_p1, %p1480_p5 }
 0x311   : > { %p1347_p8 = por %p1346_p7, %p1345_p4 }
 0x312   : > { %p1341_p3 = pneg %p1340_p2 }
 0x314   : > { %p1348_p9 = pnand %p1347_p8, %p1341_p3 }
 0x386   : > { %v915_v20 = vpop.xlane.xlu0 %914 }
 0x387   : > { %v916_v22 = vrot.slane %v915_v20, 4 }
 0x389   : > { %v917_v23 = vadd.f32 %v916_v22, %v915_v20 }
 0x38b   : > { %v918_v25 = vrot.slane %v917_v23, 2 }
 0x38d   : > { %v919_v27 = vadd.f32 %v918_v25, %v917_v23 }
 0x38f   : > { %v920_v28 = vrot.slane %v919_v27, 1 }
 0x391   : > { %v921_v29 = vadd.f32 %v920_v28, %v919_v27 }
 0x393   : > { %1171 = vpush %v921_v29 }
 0x3c4   : > { %s1172_s14 = spop %1171 }
 0x3c5   : > { %924 = sst [smem:[%s292_s29]] %s1172_s14 }
 0x3c6   : > { %1351 = shalt.err (!%p1348_p9)
}
 0x3c7   : > { %1174 = dma.smem_to_vmem (%p1480_p5), %s292_s29, 16, %s969_s13, %s936_s8  }
 0x3c8 PF: > { %p1162_p10 = scmp.lt.s32.totalorder %s1394_s27, 2 }
 0x3c9   : > { %s999_s28 = sand.u32 (!%p1162_p10), 1, %s1382_s24  }
 0x3ca   : > { %986 = sbr.rel (%p1162_p10) target bundleno = 984 (0x3d8), region = 56  ;;  %s1000_s20 = scalar_lea.sflag (!%p1162_p10), [#allocation5], %s999_s28 }
 0x3d1   : > { %1369 = dma.done.wait (%p1484_p6), %s1000_s20, 16  }
 0x3d2   : > { %1371 = vsyncadd (%p1484_p6), %s1000_s20, 4294967280  ;;  %s1009_s21 = scalar_lea.sflag [#allocation7], %s999_s28 }
 0x3d3   : > { %1373 = dma.done.wait (%p1484_p6), %s1009_s21, 16  }
 0x3d4   : > { %1375 = vsyncadd (%p1484_p6), %s1009_s21, 4294967280  ;;  %s1018_s11 = scalar_lea.sflag [#allocation4], %s999_s28 }
 0x3d5   : > { %1377 = dma.done.wait (%p1484_p6), %s1018_s11, 16  }
 0x3d6   : > { %1379 = vsyncadd (%p1484_p6), %s1018_s11, 4294967280 }
 0x3d7   : > { %1023 = sfence }
 0x3d8 PF: > { %p24_p5 = scmp.ge.s32.totalorder %s1467_s30, 4   ;;  %s1779_s24 = smov %s1386_s25 }
 0x3d9   : > { %s1780_s25 = smov %s1390_s26  ;;  %s1781_s26 = smov %s1478_s10 }
 0x3da   : > { %s1782_s27 = smov %s1467_s30  ;;  %26 = sbr.rel (!%p24_p5) target bundleno = 11 (0xb), region = 122 }
 0x3e1   :  { %1024 = vsyncpa [#allocation4], 1 }
 0x3e2   :  { %1026 = vsyncpa [#allocation4 + $0x1], 1 }
 0x3e3   :  { %1027 = vsyncpa [#allocation5], 1 }
 0x3e4   :  { %1029 = vsyncpa [#allocation5 + $0x1], 1 }
 0x3e5   :  { %1030 = vsyncpa [#allocation7], 1 }
 0x3e6   :  { %1032 = vsyncpa [#allocation7 + $0x1], 1 }

// kernel: forward.3
= control target key start
LH: loop header
LB: loop body
LE: loop exit
PB: predicated region body
PF: predicated region fallthrough
CT: control target
= control target key end

     0   :  { %13 = vsyncpa [#allocation4], 0  ;;  %s1719_s0 = inlined_call_operand.vmem [shape: f32[2,2,4,512], index: 0, kind: input, shape index: {}]   ;;  %s1720_s1 = inlined_call_operand.vmem [shape: bf16[8,36], index: 1, kind: input, shape index: {}]   ;;  %s1721_s2 = inlined_call_operand.vmem [shape: f32[8,1], index: 2, kind: input, shape index: {}]   ;;  %s1722_s3 = inlined_call_operand.vmem [shape: f32[2,256], index: 3, kind: input, shape index: {}]   ;;  %s1723_s4 = inlined_call_operand.vmem [shape: bf16[2,2,8,512], index: 4, kind: output, shape index: {0}]   ;;  %s1724_s5 = inlined_call_operand.vmem [shape: f32[2,1,1], index: 5, kind: output, shape index: {1}]   ;;  %s1725_s6 = inlined_call_operand.vmem [shape: f32[2,1,1], index: 6, kind: output, shape index: {2}]   ;;  %s1726_s7 = inlined_call_operand.vmem [shape: f32[2,1,1], index: 7, kind: output, shape index: {3}]  }
   0x1   :  { %15 = vsyncpa [#allocation4 + $0x1], 0 }
   0x2   :  { %16 = vsyncpa [#allocation6], 0 }
   0x3   :  { %18 = vsyncpa [#allocation6 + $0x1], 0  ;;  %s1355_s24 = smov 0   ;;  %s1357_s25 = smov 0  }
   0x4   :  { %s1359_s26 = smov 0   ;;  %s1361_s27 = smov 0  }
   0x5 LB: > { %s1376_s28 = sadd.s32 4294967295, %s1308_s27   ;;  %s1727_s29 = sadd.s32 4294967294, %s1308_s27   ;;  %s1308_s27 = sphi %s1361_s27, %s1736_s27   ;;  %s1304_s26 = sphi %s1359_s26, %s1735_s26   ;;  %s1300_s25 = sphi %s1357_s25, %s1734_s25   ;;  %s1296_s24 = sphi %s1355_s24, %s1733_s24  }
   0x6   : > { %s1380_s30 = sadd.s32 1, %s1308_s27   ;;  %s146_s8 = sadd.s32 1, %s1304_s26 }
   0x7   : > { %s143_s9 = ssub.s32 %s1308_s27, %s1380_s30  ;;  %p156_p0 = scmp.ne.s32.totalorder %s1304_s26, %s1300_s25 }
   0x8   : > { %p144_p1 = scmp.eq.s32.totalorder %s143_s9, 0  ;;  %p157_p2 = scmp.eq.s32.totalorder %s1376_s28, 1 }
   0x9   : > { %p162_p3 = scmp.ne.s32.totalorder %s1300_s25, %s1296_s24  ;;  %p163_p4 = scmp.eq.s32.totalorder %s1727_s29, 1 }
   0xa   : > { %s1393_s10 = scalar_select %p144_p1, %s1304_s26, %s146_s8  }
   0xb   : > { %p1395_p5 = por %p157_p2, %p156_p0  ;;  %p1399_p6 = por %p163_p4, %p162_p3 }
   0xc   : > { %p1133_p7 = scmp.ge.s32.totalorder %s1308_s27, 1  ;;  %p250_p8 = scmp.lt.s32.totalorder %s1308_s27, 3 }
   0xe   : > { %p251_p9 = pnand %p1133_p7, %p250_p8 }
   0xf   : > { %p297_p10 = scmp.lt.s32.totalorder (!%p251_p9), %s1376_s28, 1  ;;  %s1310_s18 = smov (!%p251_p9), 16   ;;  %vm354_vm0 = vcmask (!%p251_p9), 130048   ;;  %v363_v26 = vlaneseq (!%p251_p9)  ;;  %v342_v36 = vld [vmem:[%s1722_s3] sm:$0xf] (!%p251_p9)  ;;  %vm481_vm1 = vcmask (!%p251_p9), 916480  }
  0x10   : > { %254 = sbr.rel (%p251_p9) target bundleno = 973 (0x3cd), region = 36  ;;  %s1311_s19 = smov (!%p251_p9), 112   ;;  %vm693_vm4 = vcmask (!%p251_p9), 1041408   ;;  %vm689_vm5 = vcmask (!%p251_p9), 293888   ;;  %vm323_vm6 = vcmask (!%p251_p9), 1043456   ;;  %vm919_vm7 = vcmask (!%p251_p9), 64512  }
  0x11   : > { %s1312_s20 = smov (!%p251_p9), 1   ;;  %s1313_s21 = smov (!%p251_p9), 127   ;;  %v370_v29 = vshrl.u32 (!%p251_p9), %v363_v26, 7  ;;  %v1492_v39 = vand.u32 (!%p251_p9), 127, %v363_v26 }
  0x12   : > { %s961_s15 = scalar_lea.vmem (!%p251_p9), %s1724_s5, %s1376_s28 }
  0x13   : > { %v371_v34 = vsub.s32 (!%p251_p9), 0, %v370_v29  ;;  %v375_v35 = vsub.s32 (!%p251_p9), 2, %v370_v29  ;;  %vm365_vm2 = vcmp.lt.s32.totalorder (!%p251_p9), %v1492_v39, 1  ;;  %v412_v54 = vsub.s32 (!%p251_p9), 1, %v370_v29  ;;  %s963_s16 = sshll.u32 (!%p251_p9), %s961_s15, 4  ;;  %s964_s16 = int_to_ptr.vmem [resolvable:$true] %s963_s16 }
  0x14   : > { %v416_v57 = vsub.s32 (!%p251_p9), 3, %v370_v29  ;;  %vm407_vm3 = vcmp.lt.s32.totalorder (!%p251_p9), %v1492_v39, 127 }
  0x15   : > { %v372_v40 = vrot.slane (!%p251_p9), %v342_v36, %v371_v34  ;;  %v376_v41 = vrot.slane (!%p251_p9), %v342_v36, %v375_v35 }
  0x17   : > { %s1407_s13 = scalar_select %p297_p10, %s1376_s28, 1  ;;  %v1500_v46 = vrot.slane %v372_v40, %v371_v34  ;;  %v1502_v47 = vrot.slane %v376_v41, %v371_v34 }
  0x19   : > { %s1162_s14 = sshll.u32 %s1407_s13, 5  ;;  %s280_s13 = sand.u32 1, %s1300_s25  }
  0x1a   : > { %s1415_s17 = scalar_lea.vmem %s1719_s0, %s1162_s14 }
  0x1b   : > { %v344_v0 = vld [vmem:[%s1415_s17 + $0x8] sm:$0xf]  ;;  %v1419_v1 = vld [vmem:[%s1415_s17] sm:$0xff]  ;;  %v1428_v4 = vld [vmem:[%s1415_s17 + $0x10] sm:$0xff] }
  0x1c   : > { %352 = vrot.lane.b32.xlu1 %v344_v0, %s1310_s18  ;;  %348 = vrot.lane.b32.xlu0 %v1419_v1, %s1310_s18  ;;  %v347_v2 = vcombine.high %v1419_v1, %v1419_v1  ;;  %v470_v3 = vld [vmem:[%s1415_s17 + $0x4] sm:$0xff]  ;;  %v1146_v6 = vld [vmem:[%s1415_s17 + $0x14] sm:$0xff]  ;;  %v522_v8 = vcombine.high %v1428_v4, %v1428_v4  ;;  %v392_v12 = vcombine.low %v344_v0, %v344_v0 }
  0x1d   : > { %v474_v5 = vcombine.high %v470_v3, %v470_v3  ;;  %452 = vst [vmem:[#allocation2 + $0x40] sm:$0xf] %v470_v3  ;;  %v607_v7 = vcombine.high %v1146_v6, %v1146_v6  ;;  %585 = vst [vmem:[#allocation2 + $0x50] sm:$0xf] %v1146_v6  ;;  %v1144_v9 = vld [vmem:[%s1415_s17 + $0x18] sm:$0xf]  ;;  %v543_v14 = vcombine.low %v1428_v4, %v1428_v4 }
  0x1e   : > { %v471_v10 = vld [vmem:[%s1415_s17 + $0xc] sm:$0xf]  ;;  %v1147_v11 = vld [vmem:[%s1415_s17 + $0x1c] sm:$0xf]  ;;  %v544_v13 = vcombine.low %v1144_v9, %v1144_v9  ;;  %v391_v15 = vcombine.low %v1419_v1, %v1419_v1  ;;  %v628_v18 = vcombine.low %v1146_v6, %v1146_v6  ;;  %v496_v19 = vcombine.low %v470_v3, %v470_v3 }
  0x1f   : > { %453 = vst [vmem:[#allocation2 + $0x48] sm:$0xf] %v474_v5  ;;  %586 = vst [vmem:[#allocation2 + $0x58] sm:$0xf] %v607_v7  ;;  %v497_v16 = vcombine.low %v471_v10, %v471_v10  ;;  %v629_v17 = vcombine.low %v1147_v11, %v1147_v11  ;;  %v413_v0 = vrot.slane %v342_v36, %v412_v54 }
  0x20   : > { %523 = vrot.lane.b32.xlu1 %v1428_v4, %s1310_s18  ;;  %350 = vrot.lane.b32.xlu0 %v347_v2, %s1310_s18 }
  0x24   : > { %527 = vrot.lane.b32.xlu1 %v1144_v9, %s1310_s18  ;;  %525 = vrot.lane.b32.xlu0 %v522_v8, %s1310_s18 }
  0x28   : > { %477 = vrot.lane.b32.xlu1 %v474_v5, %s1311_s19  ;;  %475 = vrot.lane.b32.xlu0 %v470_v3, %s1311_s19 }
  0x2c   : > { %608 = vrot.lane.b32.xlu1 %v1146_v6, %s1311_s19  ;;  %479 = vrot.lane.b32.xlu0 %v471_v10, %s1311_s19  ;;  %v1314_v10 = vmov 0  }
  0x2d   : > { %738 = vmatprep.mubr.bf16.mxu0 %v1314_v10  ;;  %779 = vmatprep.mubr.bf16.mxu1 %v1314_v10 }
  0x2e   : > { %1215 = vset.pattern.permute.xlu0 %v1314_v10 }
  0x30   : > { %612 = vrot.lane.b32.xlu1 %v1147_v11, %s1311_s19  ;;  %610 = vrot.lane.b32.xlu0 %v607_v7, %s1311_s19 }
  0x34   : > { %438 = vrot.lane.b32.xlu1 %v474_v5, %s1312_s20  ;;  %436 = vrot.lane.b32.xlu0 %v470_v3, %s1312_s20 }
  0x38   : > { %571 = vrot.lane.b32.xlu1 %v607_v7, %s1312_s20  ;;  %569 = vrot.lane.b32.xlu0 %v1146_v6, %s1312_s20 }
  0x3c   : > { %454 = vrot.lane.b32.xlu1 %v470_v3, %s1313_s21  ;;  %395 = vrot.lane.b32.xlu0 %v392_v12, %s1310_s18  ;;  %v1531_v12 = vrot.slane %v413_v0, %v412_v54 }
  0x40   : > { %547 = vrot.lane.b32.xlu1 %v544_v13, %s1310_s18  ;;  %456 = vrot.lane.b32.xlu0 %v474_v5, %s1313_s21  ;;  %v417_v5 = vrot.slane %v342_v36, %v416_v57 }
  0x42   : > { %v1533_v13 = vrot.slane %v417_v5, %v412_v54 }
  0x44   : > { %589 = vrot.lane.b32.xlu1 %v607_v7, %s1313_s21  ;;  %587 = vrot.lane.b32.xlu0 %v1146_v6, %s1313_s21 }
  0x48   : > { %545 = vrot.lane.b32.xlu1 %v543_v14, %s1310_s18  ;;  %393 = vrot.lane.b32.xlu0 %v391_v15, %s1310_s18  ;;  %s938_s18 = scalar_lea.sflag [#allocation4], %s280_s13 }
  0x4c   : > { %632 = vrot.lane.b32.xlu1 %v629_v17, %s1311_s19  ;;  %500 = vrot.lane.b32.xlu0 %v497_v16, %s1311_s19 }
  0x50   : > { %630 = vrot.lane.b32.xlu1 %v628_v18, %s1311_s19  ;;  %498 = vrot.lane.b32.xlu0 %v496_v19, %s1311_s19  ;;  %s1228_s19 = scalar_lea.vmem %s964_s16, 16 }
  0x51   : > { %p1229_p11 = scmp.ne.s32.totalorder %s964_s16, %s1228_s19 }
  0x53   : > { %p1230_p12 = pnand %p1229_p11, %p1395_p5 }
  0x55   : > { %p1231_p13 = pneg %p1230_p12 }
  0x8e   : > { %v353_v20 = vpop.permute.xlu1 %352  ;;  %v1467_v21 = vpop.permute.xlu0 %348 }
  0x92   : > { %v1469_v22 = vpop.permute.xlu1 %523  ;;  %v351_v23 = vpop.permute.xlu0 %350 }
  0x93   : > { %v356_v24 = vsel %vm354_vm0, %v351_v23, %v353_v20  ;;  %v355_v25 = vsel %vm354_vm0, %v1467_v21, %v351_v23  ;;  %v683_v23 = vld [vmem:[%s1721_s2] sm:$0xff] }
  0x94   : > { %361 = vrot.lane.b32.xlu1 %v356_v24, %s1312_s20  ;;  %359 = vrot.lane.b32.xlu0 %v355_v25, %s1312_s20 }
  0x96   : > { %v528_v27 = vpop.permute.xlu1 %527  ;;  %v526_v28 = vpop.permute.xlu0 %525 }
  0x97   : > { %v530_v30 = vsel %vm354_vm0, %v526_v28, %v528_v27  ;;  %v529_v33 = vsel %vm354_vm0, %v1469_v22, %v526_v28 }
  0x98   : > { %405 = vrot.lane.b32.xlu1 %v356_v24, %s1313_s21  ;;  %403 = vrot.lane.b32.xlu0 %v355_v25, %s1313_s21 }
  0x9a   : > { %v478_v31 = vpop.permute.xlu1 %477  ;;  %v1479_v32 = vpop.permute.xlu0 %475 }
  0x9b   : > { %v482_v44 = vsel %vm481_vm1, %v1479_v32, %v478_v31 }
  0x9c   : > { %535 = vrot.lane.b32.xlu1 %v530_v30, %s1312_s20  ;;  %533 = vrot.lane.b32.xlu0 %v529_v33, %s1312_s20 }
  0x9e   : > { %v1488_v37 = vpop.permute.xlu1 %608  ;;  %v480_v38 = vpop.permute.xlu0 %479 }
  0x9f   : > { %v483_v45 = vsel %vm481_vm1, %v478_v31, %v480_v38 }
  0xa0   : > { %557 = vrot.lane.b32.xlu1 %v530_v30, %s1313_s21  ;;  %555 = vrot.lane.b32.xlu0 %v529_v33, %s1313_s21 }
  0xa2   : > { %v613_v42 = vpop.permute.xlu1 %612  ;;  %v611_v43 = vpop.permute.xlu0 %610 }
  0xa3   : > { %v615_v48 = vsel %vm481_vm1, %v611_v43, %v613_v42  ;;  %v614_v53 = vsel %vm481_vm1, %v1488_v37, %v611_v43 }
  0xa4   : > { %486 = vrot.lane.b32.xlu0 %v482_v44, %s1312_s20  ;;  %488 = vrot.lane.b32.xlu1 %v483_v45, %s1312_s20 }
  0xa6   : > { %v439_v49 = vpop.permute.xlu1 %438  ;;  %v437_v50 = vpop.permute.xlu0 %436 }
  0xa7   : > { %v440_v51 = vsel %vm365_vm2, %v437_v50, %v439_v49  ;;  %v441_v52 = vsel %vm365_vm2, %v439_v49, %v437_v50 }
  0xa8   : > { %v442_v55 = vmul.f32 %v441_v52, %v1500_v46  ;;  %v443_v56 = vmul.f32 %v440_v51, %v1502_v47  ;;  %620 = vrot.lane.b32.xlu1 %v615_v48, %s1312_s20  ;;  %618 = vrot.lane.b32.xlu0 %v614_v53, %s1312_s20  ;;  %s1622_s20 = scalar_lea.vmem %s1723_s4, %s1162_s14  ;;  %s1639_s14 = sshll.u32 %s280_s13, 7 }
  0xa9   : > { %796 = vst [vmem:[%s1622_s20] sm:$0xf] %v1314_v10  ;;  %804 = vst [vmem:[%s1622_s20 + $0xc] sm:$0xf] %v1314_v10  ;;  %s282_s23 = scalar_lea.smem [#allocation3], %s1639_s14 }
  0xaa   : > { %v446_v58 = vrot.slane %v442_v55, 4  ;;  %v447_v59 = vrot.slane %v443_v56, 4  ;;  %v572_v60 = vpop.permute.xlu1 %571  ;;  %v570_v61 = vpop.permute.xlu0 %569  ;;  %1153 = vst [vmem:[%s1622_s20 + $0x10] sm:$0xf] %v1314_v10  ;;  %1156 = vst [vmem:[%s1622_s20 + $0x1c] sm:$0xf] %v1314_v10 }
  0xab   : > { %v573_v62 = vsel %vm365_vm2, %v570_v61, %v572_v60  ;;  %v574_v63 = vsel %vm365_vm2, %v572_v60, %v570_v61 }
  0xac   : > { %450 = vst [vmem:[#allocation2 + $0x20] sm:$0xf0] %v446_v58  ;;  %451 = vst [vmem:[#allocation2 + $0x28] sm:$0xf0] %v447_v59  ;;  %v575_v2 = vmul.f32 %v574_v63, %v1500_v46  ;;  %v576_v3 = vmul.f32 %v573_v62, %v1502_v47  ;;  %510 = vrot.lane.b32.xlu1 %v483_v45, %s1313_s21  ;;  %508 = vrot.lane.b32.xlu0 %v482_v44, %s1313_s21 }
  0xae   : > { %v579_v6 = vrot.slane %v575_v2, 4  ;;  %v580_v7 = vrot.slane %v576_v3, 4  ;;  %v455_v8 = vpop.permute.xlu1 %454  ;;  %v396_v9 = vpop.permute.xlu0 %395 }
  0xaf   : > { %v398_v11 = vsel %vm354_vm0, %v1467_v21, %v396_v9 }
  0xb0   : > { %583 = vst [vmem:[#allocation2 + $0x30] sm:$0xf0] %v579_v6  ;;  %584 = vst [vmem:[#allocation2 + $0x38] sm:$0xf0] %v580_v7  ;;  %642 = vrot.lane.b32.xlu1 %v615_v48, %s1313_s21  ;;  %640 = vrot.lane.b32.xlu0 %v614_v53, %s1313_s21  ;;  %s1728_s21 = scalar_lea.smem [#allocation7], %s1639_s14 }
  0xb1   : > { %402 = vst [vmem:[#allocation2 + $0x8] sm:$0xf0] %v398_v11 }
  0xb2   : > { %v548_v14 = vpop.permute.xlu1 %547  ;;  %v457_v15 = vpop.permute.xlu0 %456 }
  0xb3   : > { %v550_v16 = vsel %vm354_vm0, %v1469_v22, %v548_v14  ;;  %v458_v17 = vsel %vm407_vm3, %v455_v8, %v457_v15  ;;  %v459_v18 = vsel %vm407_vm3, %v457_v15, %v455_v8 }
  0xb4   : > { %554 = vst [vmem:[#allocation2 + $0x18] sm:$0xf0] %v550_v16  ;;  %v460_v19 = vmul.f32 %v458_v17, %v1531_v12  ;;  %v461_v20 = vmul.f32 %v459_v18, %v1533_v13  ;;  %686 = vperm.xlu0 %1215, %v683_v23  }
  0xb6   : > { %v464_v24 = vrot.slane %v460_v19, 4  ;;  %v465_v25 = vrot.slane %v461_v20, 4  ;;  %v590_v26 = vpop.permute.xlu1 %589  ;;  %v588_v27 = vpop.permute.xlu0 %587 }
  0xb7   : > { %v591_v28 = vsel %vm407_vm3, %v588_v27, %v590_v26  ;;  %v592_v29 = vsel %vm407_vm3, %v590_v26, %v588_v27 }
  0xb8   : > { %468 = vst [vmem:[#allocation2 + $0x40] sm:$0xf0] %v464_v24  ;;  %469 = vst [vmem:[#allocation2 + $0x48] sm:$0xf0] %v465_v25  ;;  %v593_v30 = vmul.f32 %v591_v28, %v1531_v12  ;;  %v594_v31 = vmul.f32 %v592_v29, %v1533_v13 }
  0xba   : > { %v597_v33 = vrot.slane %v593_v30, 4  ;;  %v598_v34 = vrot.slane %v594_v31, 4  ;;  %v546_v35 = vpop.permute.xlu1 %545  ;;  %v394_v36 = vpop.permute.xlu0 %393 }
  0xbb   : > { %v549_v38 = vsel %vm354_vm0, %v546_v35, %v1469_v22  ;;  %v397_v40 = vsel %vm354_vm0, %v394_v36, %v1467_v21 }
  0xbc   : > { %601 = vst [vmem:[#allocation2 + $0x50] sm:$0xf0] %v597_v33  ;;  %602 = vst [vmem:[#allocation2 + $0x58] sm:$0xf0] %v598_v34 }
  0xbd   : > { %553 = vst [vmem:[#allocation2 + $0x10] sm:$0xf0] %v549_v38  ;;  %401 = vst [vmem:[#allocation2] sm:$0xf0] %v397_v40 }
  0xbe   : > { %v633_v41 = vpop.permute.xlu1 %632  ;;  %v501_v42 = vpop.permute.xlu0 %500 }
  0xbf   : > { %v635_v43 = vsel %vm481_vm1, %v1488_v37, %v633_v41  ;;  %v503_v44 = vsel %vm481_vm1, %v1479_v32, %v501_v42 }
  0xc0   : > { %639 = vst [vmem:[#allocation2 + $0x78] sm:$0xf0] %v635_v43  ;;  %507 = vst [vmem:[#allocation2 + $0x68] sm:$0xf0] %v503_v44 }
  0xc2   : > { %v631_v45 = vpop.permute.xlu1 %630  ;;  %v499_v48 = vpop.permute.xlu0 %498 }
  0xc3   : > { %v634_v22 = vsel %vm481_vm1, %v631_v45, %v1488_v37  ;;  %v502_v21 = vsel %vm481_vm1, %v499_v48, %v1479_v32  ;;  %v660_v45 = vld [vmem:[#allocation2 + $0x48] sm:$0xff] }
  0xc4   : > { %638 = vst [vmem:[#allocation2 + $0x70] sm:$0xf0] %v634_v22  ;;  %506 = vst [vmem:[#allocation2 + $0x60] sm:$0xf0] %v502_v21  ;;  %v659_v22 = vld [vmem:[#allocation2 + $0x40] sm:$0xff] }
 0x106   : > { %v362_v49 = vpop.permute.xlu1 %361  ;;  %v360_v50 = vpop.permute.xlu0 %359 }
 0x107   : > { %v366_v51 = vsel %vm365_vm2, %v360_v50, %v362_v49  ;;  %v367_v52 = vsel %vm365_vm2, %v362_v49, %v360_v50 }
 0x108   : > { %v387_v53 = vmul.f32 %v1500_v46, %v367_v52  ;;  %v388_v54 = vmul.f32 %v1502_v47, %v366_v51 }
 0x10a   : > { %389 = vst [vmem:[#allocation2] sm:$0xf] %v387_v53  ;;  %390 = vst [vmem:[#allocation2 + $0x8] sm:$0xf] %v388_v54  ;;  %v406_v37 = vpop.permute.xlu1 %405  ;;  %v404_v55 = vpop.permute.xlu0 %403 }
 0x10b   : > { %v408_v32 = vsel %vm407_vm3, %v404_v55, %v406_v37  ;;  %v409_v56 = vsel %vm407_vm3, %v406_v37, %v404_v55 }
 0x10c   : > { %v428_v57 = vmul.f32 %v1531_v12, %v408_v32  ;;  %v429_v58 = vmul.f32 %v1533_v13, %v409_v56  ;;  %v662_v32 = vld [vmem:[#allocation2 + $0x58] sm:$0xff] }
 0x10e   : > { %430 = vst [vmem:[#allocation2 + $0x20] sm:$0xf] %v428_v57  ;;  %431 = vst [vmem:[#allocation2 + $0x28] sm:$0xf] %v429_v58  ;;  %v536_v59 = vpop.permute.xlu1 %535  ;;  %v534_v60 = vpop.permute.xlu0 %533  ;;  %v661_v57 = vld [vmem:[#allocation2 + $0x50] sm:$0xff] }
 0x10f   : > { %v537_v61 = vsel %vm365_vm2, %v534_v60, %v536_v59  ;;  %v538_v62 = vsel %vm365_vm2, %v536_v59, %v534_v60 }
 0x110   : > { %v539_v63 = vmul.f32 %v538_v62, %v1500_v46  ;;  %v540_v0 = vmul.f32 %v537_v61, %v1502_v47 }
 0x111   : > { %v652_v9 = vld [vmem:[#allocation2 + $0x8] sm:$0xff]  ;;  %v651_v14 = vld [vmem:[#allocation2] sm:$0xff] }
 0x112   : > { %541 = vst [vmem:[#allocation2 + $0x10] sm:$0xf] %v539_v63  ;;  %542 = vst [vmem:[#allocation2 + $0x18] sm:$0xf] %v540_v0  ;;  %v558_v2 = vpop.permute.xlu1 %557  ;;  %v556_v3 = vpop.permute.xlu0 %555 }
 0x113   : > { %v559_v5 = vsel %vm407_vm3, %v556_v3, %v558_v2  ;;  %v560_v6 = vsel %vm407_vm3, %v558_v2, %v556_v3 }
 0x114   : > { %v561_v7 = vmul.f32 %v559_v5, %v1531_v12  ;;  %v562_v8 = vmul.f32 %v560_v6, %v1533_v13 }
 0x115   : > { %v656_v11 = vld [vmem:[#allocation2 + $0x28] sm:$0xff]  ;;  %v655_v15 = vld [vmem:[#allocation2 + $0x20] sm:$0xff] }
 0x116   : > { %563 = vst [vmem:[#allocation2 + $0x30] sm:$0xf] %v561_v7  ;;  %564 = vst [vmem:[#allocation2 + $0x38] sm:$0xf] %v562_v8  ;;  %v489_v16 = vpop.permute.xlu1 %488  ;;  %v487_v17 = vpop.permute.xlu0 %486  ;;  %v672_v18 = vpack.c.bf16 %v656_v11, %v652_v9  ;;  %v671_v19 = vpack.c.bf16 %v655_v15, %v651_v14  ;;  %v313_v7 = vsub.f32 %v1428_v4, %v1419_v1  ;;  %v1142_v1 = vld [vmem:[%s1415_s17 + $0x18] sm:$0xff]  ;;  %v312_v4 = vld [vmem:[%s1415_s17 + $0x8] sm:$0xff] }
 0x117   : > { %v490_v20 = vsel %vm365_vm2, %v487_v17, %v489_v16  ;;  %v491_v23 = vsel %vm365_vm2, %v489_v16, %v487_v17  ;;  %v314_v9 = vsub.f32 %v1142_v1, %v312_v4 }
 0x118   : > { %v492_v24 = vmul.f32 %v491_v23, %v1500_v46  ;;  %v493_v25 = vmul.f32 %v490_v20, %v1502_v47  ;;  %706 = vmatprep.subr.bf16.mxu0 %v672_v18  ;;  %v315_v8 = vand.u32 2147483647, %v313_v7 }
 0x119   : > { %707 = vmatpush1.bf16.msra.mxu0 %v671_v19  ;;  %v654_v33 = vld [vmem:[#allocation2 + $0x18] sm:$0xff]  ;;  %v653_v35 = vld [vmem:[#allocation2 + $0x10] sm:$0xff]  ;;  %v316_v14 = vand.u32 2147483647, %v314_v9 }
 0x11a   : > { %494 = vst [vmem:[#allocation2 + $0x60] sm:$0xf] %v492_v24  ;;  %495 = vst [vmem:[#allocation2 + $0x68] sm:$0xf] %v493_v25  ;;  %v621_v26 = vpop.permute.xlu1 %620  ;;  %v619_v27 = vpop.permute.xlu0 %618  ;;  %v319_v11 = vcombine.high %v315_v8, %v315_v8  ;;  %v324_v15 = vsel %vm323_vm6, %v315_v8, 0.0 }
 0x11b   : > { %v622_v28 = vsel %vm365_vm2, %v619_v27, %v621_v26  ;;  %v623_v29 = vsel %vm365_vm2, %v621_v26, %v619_v27  ;;  %v320_v18 = vcombine.high %v316_v14, %v316_v14  ;;  %v327_v19 = vsel %vm323_vm6, %v316_v14, 0.0 }
 0x11c   : > { %v624_v30 = vmul.f32 %v623_v29, %v1500_v46  ;;  %v625_v31 = vmul.f32 %v622_v28, %v1502_v47  ;;  %v325_v16 = vsel %vm323_vm6, %v319_v11, 0.0 }
 0x11d   : > { %v658_v34 = vld [vmem:[#allocation2 + $0x38] sm:$0xff]  ;;  %v657_v36 = vld [vmem:[#allocation2 + $0x30] sm:$0xff]  ;;  %v326_v17 = vadd.f32 %v325_v16, %v324_v15  ;;  %v329_v23 = vsel %vm323_vm6, %v320_v18, 0.0 }
 0x11e   : > { %626 = vst [vmem:[#allocation2 + $0x70] sm:$0xf] %v624_v30  ;;  %627 = vst [vmem:[#allocation2 + $0x78] sm:$0xf] %v625_v31  ;;  %v511_v38 = vpop.permute.xlu1 %510  ;;  %v509_v40 = vpop.permute.xlu0 %508  ;;  %v674_v41 = vpack.c.bf16 %v658_v34, %v654_v33  ;;  %v673_v42 = vpack.c.bf16 %v657_v36, %v653_v35 }
 0x11f   : > { %v512_v43 = vsel %vm407_vm3, %v509_v40, %v511_v38  ;;  %v513_v44 = vsel %vm407_vm3, %v511_v38, %v509_v40  ;;  %v328_v20 = vadd.f32 %v327_v19, %v326_v17 }
 0x120   : > { %v514_v46 = vmul.f32 %v512_v43, %v1531_v12  ;;  %v515_v47 = vmul.f32 %v513_v44, %v1533_v13  ;;  %747 = vmatprep.subr.bf16.mxu1 %v674_v41 }
 0x121   : > { %748 = vmatpush1.bf16.msra.mxu1 %v673_v42  ;;  %v664_v48 = vld [vmem:[#allocation2 + $0x68] sm:$0xff]  ;;  %v663_v21 = vld [vmem:[#allocation2 + $0x60] sm:$0xff]  ;;  %v330_v24 = vadd.f32 %v329_v23, %v328_v20 }
 0x122   : > { %516 = vst [vmem:[#allocation2 + $0x80] sm:$0xf] %v514_v46  ;;  %517 = vst [vmem:[#allocation2 + $0x88] sm:$0xf] %v515_v47  ;;  %v643_v49 = vpop.permute.xlu1 %642  ;;  %v641_v50 = vpop.permute.xlu0 %640  ;;  %v676_v51 = vpack.c.bf16 %v664_v48, %v660_v45  ;;  %v675_v52 = vpack.c.bf16 %v663_v21, %v659_v22 }
 0x123   : > { %v644_v53 = vsel %vm407_vm3, %v641_v50, %v643_v49  ;;  %v645_v54 = vsel %vm407_vm3, %v643_v49, %v641_v50  ;;  %331 = vadd.xlane.f32.xlu1 %v330_v24 }
 0x124   : > { %v646_v37 = vmul.f32 %v644_v53, %v1531_v12  ;;  %v647_v55 = vmul.f32 %v645_v54, %v1533_v13  ;;  %708 = vmatprep.subr.bf16.mxu0 %v676_v51  ;;  %v650_v13 = vld [vmem:[%s1720_s1] sm:$0xf] }
 0x125   : > { %709 = vmatpush1.bf16.msra.mxu0 %v675_v52  ;;  %v666_v56 = vld [vmem:[#allocation2 + $0x78] sm:$0xff]  ;;  %v665_v58 = vld [vmem:[#allocation2 + $0x70] sm:$0xff] }
 0x126   : > { %648 = vst [vmem:[#allocation2 + $0x90] sm:$0xf] %v646_v37  ;;  %649 = vst [vmem:[#allocation2 + $0x98] sm:$0xf] %v647_v55  ;;  %v678_v59 = vpack.c.bf16 %v666_v56, %v662_v32  ;;  %v677_v60 = vpack.c.bf16 %v665_v58, %v661_v57 }
 0x128   : > { %749 = vmatprep.subr.bf16.mxu1 %v678_v59 }
 0x129   : > { %750 = vmatpush1.bf16.msra.mxu1 %v677_v60  ;;  %v668_v61 = vld [vmem:[#allocation2 + $0x88] sm:$0xf]  ;;  %v667_v39 = vld [vmem:[#allocation2 + $0x80] sm:$0xf] }
 0x12a   : > { %v680_v62 = vpack.c.bf16 %v668_v61, %v668_v61  ;;  %v679_v63 = vpack.c.bf16 %v667_v39, %v667_v39 }
 0x12c   : > { %1148 = vmatprep.subr.msk.bf16.mxu0 %vm693_vm4, %v680_v62  ;;  %v695_v12 = vsel %vm693_vm4, %v679_v63, 0 }
 0x12d   : > { %711 = vmatpush1.bf16.msra.mxu0 %v695_v12  ;;  %v670_v0 = vld [vmem:[#allocation2 + $0x98] sm:$0xf]  ;;  %v669_v2 = vld [vmem:[#allocation2 + $0x90] sm:$0xf] }
 0x12e   : > { %v682_v3 = vpack.c.bf16 %v670_v0, %v670_v0  ;;  %v681_v5 = vpack.c.bf16 %v669_v2, %v669_v2 }
 0x130   : > { %1149 = vmatmul.mubr.msk.bf16.vlgmr.msra.gmra.mrb[0].mxu0 %vm689_vm5, %v650_v13  ;;  %1150 = vmatprep.subr.msk.bf16.mxu1 %vm693_vm4, %v682_v3  ;;  %v701_v6 = vsel %vm693_vm4, %v681_v5, 0 }
 0x131   : > { %752 = vmatpush1.bf16.msra.mxu1 %v701_v6 }
 0x133   : > { %v687_v25 = vpop.permute.xlu0 %686 }
 0x134   : > { %1151 = vmatmul.mubr.msk.bf16.vlgmr.msra.gmra.mrb[0].mxu1 %vm689_vm5, %v650_v13 }
 0x1b0   : > { %v332_v32 = vpop.xlane.xlu1 %331 }
 0x1b1   : > { %v333_v56 = vrot.slane %v332_v32, 4 }
 0x1b3   : > { %v334_v57 = vadd.f32 %v333_v56, %v332_v32 }
 0x1b5   : > { %v335_v58 = vrot.slane %v334_v57, 2 }
 0x1b7   : > { %v336_v59 = vadd.f32 %v335_v58, %v334_v57 }
 0x1b9   : > { %v337_v60 = vrot.slane %v336_v59, 1 }
 0x1bb   : > { %v338_v61 = vadd.f32 %v337_v60, %v336_v59 }
 0x1bd   : > { %1166 = vpush %v338_v61 }
 0x1ee   : > { %s1167_s17 = spop %1166 }
 0x1ef   : > { %341 = sst [smem:[%s1728_s21]] %s1167_s17 }
 0x203   : > { %v740_v26 = vpop.f32.mrb[0].mxu0 }
 0x204   : > { %v742_v27 = vpop.f32.mrb[1].mxu0  ;;  %v741_v28 = vadd.f32 %v740_v26, %v687_v25 }
 0x205   : > { %v743_v10 = vadd.f32 %v742_v27, %v687_v25  ;;  %v744_v29 = vpop.f32.mrb[2].mxu0 }
 0x206   : > { %v788_v30 = vmax.f32 %v741_v28, 0.0  ;;  %v745_v31 = vpop.f32.mrb[3].mxu0 }
 0x207   : > { %v781_v33 = vpop.f32.mrb[0].mxu1  ;;  %v789_v34 = vmax.f32 %v743_v10, 0.0 }
 0x208   : > { %v782_v35 = vadd.f32 %v781_v33, %v687_v25  ;;  %v783_v36 = vpop.f32.mrb[1].mxu1  ;;  %v792_v38 = vpack.c.bf16 %v788_v30, %v788_v30 }
 0x209   : > { %v784_v40 = vadd.f32 %v783_v36, %v687_v25  ;;  %v785_v41 = vpop.f32.mrb[2].mxu1  ;;  %v793_v42 = vpack.c.bf16 %v789_v34, %v789_v34  ;;  %v1164_v43 = vpack.c.bf16 %v789_v34, %v788_v30 }
 0x20a   : > { %v790_v44 = vmax.f32 %v782_v35, 0.0  ;;  %v786_v46 = vpop.f32.mrb[3].mxu1  ;;  %v817_v48 = vunpack.c.l.bf16 %v792_v38 }
 0x20b   : > { %v791_v47 = vmax.f32 %v784_v40, 0.0  ;;  %803 = vst [vmem:[%s1622_s20 + $0x4] sm:$0xff] %v1164_v43  ;;  %876 = vmatprep.subr.bf16.mxu1 %v793_v42  ;;  %908 = vmatprep.mubr.bf16.mxu1 %v793_v42  ;;  %v818_v49 = vunpack.c.l.bf16 %v793_v42 }
 0x20c   : > { %v794_v45 = vpack.c.bf16 %v790_v44, %v790_v44  ;;  %877 = vmatpush1.bf16.xpose.msra.mxu1 %v792_v38 }
 0x20d   : > { %v795_v22 = vpack.c.bf16 %v791_v47, %v791_v47  ;;  %v1165_v21 = vpack.c.bf16 %v791_v47, %v790_v44 }
 0x20e   : > { %v815_v50 = vunpack.c.l.bf16 %v794_v45 }
 0x20f   : > { %1155 = vst [vmem:[%s1622_s20 + $0x14] sm:$0xff] %v1165_v21  ;;  %835 = vmatprep.subr.bf16.mxu0 %v795_v22  ;;  %867 = vmatprep.mubr.bf16.mxu0 %v795_v22  ;;  %v816_v51 = vunpack.c.l.bf16 %v795_v22 }
 0x210   : > { %836 = vmatpush1.bf16.xpose.msra.mxu0 %v794_v45  ;;  %v819_v52 = vsub.f32 %v815_v50, %v817_v48 }
 0x211   : > { %v820_v53 = vsub.f32 %v816_v51, %v818_v49 }
 0x212   : > { %v821_v54 = vand.u32 2147483647, %v819_v52 }
 0x213   : > { %909 = vmatmul.mubr.bf16.vlgmr.msra.gmra.mrb[4].mxu1 %v792_v38  ;;  %v822_v37 = vand.u32 2147483647, %v820_v53 }
 0x215   : > { %v823_v55 = vadd.f32 %v822_v37, %v821_v54 }
 0x217   : > { %868 = vmatmul.mubr.bf16.vlgmr.msra.gmra.mrb[4].mxu0 %v794_v45  ;;  %824 = vadd.xlane.f32.xlu0 %v823_v55 }
 0x2a4   : > { %v825_v39 = vpop.xlane.xlu0 %824 }
 0x2a5   : > { %v826_v62 = vrot.slane %v825_v39, 4 }
 0x2a7   : > { %v827_v63 = vadd.f32 %v826_v62, %v825_v39 }
 0x2a9   : > { %v828_v12 = vrot.slane %v827_v63, 2 }
 0x2ab   : > { %v829_v13 = vadd.f32 %v828_v12, %v827_v63 }
 0x2ad   : > { %v830_v0 = vrot.slane %v829_v13, 1 }
 0x2af   : > { %v831_v2 = vadd.f32 %v830_v0, %v829_v13 }
 0x2b1   : > { %1168 = vpush %v831_v2 }
 0x2e2   : > { %s1169_s22 = spop %1168 }
 0x2e3   : > { %834 = sst [smem:[%s282_s23]] %s1169_s22  ;;  %s1232_s22 = sshll.u32 %s1724_s5, 4  ;;  %s1233_s22 = int_to_ptr.vmem [resolvable:$false] %s1232_s22 }
 0x2e4   : > { %s1234_s29 = scalar_lea.vmem %s1233_s22, 32  ;;  %p1235_p0 = scmp.lt.s32.totalorder %s964_s16, %s1233_s22 }
 0x2e5   : > { %p1236_p1 = scmp.lt.s32.totalorder %s1234_s29, %s1228_s19 }
 0x2e6   : > { %v910_v3 = vpop.f32.mrb[4].mxu1 }
 0x2e7   : > { %v912_v5 = vpop.f32.mrb[5].mxu1  ;;  %v916_v1 = vmul.f32 0.00048828125, %v910_v3  ;;  %p1237_p2 = por %p1236_p1, %p1235_p0 }
 0x2e8   : > { %v913_v6 = vpop.f32.mrb[6].mxu1 }
 0x2e9   : > { %v914_v7 = vpop.f32.mrb[7].mxu1  ;;  %p1238_p3 = pnand %p1237_p2, %p1231_p13 }
 0x2ea   : > { %v869_v8 = vpop.f32.mrb[4].mxu0 }
 0x2eb   : > { %v875_v4 = vmul.f32 0.00048828125, %v869_v8  ;;  %v871_v9 = vpop.f32.mrb[5].mxu0 }
 0x2ec   : > { %v872_v11 = vpop.f32.mrb[6].mxu0 }
 0x2ed   : > { %v917_v14 = vsub.f32 %v875_v4, %v916_v1  ;;  %v873_v15 = vpop.f32.mrb[7].mxu0 }
 0x2ef   : > { %v918_v16 = vand.u32 2147483647, %v917_v14 }
 0x2f1   : > { %v920_v17 = vsel %vm919_vm7, %v918_v16, 0.0 }
 0x2f2   : > { %921 = vadd.xlane.f32.xlu1 %v920_v17 }
 0x2f3   : > { %1241 = shalt.err (!%p1238_p3)
}
 0x2f4   : > { %1172 = dma.smem_to_vmem (%p1395_p5), %s282_s23, 16, %s964_s16, %s938_s18  }
 0x2f5   : > { %s973_s8 = scalar_lea.vmem %s1725_s6, %s1376_s28  ;;  %s985_s19 = scalar_lea.vmem %s1726_s7, %s1376_s28 }
 0x2f6   : > { %s942_s20 = sand.u32 1, %s1376_s28   ;;  %s975_s23 = sshll.u32 %s973_s8, 4  ;;  %s976_s23 = int_to_ptr.vmem [resolvable:$true] %s975_s23 }
 0x2f7   : > { %s987_s16 = sshll.u32 %s985_s19, 4  ;;  %s289_s17 = scalar_lea.smem [#allocation5], %s1639_s14  ;;  %s1671_s16 = int_to_ptr.vmem [resolvable:$true] %s987_s16 }
 0x2f8   : > { %s943_s22 = scalar_lea.sflag [#allocation6], %s942_s20  ;;  %s1242_s21 = scalar_lea.vmem %s976_s23, 16 }
 0x2f9   : > { %p1243_p4 = scmp.ne.s32.totalorder %s976_s23, %s1242_s21  ;;  %s1246_s9 = sshll.u32 %s1725_s6, 4  ;;  %s1247_s9 = int_to_ptr.vmem [resolvable:$false] %s1246_s9 }
 0x2fa   : > { %s1248_s28 = scalar_lea.vmem %s1247_s9, 32  ;;  %p1249_p9 = scmp.lt.s32.totalorder %s976_s23, %s1247_s9 }
 0x2fb   : > { %p1244_p7 = pnand %p1243_p4, %p1395_p5  ;;  %p1250_p10 = scmp.lt.s32.totalorder %s1248_s28, %s1242_s21 }
 0x2fd   : > { %p1245_p8 = pneg %p1244_p7  ;;  %p1251_p11 = por %p1250_p10, %p1249_p9 }
 0x2ff   : > { %p1252_p12 = pnand %p1251_p11, %p1245_p8 }
 0x37f   : > { %v922_v18 = vpop.xlane.xlu1 %921 }
 0x380   : > { %v923_v19 = vrot.slane %v922_v18, 4 }
 0x382   : > { %v924_v20 = vadd.f32 %v923_v19, %v922_v18 }
 0x384   : > { %v925_v23 = vrot.slane %v924_v20, 2 }
 0x386   : > { %v926_v24 = vadd.f32 %v925_v23, %v924_v20 }
 0x388   : > { %v927_v25 = vrot.slane %v926_v24, 1 }
 0x38a   : > { %v928_v26 = vadd.f32 %v927_v25, %v926_v24 }
 0x38c   : > { %1170 = vpush %v928_v26 }
 0x3bd   : > { %s1171_s18 = spop %1170 }
 0x3be   : > { %931 = sst [smem:[%s289_s17]] %s1171_s18 }
 0x3bf   : > { %1255 = shalt.err (!%p1252_p12)
}
 0x3c0   : > { %1173 = dma.smem_to_vmem (%p1395_p5), %s289_s17, 16, %s976_s23, %s943_s22  }
 0x3c1   : > { %s1256_s8 = scalar_lea.vmem %s1671_s16, 16  ;;  %s1260_s20 = sshll.u32 %s1726_s7, 4  ;;  %s1261_s20 = int_to_ptr.vmem [resolvable:$false] %s1260_s20 }
 0x3c2   : > { %p1257_p13 = scmp.ne.s32.totalorder %s1671_s16, %s1256_s8  ;;  %s1262_s21 = scalar_lea.vmem %s1261_s20, 32 }
 0x3c3   : > { %p1263_p2 = scmp.lt.s32.totalorder %s1671_s16, %s1261_s20  ;;  %p1264_p3 = scmp.lt.s32.totalorder %s1262_s21, %s1256_s8 }
 0x3c4   : > { %p1258_p0 = pnand %p1257_p13, %p1395_p5 }
 0x3c5   : > { %p1265_p4 = por %p1264_p3, %p1263_p2 }
 0x3c6   : > { %p1259_p1 = pneg %p1258_p0 }
 0x3c8   : > { %p1266_p7 = pnand %p1265_p4, %p1259_p1 }
 0x3ca   : > { %1269 = shalt.err (!%p1266_p7)
}
 0x3cb   : > { %s1731_s23 = scalar_lea.smem [#allocation7], %s1639_s14 }
 0x3cc   : > { %1174 = dma.smem_to_vmem (%p1395_p5), %s1731_s23, 16, %s1671_s16, %s943_s22  }
 0x3cd PF: > { %p1161_p8 = scmp.lt.s32.totalorder %s1308_s27, 2 }
 0x3ce   : > { %s1007_s18 = sand.u32 (!%p1161_p8), 1, %s1296_s24  }
 0x3cf   : > { %994 = sbr.rel (%p1161_p8) target bundleno = 989 (0x3dd), region = 56  ;;  %s1008_s17 = scalar_lea.sflag (!%p1161_p8), [#allocation4], %s1007_s18 }
 0x3d6   : > { %1287 = dma.done.wait (%p1399_p6), %s1008_s17, 16  }
 0x3d7   : > { %1289 = vsyncadd (%p1399_p6), %s1008_s17, 4294967280  ;;  %s1732_s29 = sadd.s32 4294967294, %s1308_s27  }
 0x3d8   : > { %s1016_s11 = sand.u32 1, %s1732_s29  }
 0x3d9   : > { %s1017_s13 = scalar_lea.sflag [#allocation6], %s1016_s11 }
 0x3da   : > { %1291 = dma.done.wait (%p1399_p6), %s1017_s13, 32  }
 0x3db   : > { %1293 = vsyncadd (%p1399_p6), %s1017_s13, 4294967264 }
 0x3dc   : > { %1031 = sfence }
 0x3dd PF: > { %p21_p5 = scmp.ge.s32.totalorder %s1380_s30, 4   ;;  %s1733_s24 = smov %s1300_s25 }
 0x3de   : > { %s1734_s25 = smov %s1304_s26  ;;  %s1735_s26 = smov %s1393_s10 }
 0x3df   : > { %s1736_s27 = smov %s1380_s30  ;;  %23 = sbr.rel (!%p21_p5) target bundleno = 5 (0x5), region = 120 }
 0x3e6   :  { %1032 = vsyncpa [#allocation4], 1 }
 0x3e7   :  { %1034 = vsyncpa [#allocation4 + $0x1], 1 }
 0x3e8   :  { %1035 = vsyncpa [#allocation6], 1 }
 0x3e9   :  { %1037 = vsyncpa [#allocation6 + $0x1], 1 }

// kernel: forward.5
= control target key start
LH: loop header
LB: loop body
LE: loop exit
PB: predicated region body
PF: predicated region fallthrough
CT: control target
= control target key end

     0   :  { %s2440_s0 = inlined_call_operand.vmem [shape: bf16[2,2,16,512], index: 0, kind: input, shape index: {}]   ;;  %s2441_s1 = inlined_call_operand.vmem [shape: bf16[16,144], index: 1, kind: input, shape index: {}]   ;;  %s2442_s2 = inlined_call_operand.vmem [shape: f32[16,1], index: 2, kind: input, shape index: {}]   ;;  %s2443_s3 = inlined_call_operand.vmem [shape: f32[2,256], index: 3, kind: input, shape index: {}]   ;;  %s2444_s4 = inlined_call_operand.hbm [shape: bf16[2,2,16,512], index: 4, kind: output, shape index: {0}]   ;;  %s2445_s5 = inlined_call_operand.vmem [shape: f32[2,1,1], index: 5, kind: output, shape index: {1}]   ;;  %s2446_s6 = inlined_call_operand.vmem [shape: f32[2,1,1], index: 6, kind: output, shape index: {2}]   ;;  %s2447_s7 = inlined_call_operand.hbm [shape: f32[2,1,1], index: 7, kind: output, shape index: {3}]  }
   0x1   :  { %2451 = sst [smem:[#allocation15_spill]] %s2440_s0 }
   0x2   :  { %2452 = sst [smem:[#allocation16_spill]] %s2441_s1 }
   0x3   :  { %2453 = sst [smem:[#allocation17_spill]] %s2442_s2 }
   0x4   :  { %13 = vsyncpa [#allocation4], 0 }
   0x5   :  { %15 = vsyncpa [#allocation4 + $0x1], 0 }
   0x6   :  { %16 = vsyncpa [#allocation6], 0 }
   0x7   :  { %18 = vsyncpa [#allocation6 + $0x1], 0 }
   0x8   :  { %19 = vsyncpa [#allocation9], 0 }
   0x9   :  { %21 = vsyncpa [#allocation9 + $0x1], 0 }
   0xa   :  { %22 = vsyncpa [#allocation5], 0 }
   0xb   :  { %24 = vsyncpa [#allocation5 + $0x1], 0  ;;  %s1855_s24 = smov 0   ;;  %s1857_s25 = smov 0  }
   0xc   :  { %s1859_s26 = smov 0   ;;  %s1861_s27 = smov 0  }
   0xd LB: > { %s1876_s28 = sadd.s32 4294967295, %s1805_s27   ;;  %s1396_s29 = sadd.s32 4294967294, %s1805_s27   ;;  %s1805_s27 = sphi %s1861_s27, %s2464_s27   ;;  %s1801_s26 = sphi %s1859_s26, %s2463_s26   ;;  %s1797_s25 = sphi %s1857_s25, %s2462_s25   ;;  %s1793_s24 = sphi %s1855_s24, %s2461_s24  }
   0xe   : > { %s1880_s30 = sadd.s32 1, %s1805_s27   ;;  %s126_s8 = sadd.s32 1, %s1801_s26 }
   0xf   : > { %s123_s9 = ssub.s32 %s1805_s27, %s1880_s30  ;;  %p136_p0 = scmp.ne.s32.totalorder %s1801_s26, %s1797_s25 }
  0x10   : > { %p124_p1 = scmp.eq.s32.totalorder %s123_s9, 0  ;;  %p137_p2 = scmp.eq.s32.totalorder %s1876_s28, 1 }
  0x11   : > { %p142_p3 = scmp.ne.s32.totalorder %s1797_s25, %s1793_s24  ;;  %p143_p4 = scmp.eq.s32.totalorder %s1396_s29, 1 }
  0x12   : > { %s1891_s10 = scalar_select %p124_p1, %s1801_s26, %s126_s8  }
  0x13   : > { %p1893_p5 = por %p137_p2, %p136_p0  ;;  %p1897_p6 = por %p143_p4, %p142_p3 }
  0x14   : > { %p1399_p7 = scmp.ge.s32.totalorder %s1805_s27, 1  ;;  %p256_p8 = scmp.lt.s32.totalorder %s1805_s27, 3 }
  0x16   : > { %p257_p9 = pnand %p1399_p7, %p256_p8 }
  0x17   : > { %p303_p10 = scmp.lt.s32.totalorder (!%p257_p9), %s1876_s28, 1  ;;  %s2456_s0 = sld [smem:[#allocation15_spill]] (!%p257_p9)  ;;  %vm340_vm0 = vcmask (!%p257_p9), 130048   ;;  %vm512_vm1 = vcmask (!%p257_p9), 916480  }
  0x18   : > { %260 = sbr.rel (%p257_p9) target bundleno = 986 (0x3da), region = 36  ;;  %s1807_s18 = smov (!%p257_p9), 16  }
  0x19   : > { %s1808_s19 = smov (!%p257_p9), 112   ;;  %s1809_s20 = smov (!%p257_p9), 1  }
  0x1a   : > { %s1810_s21 = smov (!%p257_p9), 127   ;;  %s2457_s1 = sld [smem:[#allocation16_spill]] (!%p257_p9) }
  0x1b   : > { %s2458_s2 = sld [smem:[#allocation17_spill]] (!%p257_p9)  ;;  %s1444_s8 = sshll.u32 (!%p257_p9), %s1876_s28, 10 }
  0x1c   : > { %s2337_s15 = scalar_lea.hbm (!%p257_p9), %s2444_s4, %s1444_s8 }
  0x1f   : > { %s304_s13 = scalar_select %p303_p10, %s1876_s28, 1 }
  0x21   : > { %s1439_s14 = sshll.u32 %s304_s13, 6 }
  0x22   : > { %s1908_s17 = scalar_lea.vmem %s2456_s0, %s1439_s14 }
  0x23   : > { %v314_v0 = vld [vmem:[%s1908_s17 + $0x10] sm:$0xff]  ;;  %v315_v1 = vld [vmem:[%s1908_s17 + $0x18] sm:$0xff]   ;;  %v312_v2 = vld [vmem:[%s1908_s17] sm:$0xff] }
  0x24   : > { %v320_v3 = vunpack.c.h.bf16 %v314_v0  ;;  %v321_v4 = vunpack.c.l.bf16 %v315_v1  ;;  %v319_v5 = vunpack.c.l.bf16 %v314_v0  ;;  %v316_v6 = vunpack.c.l.bf16 %v312_v2  ;;  %v1406_v7 = vld [vmem:[%s1908_s17 + $0x20] sm:$0xff]  ;;  %v313_v8 = vld [vmem:[%s1908_s17 + $0x8] sm:$0xff]   ;;  %v1408_v13 = vld [vmem:[%s1908_s17 + $0x30] sm:$0xff] }
  0x25   : > { %v317_v9 = vunpack.c.h.bf16 %v312_v2  ;;  %v570_v10 = vunpack.c.l.bf16 %v1406_v7  ;;  %v571_v11 = vunpack.c.h.bf16 %v1406_v7  ;;  %v318_v12 = vunpack.c.l.bf16 %v313_v8  ;;  %v1409_v14 = vld [vmem:[%s1908_s17 + $0x38] sm:$0xff]   ;;  %v1407_v16 = vld [vmem:[%s1908_s17 + $0x28] sm:$0xff]  }
  0x26   : > { %v1510_v15 = vpack.i.bf16 %v321_v4, %v320_v3  ;;  %v574_v19 = vunpack.c.h.bf16 %v1408_v13  ;;  %v575_v20 = vunpack.c.l.bf16 %v1409_v14  ;;  %v572_v22 = vunpack.c.l.bf16 %v1407_v16  ;;  %v1921_v24 = vld [vmem:[%s1908_s17 + $0x14] sm:$0xff]  ;;  %v1924_v25 = vld [vmem:[%s1908_s17 + $0x4] sm:$0xff] }
  0x27   : > { %v1500_v17 = vpack.i.bf16 %v317_v9, %v316_v6  ;;  %v1515_v18 = vpack.i.bf16 %v571_v11, %v570_v10  ;;  %v1505_v21 = vpack.i.bf16 %v319_v5, %v318_v12  ;;  %v573_v23 = vunpack.c.l.bf16 %v1408_v13  ;;  %v1932_v32 = vld [vmem:[%s1908_s17 + $0x24] sm:$0xff]  ;;  %v1939_v37 = vld [vmem:[%s1908_s17 + $0x34] sm:$0xff] }
  0x28   : > { %1511 = vrot.lane.b32.xlu1 %v1510_v15, %s1807_s18  ;;  %v1525_v26 = vpack.i.bf16 %v575_v20, %v574_v19  ;;  %v490_v27 = vunpack.c.h.bf16 %v313_v8  ;;  %v491_v28 = vunpack.c.l.bf16 %v1921_v24  ;;  %v488_v30 = vunpack.c.l.bf16 %v1924_v25 }
  0x29   : > { %1501 = vrot.lane.b32.xlu0 %v1500_v17, %s1807_s18  ;;  %v1520_v29 = vpack.i.bf16 %v573_v23, %v572_v22  ;;  %v489_v31 = vunpack.c.h.bf16 %v1924_v25  ;;  %v492_v33 = vunpack.c.h.bf16 %v1921_v24  ;;  %v700_v35 = vunpack.c.l.bf16 %v1932_v32 }
  0x2a   : > { %v1535_v34 = vpack.i.bf16 %v491_v28, %v490_v27  ;;  %v701_v36 = vunpack.c.h.bf16 %v1932_v32  ;;  %v493_v39 = vunpack.c.h.bf16 %v315_v1  ;;  %v704_v41 = vunpack.c.h.bf16 %v1939_v37 }
  0x2b   : > { %v1530_v38 = vpack.i.bf16 %v489_v31, %v488_v30  ;;  %v1942_v40 = vpack.i.bf16 %v492_v33, %v489_v31  ;;  %v705_v43 = vunpack.c.h.bf16 %v1409_v14  ;;  %v1945_v44 = vpack.i.bf16 %v491_v28, %v488_v30 }
  0x2c   : > { %1516 = vrot.lane.b32.xlu1 %v1515_v18, %s1807_s18  ;;  %v1545_v42 = vpack.i.bf16 %v701_v36, %v700_v35  ;;  %v1540_v45 = vpack.i.bf16 %v493_v39, %v492_v33  ;;  %v702_v46 = vunpack.c.h.bf16 %v1407_v16  ;;  %v703_v47 = vunpack.c.l.bf16 %v1939_v37 }
  0x2d   : > { %1506 = vrot.lane.b32.xlu0 %v1505_v21, %s1807_s18  ;;  %v1948_v48 = vpack.i.bf16 %v704_v41, %v701_v36  ;;  %v1555_v49 = vpack.i.bf16 %v705_v43, %v704_v41 }
  0x2e   : > { %v1950_v50 = vpack.i.bf16 %v703_v47, %v700_v35  ;;  %v1550_v51 = vpack.i.bf16 %v703_v47, %v702_v46 }
  0x30   : > { %1526 = vrot.lane.b32.xlu1 %v1525_v26, %s1807_s18 }
  0x31   : > { %1521 = vrot.lane.b32.xlu0 %v1520_v29, %s1807_s18 }
  0x34   : > { %1536 = vrot.lane.b32.xlu1 %v1535_v34, %s1808_s19 }
  0x35   : > { %1531 = vrot.lane.b32.xlu0 %v1530_v38, %s1808_s19 }
  0x38   : > { %1546 = vrot.lane.b32.xlu1 %v1545_v42, %s1808_s19 }
  0x39   : > { %1541 = vrot.lane.b32.xlu0 %v1540_v45, %s1808_s19 }
  0x3c   : > { %1556 = vrot.lane.b32.xlu1 %v1555_v49, %s1808_s19 }
  0x3d   : > { %1551 = vrot.lane.b32.xlu0 %v1550_v51, %s1808_s19  ;;  %s2299_s19 = sand.u32 1, %s1797_s25  }
  0x3e   : > { %s2325_s22 = sshll.u32 %s2299_s19, 7  ;;  %s1176_s16 = scalar_lea.sflag [#allocation4], %s2299_s19 }
  0x3f   : > { %s2450_s29 = scalar_lea.smem [#allocation7], %s2325_s22 }
  0x40   : > { %1566 = vrot.lane.b32.xlu1 %v1942_v40, %s1809_s20 }
  0x41   : > { %1561 = vrot.lane.b32.xlu0 %v1945_v44, %s1809_s20 }
  0x44   : > { %1576 = vrot.lane.b32.xlu1 %v1948_v48, %s1809_s20 }
  0x45   : > { %1571 = vrot.lane.b32.xlu0 %v1950_v50, %s1809_s20 }
  0x9a   : > { %v1512_v52 = vpop.permute.xlu1 %1511 }
  0x9b   : > { %v1502_v53 = vpop.permute.xlu0 %1501  ;;  %v1514_v54 = vunpack.i.h.bf16 %v1512_v52  ;;  %v1513_v55 = vunpack.i.l.bf16 %v1512_v52 }
  0x9c   : > { %v1504_v56 = vunpack.i.h.bf16 %v1502_v53  ;;  %v1503_v57 = vunpack.i.l.bf16 %v1502_v53 }
  0x9d   : > { %v1961_v62 = vsel %vm340_vm0, %v1513_v55, %v1514_v54 }
  0x9e   : > { %v1517_v58 = vpop.permute.xlu1 %1516  ;;  %v1964_v63 = vsel %vm340_vm0, %v1503_v57, %v1504_v56 }
  0x9f   : > { %v1507_v59 = vpop.permute.xlu0 %1506  ;;  %v1519_v0 = vunpack.i.h.bf16 %v1517_v58  ;;  %v1518_v1 = vunpack.i.l.bf16 %v1517_v58 }
  0xa0   : > { %v1509_v60 = vunpack.i.h.bf16 %v1507_v59  ;;  %v1508_v61 = vunpack.i.l.bf16 %v1507_v59 }
  0xa1   : > { %v1989_v16 = vsel %vm340_vm0, %v1518_v1, %v1519_v0  ;;  %v886_v1 = vld [vmem:[%s2458_s2] sm:$0xff] }
  0xa2   : > { %v1527_v2 = vpop.permute.xlu1 %1526  ;;  %v1967_v3 = vsel %vm340_vm0, %v1504_v56, %v1508_v61  ;;  %v1970_v4 = vsel %vm340_vm0, %v1509_v60, %v1513_v55 }
  0xa3   : > { %v1529_v5 = vunpack.i.h.bf16 %v1527_v2  ;;  %v1528_v6 = vunpack.i.l.bf16 %v1527_v2  ;;  %v1522_v7 = vpop.permute.xlu0 %1521  ;;  %v1585_v8 = vpack.i.bf16 %v1961_v62, %v1967_v3  ;;  %v1580_v9 = vpack.i.bf16 %v1970_v4, %v1964_v63 }
  0xa4   : > { %v1524_v10 = vunpack.i.h.bf16 %v1522_v7  ;;  %v1523_v11 = vunpack.i.l.bf16 %v1522_v7  ;;  %v855_v13 = vpack.c.bf16 %v1961_v62, %v1967_v3  ;;  %v854_v14 = vpack.c.bf16 %v1970_v4, %v1964_v63  ;;  %v311_v7 = vld [vmem:[%s2443_s3] sm:$0xf] }
  0xa5   : > { %1586 = vrot.lane.b32.xlu1 %v1585_v8, %s1809_s20  ;;  %1581 = vrot.lane.b32.xlu0 %v1580_v9, %s1809_s20  ;;  %v1979_v12 = vsel %vm340_vm0, %v1528_v6, %v1529_v5  ;;  %v357_v2 = vlaneseq }
  0xa6   : > { %v1986_v15 = vsel %vm340_vm0, %v1519_v0, %v1523_v11  ;;  %v1992_v17 = vsel %vm340_vm0, %v1524_v10, %v1528_v6  ;;  %v1537_v18 = vpop.permute.xlu1 %1536  ;;  %v887_v0 = vld [vmem:[%s2458_s2 + $0x8] sm:$0xff] }
  0xa7   : > { %v1595_v19 = vpack.i.bf16 %v1979_v12, %v1986_v15  ;;  %v1590_v20 = vpack.i.bf16 %v1992_v17, %v1989_v16  ;;  %v1532_v21 = vpop.permute.xlu0 %1531  ;;  %v1538_v22 = vunpack.i.l.bf16 %v1537_v18  ;;  %v857_v27 = vpack.c.bf16 %v1979_v12, %v1986_v15 }
  0xa8   : > { %v1534_v23 = vunpack.i.h.bf16 %v1532_v21  ;;  %v1533_v26 = vunpack.i.l.bf16 %v1532_v21  ;;  %v856_v28 = vpack.c.bf16 %v1992_v17, %v1989_v16  ;;  %v1539_v29 = vunpack.i.h.bf16 %v1537_v18 }
  0xa9   : > { %1596 = vrot.lane.b32.xlu1 %v1595_v19, %s1809_s20  ;;  %1591 = vrot.lane.b32.xlu0 %v1590_v20, %s1809_s20  ;;  %v366_v5 = vshrl.u32 %v357_v2, 7 }
  0xaa   : > { %v1547_v30 = vpop.permute.xlu1 %1546  ;;  %v2007_v35 = vsel %vm512_vm1, %v1534_v23, %v1538_v22  ;;  %v2010_v36 = vsel %vm512_vm1, %v1533_v26, %v1534_v23 }
  0xab   : > { %v1542_v31 = vpop.permute.xlu0 %1541  ;;  %v1549_v38 = vunpack.i.h.bf16 %v1547_v30  ;;  %v1548_v39 = vunpack.i.l.bf16 %v1547_v30  ;;  %v371_v6 = vsub.s32 2, %v366_v5  ;;  %v367_v11 = vsub.s32 0, %v366_v5 }
  0xac   : > { %v1544_v33 = vunpack.i.h.bf16 %v1542_v31  ;;  %v1543_v34 = vunpack.i.l.bf16 %v1542_v31 }
  0xad   : > { %1606 = vrot.lane.b32.xlu1 %v1585_v8, %s1810_s21  ;;  %1601 = vrot.lane.b32.xlu0 %v1580_v9, %s1810_s21  ;;  %v2031_v56 = vsel %vm512_vm1, %v1548_v39, %v1549_v38  ;;  %v2080_v9 = vand.u32 127, %v357_v2  ;;  %v372_v18 = vrot.slane %v311_v7, %v371_v6 }
  0xae   : > { %v1557_v41 = vpop.permute.xlu1 %1556  ;;  %v2013_v42 = vsel %vm512_vm1, %v1543_v34, %v1544_v33  ;;  %v2016_v43 = vsel %vm512_vm1, %v1539_v29, %v1543_v34  ;;  %v368_v29 = vrot.slane %v311_v7, %v367_v11 }
  0xaf   : > { %v1559_v45 = vunpack.i.h.bf16 %v1557_v41  ;;  %v1558_v46 = vunpack.i.l.bf16 %v1557_v41  ;;  %v1552_v47 = vpop.permute.xlu0 %1551  ;;  %v879_v52 = vpack.c.bf16 %v2013_v42, %v2007_v35  ;;  %v878_v53 = vpack.c.bf16 %v2016_v43, %v2010_v36 }
  0xb0   : > { %v1554_v49 = vunpack.i.h.bf16 %v1552_v47  ;;  %v1553_v51 = vunpack.i.l.bf16 %v1552_v47  ;;  %v1645_v60 = vpack.i.bf16 %v2013_v42, %v2007_v35  ;;  %vm359_vm2 = vcmp.lt.s32.totalorder %v2080_v9, 1 }
  0xb1   : > { %1621 = vrot.lane.b32.xlu1 %v1595_v19, %s1810_s21  ;;  %1611 = vrot.lane.b32.xlu0 %v1590_v20, %s1810_s21  ;;  %v2028_v55 = vsel %vm512_vm1, %v1558_v46, %v1559_v45  ;;  %v410_v19 = vsub.s32 1, %v366_v5  ;;  %v414_v20 = vsub.s32 3, %v366_v5  ;;  %v2083_v33 = vrot.slane %v372_v18, %v367_v11 }
  0xb2   : > { %v2025_v54 = vsel %vm512_vm1, %v1549_v38, %v1553_v51  ;;  %v2034_v57 = vsel %vm512_vm1, %v1554_v49, %v1558_v46  ;;  %v1567_v8 = vpop.permute.xlu1 %1566  ;;  %v2089_v45 = vrot.slane %v368_v29, %v367_v11  ;;  %vm403_vm3 = vcmp.lt.s32.totalorder %v2080_v9, 127 }
  0xb3   : > { %v881_v58 = vpack.c.bf16 %v2028_v55, %v2025_v54  ;;  %v880_v59 = vpack.c.bf16 %v2034_v57, %v2031_v56  ;;  %v1650_v61 = vpack.i.bf16 %v2034_v57, %v2031_v56  ;;  %v1562_v10 = vpop.permute.xlu0 %1561  ;;  %v1569_v21 = vunpack.i.h.bf16 %v1567_v8 }
  0xb4   : > { %v1568_v22 = vunpack.i.l.bf16 %v1567_v8  ;;  %v1564_v23 = vunpack.i.h.bf16 %v1562_v10  ;;  %v1563_v26 = vunpack.i.l.bf16 %v1562_v10  ;;  %v415_v39 = vrot.slane %v311_v7, %v414_v20 }
  0xb5   : > { %1626 = vrot.lane.b32.xlu1 %v1942_v40, %s1810_s21  ;;  %1616 = vrot.lane.b32.xlu0 %v1945_v44, %s1810_s21  ;;  %v1640_v40 = vpack.i.bf16 %v2016_v43, %v2010_v36  ;;  %v1655_v44 = vpack.i.bf16 %v2028_v55, %v2025_v54  ;;  %v411_v41 = vrot.slane %v311_v7, %v410_v19  ;;  %v1686_v43 = vld [vmem:[%s2457_s1] ss:$8 sps:$4 sm:$0xff]  }
  0xb6   : > { %v1577_v30 = vpop.permute.xlu1 %1576  ;;  %v449_v34 = vsel %vm359_vm2, %v1564_v23, %v1569_v21  ;;  %v448_v38 = vsel %vm359_vm2, %v1563_v26, %v1568_v22  ;;  %v450_v46 = vsel %vm359_vm2, %v1568_v22, %v1563_v26  ;;  %v1445_v7 = vcombine.low %v1924_v25, %v1921_v24 }
  0xb7   : > { %v1572_v31 = vpop.permute.xlu0 %1571  ;;  %v1579_v47 = vunpack.i.h.bf16 %v1577_v30  ;;  %v2094_v51 = vmul.f32 %v448_v38, %v2083_v33  ;;  %v2109_v6 = vmul.f32 %v450_v46, %v2089_v45 }
  0xb8   : > { %v1574_v49 = vunpack.i.h.bf16 %v1572_v31 }
  0xb9   : > { %1636 = vrot.lane.b32.xlu1 %v1948_v48, %s1810_s21  ;;  %1631 = vrot.lane.b32.xlu0 %v1950_v50, %s1810_s21  ;;  %v1688_v48 = vld [vmem:[%s2457_s1 + $0x4] ss:$8 sps:$4 sm:$0xff]   ;;  %v2448_v50 = vmov 0  }
  0xba   : > { %1418 = vmatprep.mubr.msk.bf16.mxu0 %vm340_vm0, %v1688_v48  ;;  %1419 = vmatprep.mubr.msk.bf16.mxu1 %vm340_vm0, %v1688_v48  ;;  %v1446_v48 = vcombine.high %v1924_v25, %v1921_v24  ;;  %v2119_v20 = vsel %vm359_vm2, %v1579_v47, %v1574_v49 }
  0xbb   : > { %1681 = vset.pattern.permute.xlu1 %v2448_v50  ;;  %1680 = vset.pattern.permute.xlu0 %v2448_v50 }
  0xbd   : > { %1646 = vrot.lane.b32.xlu1 %v1645_v60, %s1809_s20  ;;  %1641 = vrot.lane.b32.xlu0 %v1640_v40, %s1809_s20 }
  0xc1   : > { %1656 = vrot.lane.b32.xlu1 %v1655_v44, %s1809_s20  ;;  %1651 = vrot.lane.b32.xlu0 %v1650_v61, %s1809_s20  ;;  %s1400_s20 = sshll.u32 %s2299_s19, 6 }
  0xc5   : > { %1666 = vrot.lane.b32.xlu1 %v1645_v60, %s1810_s21  ;;  %1661 = vrot.lane.b32.xlu0 %v1640_v40, %s1810_s21  ;;  %v2097_v60 = vmul.f32 %v449_v34, %v2083_v33  ;;  %v451_v40 = vsel %vm359_vm2, %v1569_v21, %v1564_v23 }
  0xc6   : > { %v2124_v22 = vmul.f32 %v451_v40, %v2089_v45 }
  0xc7   : > { %v863_v21 = vpack.c.bf16 %v2097_v60, %v2094_v51 }
  0xc9   : > { %1676 = vrot.lane.b32.xlu1 %v1655_v44, %s1810_s21  ;;  %1671 = vrot.lane.b32.xlu0 %v1650_v61, %s1810_s21  ;;  %v2101_v44 = vrot.slane %v415_v39, %v410_v19  ;;  %v2103_v61 = vrot.slane %v411_v41, %v410_v19  ;;  %v2115_v19 = vsel %vm359_vm2, %v1574_v49, %v1579_v47  ;;  %s2302_s21 = scalar_lea.vmem [#allocation3], %s1400_s20  ;;  %s1812_s20 = smov [#allocation3]  }
  0xca   : > { %s1204_s9 = sshll.u32 %s2302_s21, 4  ;;  %s2339_s9 = int_to_ptr.vmem [resolvable:$true] %s1204_s9 }
  0xcb   : > { %s1689_s17 = scalar_lea.vmem %s2339_s9, 1024 }
  0xcc   : > { %p1690_p11 = scmp.ne.s32.totalorder %s2339_s9, %s1689_s17 }
  0xcd   : > { %895 = vperm.xlu1 %1681, %v887_v0   ;;  %890 = vperm.xlu0 %1680, %v886_v1   ;;  %v1578_v0 = vunpack.i.l.bf16 %v1577_v30  ;;  %v1573_v1 = vunpack.i.l.bf16 %v1572_v31 }
  0xce   : > { %p1691_p12 = pnand %p1690_p11, %p1893_p5 }
  0xd0   : > { %p1692_p13 = pneg %p1691_p12 }
 0x117   : > { %v1587_v2 = vpop.permute.xlu1 %1586  ;;  %v1582_v5 = vpop.permute.xlu0 %1581 }
 0x118   : > { %v1589_v8 = vunpack.i.h.bf16 %v1587_v2  ;;  %v1588_v10 = vunpack.i.l.bf16 %v1587_v2  ;;  %v1584_v11 = vunpack.i.h.bf16 %v1582_v5  ;;  %v1583_v18 = vunpack.i.l.bf16 %v1582_v5 }
 0x119   : > { %v660_v5 = vsel %vm359_vm2, %v1573_v1, %v1578_v0 }
 0x11a   : > { %v360_v23 = vsel %vm359_vm2, %v1583_v18, %v1588_v10  ;;  %v361_v26 = vsel %vm359_vm2, %v1584_v11, %v1589_v8  ;;  %v362_v29 = vsel %vm359_vm2, %v1588_v10, %v1583_v18  ;;  %v363_v30 = vsel %vm359_vm2, %v1589_v8, %v1584_v11 }
 0x11b   : > { %v1597_v31 = vpop.permute.xlu1 %1596  ;;  %v1592_v34 = vpop.permute.xlu0 %1591  ;;  %v384_v38 = vmul.f32 %v2083_v33, %v360_v23  ;;  %v386_v39 = vmul.f32 %v2083_v33, %v361_v26  ;;  %v383_v41 = vmul.f32 %v2089_v45, %v362_v29  ;;  %v385_v46 = vmul.f32 %v2089_v45, %v363_v30 }
 0x11c   : > { %v1599_v47 = vunpack.i.h.bf16 %v1597_v31  ;;  %v1598_v49 = vunpack.i.l.bf16 %v1597_v31  ;;  %v1594_v40 = vunpack.i.h.bf16 %v1592_v34  ;;  %v1593_v2 = vunpack.i.l.bf16 %v1592_v34 }
 0x11d   : > { %v662_v8 = vsel %vm359_vm2, %v1578_v0, %v1573_v1  ;;  %v851_v10 = vpack.c.bf16 %v386_v39, %v384_v38  ;;  %v850_v11 = vpack.c.bf16 %v385_v46, %v383_v41 }
 0x11e   : > { %v610_v18 = vsel %vm359_vm2, %v1593_v2, %v1598_v49  ;;  %v611_v23 = vsel %vm359_vm2, %v1594_v40, %v1599_v47  ;;  %v612_v26 = vsel %vm359_vm2, %v1598_v49, %v1593_v2  ;;  %v613_v29 = vsel %vm359_vm2, %v1599_v47, %v1594_v40 }
 0x11f   : > { %v1607_v30 = vpop.permute.xlu1 %1606  ;;  %v1602_v31 = vpop.permute.xlu0 %1601  ;;  %910 = vmatprep.subr.bf16.mxu0 %v851_v10  ;;  %v615_v34 = vmul.f32 %v610_v18, %v2083_v33  ;;  %v617_v0 = vmul.f32 %v611_v23, %v2083_v33  ;;  %v614_v1 = vmul.f32 %v612_v26, %v2089_v45  ;;  %v616_v38 = vmul.f32 %v613_v29, %v2089_v45 }
 0x120   : > { %v1609_v39 = vunpack.i.h.bf16 %v1607_v30  ;;  %v1608_v41 = vunpack.i.l.bf16 %v1607_v30  ;;  %v1604_v46 = vunpack.i.h.bf16 %v1602_v31  ;;  %v1603_v50 = vunpack.i.l.bf16 %v1602_v31  ;;  %911 = vmatpush1.bf16.msra.mxu0 %v850_v11 }
 0x121   : > { %912 = vmatprep.subr.bf16.mxu0 %v855_v13  ;;  %v853_v47 = vpack.c.bf16 %v617_v0, %v615_v34  ;;  %v852_v49 = vpack.c.bf16 %v616_v38, %v614_v1  ;;  %v862_v40 = vpack.c.bf16 %v2124_v22, %v2109_v6  ;;  %v665_v2 = vmul.f32 %v660_v5, %v2083_v33 }
 0x122   : > { %v405_v10 = vsel %vm403_vm3, %v1604_v46, %v1609_v39  ;;  %v407_v18 = vsel %vm403_vm3, %v1609_v39, %v1604_v46  ;;  %v404_v11 = vsel %vm403_vm3, %v1603_v50, %v1608_v41  ;;  %v406_v62 = vsel %vm403_vm3, %v1608_v41, %v1603_v50 }
 0x123   : > { %v1622_v3 = vpop.permute.xlu1 %1621  ;;  %v1612_v13 = vpop.permute.xlu0 %1611  ;;  %953 = vmatprep.subr.bf16.mxu1 %v853_v47  ;;  %v427_v23 = vmul.f32 %v2101_v44, %v406_v62  ;;  %v429_v6 = vmul.f32 %v2101_v44, %v407_v18  ;;  %v426_v22 = vmul.f32 %v2103_v61, %v404_v11  ;;  %v428_v5 = vmul.f32 %v2103_v61, %v405_v10 }
 0x124   : > { %v1624_v26 = vunpack.i.h.bf16 %v1622_v3  ;;  %v1623_v29 = vunpack.i.l.bf16 %v1622_v3  ;;  %v1614_v30 = vunpack.i.h.bf16 %v1612_v13  ;;  %v1613_v31 = vunpack.i.l.bf16 %v1612_v13  ;;  %913 = vmatpush1.bf16.msra.mxu0 %v854_v14  ;;  %954 = vmatpush1.bf16.msra.mxu1 %v852_v49 }
 0x125   : > { %955 = vmatprep.subr.bf16.mxu1 %v857_v27  ;;  %v859_v50 = vpack.c.bf16 %v429_v6, %v427_v23  ;;  %v858_v34 = vpack.c.bf16 %v428_v5, %v426_v22  ;;  %v667_v0 = vmul.f32 %v2115_v19, %v2083_v33  ;;  %v664_v1 = vmul.f32 %v662_v8, %v2089_v45 }
 0x126   : > { %v635_v38 = vsel %vm403_vm3, %v1614_v30, %v1624_v26  ;;  %v637_v39 = vsel %vm403_vm3, %v1624_v26, %v1614_v30  ;;  %v634_v63 = vsel %vm403_vm3, %v1613_v31, %v1623_v29  ;;  %v636_v4 = vsel %vm403_vm3, %v1623_v29, %v1613_v31 }
 0x127   : > { %v1627_v12 = vpop.permute.xlu1 %1626  ;;  %v1617_v14 = vpop.permute.xlu0 %1616  ;;  %914 = vmatprep.subr.bf16.mxu0 %v859_v50  ;;  %v639_v15 = vmul.f32 %v636_v4, %v2101_v44  ;;  %v641_v27 = vmul.f32 %v637_v39, %v2101_v44  ;;  %v638_v19 = vmul.f32 %v634_v63, %v2103_v61  ;;  %v640_v8 = vmul.f32 %v635_v38, %v2103_v61 }
 0x128   : > { %v1629_v41 = vunpack.i.h.bf16 %v1627_v12  ;;  %v1628_v46 = vunpack.i.l.bf16 %v1627_v12  ;;  %v1619_v47 = vunpack.i.h.bf16 %v1617_v14  ;;  %v1618_v49 = vunpack.i.l.bf16 %v1617_v14  ;;  %915 = vmatpush1.bf16.msra.mxu0 %v858_v34  ;;  %956 = vmatpush1.bf16.msra.mxu1 %v856_v28 }
 0x129   : > { %916 = vmatprep.subr.bf16.mxu0 %v863_v21  ;;  %v861_v10 = vpack.c.bf16 %v641_v27, %v639_v15  ;;  %v860_v18 = vpack.c.bf16 %v640_v8, %v638_v19  ;;  %v865_v11 = vpack.c.bf16 %v667_v0, %v665_v2  ;;  %v666_v62 = vmul.f32 %v2119_v20, %v2089_v45 }
 0x12a   : > { %v473_v3 = vsel %vm403_vm3, %v1619_v47, %v1629_v41  ;;  %v475_v13 = vsel %vm403_vm3, %v1629_v41, %v1619_v47  ;;  %v472_v16 = vsel %vm403_vm3, %v1618_v49, %v1628_v46  ;;  %v474_v17 = vsel %vm403_vm3, %v1628_v46, %v1618_v49 }
 0x12b   : > { %v1637_v28 = vpop.permute.xlu1 %1636  ;;  %v1632_v51 = vpop.permute.xlu0 %1631  ;;  %957 = vmatprep.subr.bf16.mxu1 %v861_v10  ;;  %v477_v60 = vmul.f32 %v474_v17, %v2101_v44  ;;  %v479_v21 = vmul.f32 %v475_v13, %v2101_v44  ;;  %v476_v20 = vmul.f32 %v472_v16, %v2103_v61  ;;  %v478_v2 = vmul.f32 %v473_v3, %v2103_v61 }
 0x12c   : > { %v1639_v23 = vunpack.i.h.bf16 %v1637_v28  ;;  %v1638_v6 = vunpack.i.l.bf16 %v1637_v28  ;;  %v1634_v22 = vunpack.i.h.bf16 %v1632_v51  ;;  %v1633_v5 = vunpack.i.l.bf16 %v1632_v51  ;;  %917 = vmatpush1.bf16.msra.mxu0 %v862_v40  ;;  %958 = vmatpush1.bf16.msra.mxu1 %v860_v18 }
 0x12d   : > { %959 = vmatprep.subr.bf16.mxu1 %v865_v11  ;;  %918 = vmatprep.subr.bf16.mxu0 %v1446_v48  ;;  %v864_v26 = vpack.c.bf16 %v666_v62, %v664_v1  ;;  %v1448_v29 = vcombine.high %v1932_v32, %v1939_v37  ;;  %v1447_v30 = vcombine.low %v1932_v32, %v1939_v37 }
 0x12e   : > { %v685_v31 = vsel %vm403_vm3, %v1634_v22, %v1639_v23  ;;  %v687_v50 = vsel %vm403_vm3, %v1639_v23, %v1634_v22  ;;  %v684_v40 = vsel %vm403_vm3, %v1633_v5, %v1638_v6  ;;  %v686_v34 = vsel %vm403_vm3, %v1638_v6, %v1633_v5 }
 0x12f   : > { %v1647_v48 = vpop.permute.xlu1 %1646  ;;  %v1642_v0 = vpop.permute.xlu0 %1641  ;;  %v871_v1 = vpack.c.bf16 %v479_v21, %v477_v60  ;;  %v870_v38 = vpack.c.bf16 %v478_v2, %v476_v20  ;;  %v689_v39 = vmul.f32 %v686_v34, %v2101_v44  ;;  %v691_v32 = vmul.f32 %v687_v50, %v2101_v44 }
 0x130   : > { %v1649_v37 = vunpack.i.h.bf16 %v1647_v48  ;;  %v1648_v63 = vunpack.i.l.bf16 %v1647_v48  ;;  %v1644_v4 = vunpack.i.h.bf16 %v1642_v0  ;;  %v1643_v12 = vunpack.i.l.bf16 %v1642_v0  ;;  %919 = vmatpush1.bf16.msra.mxu0 %v1445_v7  ;;  %960 = vmatpush1.bf16.msra.mxu1 %v864_v26 }
 0x131   : > { %920 = vmatprep.subr.bf16.mxu0 %v871_v1  ;;  %961 = vmatprep.subr.bf16.mxu1 %v1448_v29  ;;  %v873_v14 = vpack.c.bf16 %v691_v32, %v689_v39  ;;  %v688_v15 = vmul.f32 %v684_v40, %v2103_v61  ;;  %v690_v27 = vmul.f32 %v685_v31, %v2103_v61 }
 0x132   : > { %v530_v19 = vsel %vm359_vm2, %v1644_v4, %v1649_v37  ;;  %v532_v8 = vsel %vm359_vm2, %v1649_v37, %v1644_v4  ;;  %v529_v41 = vsel %vm359_vm2, %v1643_v12, %v1648_v63  ;;  %v531_v24 = vsel %vm359_vm2, %v1648_v63, %v1643_v12 }
 0x133   : > { %v1657_v25 = vpop.permute.xlu1 %1656  ;;  %v1652_v7 = vpop.permute.xlu0 %1651  ;;  %v534_v46 = vmul.f32 %v529_v41, %v2083_v33  ;;  %v536_v47 = vmul.f32 %v530_v19, %v2083_v33  ;;  %v533_v49 = vmul.f32 %v531_v24, %v2089_v45  ;;  %v535_v10 = vmul.f32 %v532_v8, %v2089_v45 }
 0x134   : > { %v1659_v18 = vunpack.i.h.bf16 %v1657_v25  ;;  %v1658_v11 = vunpack.i.l.bf16 %v1657_v25  ;;  %v1654_v62 = vunpack.i.h.bf16 %v1652_v7  ;;  %v1653_v3 = vunpack.i.l.bf16 %v1652_v7  ;;  %921 = vmatpush1.bf16.msra.mxu0 %v870_v38  ;;  %962 = vmatpush1.bf16.msra.mxu1 %v1447_v30 }
 0x135   : > { %963 = vmatprep.subr.bf16.mxu1 %v873_v14  ;;  %v875_v13 = vpack.c.bf16 %v536_v47, %v534_v46  ;;  %v874_v16 = vpack.c.bf16 %v535_v10, %v533_v49  ;;  %v872_v17 = vpack.c.bf16 %v690_v27, %v688_v15 }
 0x136   : > { %v741_v28 = vsel %vm359_vm2, %v1654_v62, %v1659_v18  ;;  %v743_v51 = vsel %vm359_vm2, %v1659_v18, %v1654_v62  ;;  %v740_v60 = vsel %vm359_vm2, %v1653_v3, %v1658_v11  ;;  %v742_v21 = vsel %vm359_vm2, %v1658_v11, %v1653_v3 }
 0x137   : > { %v1667_v20 = vpop.permute.xlu1 %1666  ;;  %v1662_v2 = vpop.permute.xlu0 %1661  ;;  %922 = vmatprep.subr.bf16.mxu0 %v875_v13  ;;  %v745_v23 = vmul.f32 %v740_v60, %v2083_v33  ;;  %v747_v6 = vmul.f32 %v741_v28, %v2083_v33  ;;  %v744_v22 = vmul.f32 %v742_v21, %v2089_v45  ;;  %v746_v5 = vmul.f32 %v743_v51, %v2089_v45 }
 0x138   : > { %v1669_v26 = vunpack.i.h.bf16 %v1667_v20  ;;  %v1668_v29 = vunpack.i.l.bf16 %v1667_v20  ;;  %v1664_v30 = vunpack.i.h.bf16 %v1662_v2  ;;  %v1663_v31 = vunpack.i.l.bf16 %v1662_v2  ;;  %923 = vmatpush1.bf16.msra.mxu0 %v874_v16  ;;  %964 = vmatpush1.bf16.msra.mxu1 %v872_v17 }
 0x139   : > { %924 = vmatprep.subr.bf16.mxu0 %v879_v52  ;;  %v877_v50 = vpack.c.bf16 %v747_v6, %v745_v23  ;;  %v876_v40 = vpack.c.bf16 %v746_v5, %v744_v22 }
 0x13a   : > { %v554_v34 = vsel %vm403_vm3, %v1664_v30, %v1669_v26  ;;  %v556_v33 = vsel %vm403_vm3, %v1669_v26, %v1664_v30  ;;  %v553_v45 = vsel %vm403_vm3, %v1663_v31, %v1668_v29  ;;  %v555_v48 = vsel %vm403_vm3, %v1668_v29, %v1663_v31 }
 0x13b   : > { %v1677_v0 = vpop.permute.xlu1 %1676  ;;  %v1672_v1 = vpop.permute.xlu0 %1671  ;;  %965 = vmatprep.subr.bf16.mxu1 %v877_v50  ;;  %v558_v35 = vmul.f32 %v555_v48, %v2101_v44  ;;  %v560_v42 = vmul.f32 %v556_v33, %v2101_v44  ;;  %v557_v52 = vmul.f32 %v553_v45, %v2103_v61  ;;  %v559_v38 = vmul.f32 %v554_v34, %v2103_v61 }
 0x13c   : > { %v1679_v39 = vunpack.i.h.bf16 %v1677_v0  ;;  %v1678_v32 = vunpack.i.l.bf16 %v1677_v0  ;;  %v1674_v37 = vunpack.i.h.bf16 %v1672_v1  ;;  %v1673_v63 = vunpack.i.l.bf16 %v1672_v1  ;;  %925 = vmatpush1.bf16.msra.mxu0 %v878_v53  ;;  %966 = vmatpush1.bf16.msra.mxu1 %v876_v40 }
 0x13d   : > { %967 = vmatprep.subr.bf16.mxu1 %v881_v58  ;;  %v883_v4 = vpack.c.bf16 %v560_v42, %v558_v35  ;;  %v882_v12 = vpack.c.bf16 %v559_v38, %v557_v52 }
 0x13e   : > { %v765_v14 = vsel %vm403_vm3, %v1674_v37, %v1679_v39  ;;  %v767_v15 = vsel %vm403_vm3, %v1679_v39, %v1674_v37  ;;  %v764_v27 = vsel %vm403_vm3, %v1673_v63, %v1678_v32  ;;  %v766_v36 = vsel %vm403_vm3, %v1678_v32, %v1673_v63 }
 0x13f   : > { %926 = vmatprep.subr.bf16.mxu0 %v883_v4  ;;  %v769_v53 = vmul.f32 %v766_v36, %v2101_v44  ;;  %v771_v54 = vmul.f32 %v767_v15, %v2101_v44  ;;  %v768_v55 = vmul.f32 %v764_v27, %v2103_v61  ;;  %v770_v58 = vmul.f32 %v765_v14, %v2103_v61 }
 0x140   : > { %927 = vmatpush1.bf16.msra.mxu0 %v882_v12  ;;  %968 = vmatpush1.bf16.msra.mxu1 %v880_v59  ;;  %v2459_v44 = vmov 0  }
 0x141   : > { %v885_v9 = vpack.c.bf16 %v771_v54, %v769_v53  ;;  %v884_v19 = vpack.c.bf16 %v770_v58, %v768_v55  ;;  %1008 = vst [vmem:[%s2302_s21] sm:$0xf] %v2459_v44  ;;  %1009 = vst [vmem:[%s2302_s21 + $0x10] sm:$0xf] %v2459_v44 }
 0x142   : > { %1022 = vst [vmem:[%s2302_s21 + $0xc] sm:$0xf] %v2459_v44  ;;  %1023 = vst [vmem:[%s2302_s21 + $0x1c] sm:$0xf] %v2459_v44 }
 0x143   : > { %943 = vmatmul.mubr.bf16.vlgmr.msra.gmra.mrb[0].mxu0 %v1686_v43  ;;  %969 = vmatprep.subr.bf16.mxu1 %v885_v9  ;;  %1422 = vst [vmem:[%s2302_s21 + $0x20] sm:$0xf] %v2459_v44  ;;  %1423 = vst [vmem:[%s2302_s21 + $0x30] sm:$0xf] %v2459_v44 }
 0x144   : > { %970 = vmatpush1.bf16.msra.mxu1 %v884_v19  ;;  %1428 = vst [vmem:[%s2302_s21 + $0x2c] sm:$0xf] %v2459_v44  ;;  %1429 = vst [vmem:[%s2302_s21 + $0x3c] sm:$0xf] %v2459_v44 }
 0x147   : > { %986 = vmatmul.mubr.bf16.vlgmr.msra.gmra.mrb[0].mxu1 %v1686_v43 }
 0x14c   : > { %v891_v56 = vpop.permute.xlu0 %890  ;;  %v896_v59 = vpop.permute.xlu1 %895 }
 0x216   : > { %v944_v57 = vpop.f32.mrb[0].mxu0 }
 0x217   : > { %v946_v61 = vpop.f32.mrb[1].mxu0  ;;  %v945_v8 = vadd.f32 %v944_v57, %v891_v56 }
 0x218   : > { %v948_v41 = vpop.f32.mrb[2].mxu0  ;;  %v947_v24 = vadd.f32 %v946_v61, %v891_v56 }
 0x219   : > { %v996_v25 = vmax.f32 %v945_v8, 0.0  ;;  %v949_v7 = vadd.f32 %v948_v41, %v896_v59  ;;  %v950_v46 = vpop.f32.mrb[3].mxu0 }
 0x21a   : > { %v951_v47 = vadd.f32 %v950_v46, %v896_v59  ;;  %v997_v49 = vmax.f32 %v947_v24, 0.0  ;;  %v987_v10 = vpop.f32.mrb[0].mxu1 }
 0x21b   : > { %v1000_v18 = vmax.f32 %v949_v7, 0.0  ;;  %v988_v11 = vadd.f32 %v987_v10, %v891_v56  ;;  %v989_v62 = vpop.f32.mrb[1].mxu1 }
 0x21c   : > { %v1001_v3 = vmax.f32 %v951_v47, 0.0  ;;  %v1440_v13 = vpack.c.bf16 %v997_v49, %v996_v25  ;;  %v990_v16 = vadd.f32 %v989_v62, %v891_v56  ;;  %v991_v17 = vpop.f32.mrb[2].mxu1 }
 0x21d   : > { %v1004_v28 = vpack.c.bf16 %v1000_v18, %v996_v25  ;;  %v998_v51 = vmax.f32 %v988_v11, 0.0  ;;  %v992_v60 = vadd.f32 %v991_v17, %v896_v59  ;;  %v993_v21 = vpop.f32.mrb[3].mxu1 }
 0x21e   : > { %v1005_v20 = vpack.c.bf16 %v1001_v3, %v997_v49  ;;  %v1441_v2 = vpack.c.bf16 %v1001_v3, %v1000_v18  ;;  %1020 = vst [vmem:[%s2302_s21 + $0x4] sm:$0xff] %v1440_v13  ;;  %v999_v23 = vmax.f32 %v990_v16, 0.0  ;;  %v994_v6 = vadd.f32 %v993_v21, %v896_v59 }
 0x21f   : > { %v1002_v22 = vmax.f32 %v992_v60, 0.0  ;;  %v1045_v34 = vunpack.c.l.bf16 %v1004_v28  ;;  %v1047_v33 = vunpack.c.h.bf16 %v1004_v28 }
 0x220   : > { %1021 = vst [vmem:[%s2302_s21 + $0x14] sm:$0xff] %v1441_v2  ;;  %v1442_v5 = vpack.c.bf16 %v999_v23, %v998_v51  ;;  %v1003_v26 = vmax.f32 %v994_v6, 0.0  ;;  %1114 = vmatprep.subr.bf16.mxu1 %v1005_v20  ;;  %1146 = vmatprep.mubr.bf16.mxu1 %v1005_v20  ;;  %v1046_v0 = vunpack.c.l.bf16 %v1005_v20  ;;  %v1048_v1 = vunpack.c.h.bf16 %v1005_v20 }
 0x221   : > { %v1006_v29 = vpack.c.bf16 %v1002_v22, %v998_v51  ;;  %1115 = vmatpush1.bf16.xpose.msra.mxu1 %v1004_v28 }
 0x222   : > { %1426 = vst [vmem:[%s2302_s21 + $0x24] sm:$0xff] %v1442_v5  ;;  %v1007_v30 = vpack.c.bf16 %v1003_v26, %v999_v23  ;;  %v1443_v31 = vpack.c.bf16 %v1003_v26, %v1002_v22 }
 0x223   : > { %v1041_v50 = vunpack.c.l.bf16 %v1006_v29  ;;  %v1043_v40 = vunpack.c.h.bf16 %v1006_v29 }
 0x224   : > { %1427 = vst [vmem:[%s2302_s21 + $0x34] sm:$0xff] %v1443_v31  ;;  %1071 = vmatprep.subr.bf16.mxu0 %v1007_v30  ;;  %1103 = vmatprep.mubr.bf16.mxu0 %v1007_v30  ;;  %v1042_v45 = vunpack.c.l.bf16 %v1007_v30  ;;  %v1044_v48 = vunpack.c.h.bf16 %v1007_v30 }
 0x225   : > { %1072 = vmatpush1.bf16.xpose.msra.mxu0 %v1006_v29  ;;  %v1049_v35 = vsub.f32 %v1041_v50, %v1045_v34  ;;  %v1051_v42 = vsub.f32 %v1043_v40, %v1047_v33 }
 0x226   : > { %v1050_v52 = vsub.f32 %v1042_v45, %v1046_v0  ;;  %v1052_v38 = vsub.f32 %v1044_v48, %v1048_v1 }
 0x227   : > { %v1053_v39 = vand.u32 2147483647, %v1049_v35  ;;  %v1055_v37 = vand.u32 2147483647, %v1051_v42 }
 0x228   : > { %1147 = vmatmul.mubr.bf16.vlgmr.msra.gmra.mrb[4].mxu1 %v1004_v28  ;;  %v1054_v32 = vand.u32 2147483647, %v1050_v52  ;;  %v1056_v4 = vand.u32 2147483647, %v1052_v38 }
 0x22a   : > { %v1057_v63 = vadd.f32 %v1054_v32, %v1053_v39 }
 0x22c   : > { %1104 = vmatmul.mubr.bf16.vlgmr.msra.gmra.mrb[4].mxu0 %v1006_v29  ;;  %v1058_v12 = vadd.f32 %v1057_v63, %v1055_v37 }
 0x22e   : > { %v1059_v14 = vadd.f32 %v1058_v12, %v1056_v4 }
 0x230   : > { %1060 = vadd.xlane.f32.xlu1 %v1059_v14 }
 0x2bd   : > { %v1061_v15 = vpop.xlane.xlu1 %1060 }
 0x2be   : > { %v1062_v27 = vrot.slane %v1061_v15, 4 }
 0x2c0   : > { %v1063_v36 = vadd.f32 %v1062_v27, %v1061_v15 }
 0x2c2   : > { %v1064_v43 = vrot.slane %v1063_v36, 2 }
 0x2c4   : > { %v1065_v53 = vadd.f32 %v1064_v43, %v1063_v36 }
 0x2c6   : > { %v1066_v54 = vrot.slane %v1065_v53, 1 }
 0x2c8   : > { %v1067_v55 = vadd.f32 %v1066_v54, %v1065_v53 }
 0x2ca   : > { %1449 = vpush %v1067_v55 }
 0x2fb   : > { %s1450_s23 = spop %1449  ;;  %v1148_v58 = vpop.f32.mrb[4].mxu1 }
 0x2fc   : > { %1070 = sst [smem:[%s2450_s29]] %s1450_s23  ;;  %v1150_v9 = vpop.f32.mrb[5].mxu1  ;;  %v1155_v57 = vmul.f32 0.00024414063, %v1148_v58  ;;  %s1693_s23 = sshll.u32 %s1812_s20, 4  ;;  %s1694_s23 = int_to_ptr.vmem [resolvable:$false] %s1693_s23 }
 0x2fd   : > { %v1151_v19 = vpop.f32.mrb[6].mxu1  ;;  %s1695_s21 = scalar_lea.vmem %s1694_s23, 2048  ;;  %p1696_p0 = scmp.lt.s32.totalorder %s2339_s9, %s1694_s23 }
 0x2fe   : > { %v1153_v44 = vpop.f32.mrb[7].mxu1  ;;  %v1156_v41 = vmul.f32 0.00024414063, %v1151_v19  ;;  %p1697_p1 = scmp.lt.s32.totalorder %s1695_s21, %s1689_s17 }
 0x2ff   : > { %v1105_v56 = vpop.f32.mrb[4].mxu0 }
 0x300   : > { %v1112_v59 = vmul.f32 0.00024414063, %v1105_v56  ;;  %v1107_v61 = vpop.f32.mrb[5].mxu0  ;;  %p1698_p2 = por %p1697_p1, %p1696_p0 }
 0x301   : > { %v1108_v8 = vpop.f32.mrb[6].mxu0 }
 0x302   : > { %v1157_v24 = vsub.f32 %v1112_v59, %v1155_v57  ;;  %v1113_v25 = vmul.f32 0.00024414063, %v1108_v8  ;;  %v1110_v7 = vpop.f32.mrb[7].mxu0  ;;  %p1699_p3 = pnand %p1698_p2, %p1692_p13 }
 0x304   : > { %v1159_v46 = vand.u32 2147483647, %v1157_v24  ;;  %v1158_v47 = vsub.f32 %v1113_v25, %v1156_v41 }
 0x306   : > { %v1160_v49 = vand.u32 2147483647, %v1158_v47  ;;  %v1161_v10 = vsel %vm340_vm0, %v1159_v46, 0.0 }
 0x308   : > { %v1162_v18 = vsel %vm340_vm0, %v1160_v49, 0.0 }
 0x309   : > { %v1163_v11 = vadd.f32 %v1162_v18, %v1161_v10 }
 0x30b   : > { %1164 = vadd.xlane.f32.xlu0 %v1163_v11 }
 0x30c   : > { %1702 = shalt.err (!%p1699_p3)
}
 0x30d   : > { %s1703_s8 = scalar_lea.hbm %s2337_s15, 1024  ;;  %s1707_s20 = scalar_lea.hbm %s2444_s4, 2048 }
 0x30e   : > { %p1704_p4 = scmp.ne.s32.totalorder %s2337_s15, %s1703_s8  ;;  %p1708_p9 = scmp.lt.u32.totalorder %s2337_s15, %s2444_s4 }
 0x30f   : > { %p1709_p10 = scmp.lt.u32.totalorder %s1707_s20, %s1703_s8  ;;  %p1711_p12 = scmp.lt.u32.totalorder %s1703_s8, %s2337_s15 }
 0x310   : > { %p1705_p7 = pnand %p1704_p4, %p1893_p5 }
 0x311   : > { %p1710_p11 = por %p1709_p10, %p1708_p9 }
 0x312   : > { %p1706_p8 = pneg %p1705_p7 }
 0x313   : > { %p1712_p13 = por %p1711_p12, %p1710_p11 }
 0x315   : > { %p1713_p0 = pnand %p1712_p13, %p1706_p8 }
 0x317   : > { %1716 = shalt.err (!%p1713_p0)
}
 0x318   : > { %s1813_s17 = smov 256   ;;  %s1217_s13 = scalar_lea.vmem %s2445_s5, %s1876_s28 }
 0x319   : > { %1453 = dma.vmem_to_hbm [thread:$0]  (%p1893_p5), %s2339_s9, 1024, %s2337_s15, %s1176_s16, %s1813_s17, %s1813_s17, %s1807_s18  }
 0x31a   : > { %s1219_s8 = sshll.u32 %s1217_s13, 4  ;;  %s1181_s14 = scalar_lea.sflag [#allocation6], %s2299_s19  ;;  %s1220_s8 = int_to_ptr.vmem [resolvable:$true] %s1219_s8 }
 0x31b   : > { %s1717_s20 = scalar_lea.vmem %s1220_s8, 16  ;;  %s1721_s1 = sshll.u32 %s2445_s5, 4  ;;  %s1722_s1 = int_to_ptr.vmem [resolvable:$false] %s1721_s1 }
 0x31c   : > { %p1718_p1 = scmp.ne.s32.totalorder %s1220_s8, %s1717_s20  ;;  %s1723_s2 = scalar_lea.vmem %s1722_s1, 32 }
 0x31d   : > { %p1724_p4 = scmp.lt.s32.totalorder %s1220_s8, %s1722_s1  ;;  %p1725_p7 = scmp.lt.s32.totalorder %s1723_s2, %s1717_s20 }
 0x31e   : > { %p1719_p2 = pnand %p1718_p1, %p1893_p5 }
 0x31f   : > { %p1726_p8 = por %p1725_p7, %p1724_p4 }
 0x320   : > { %p1720_p3 = pneg %p1719_p2 }
 0x322   : > { %p1727_p9 = pnand %p1726_p8, %p1720_p3 }
 0x324   : > { %1730 = shalt.err (!%p1727_p9)
}
 0x325   : > { %s2460_s18 = scalar_lea.smem [#allocation7], %s2325_s22  ;;  %s302_s9 = scalar_lea.smem [#allocation10], %s2325_s22 }
 0x326   : > { %1454 = dma.smem_to_vmem (%p1893_p5), %s2460_s18, 16, %s1220_s8, %s1181_s14  }
 0x327   : > { %s1814_s15 = smov 0.0   ;;  %s1436_s0 = sshll.u32 %s1876_s28, 4 }
 0x328   : > { %310 = sst [smem:[%s302_s9]] %s1814_s15  ;;  %s1242_s1 = scalar_lea.hbm %s2447_s7, %s1436_s0 }
 0x329   : > { %s1191_s2 = scalar_lea.sflag [#allocation5], %s2299_s19  ;;  %s1731_s29 = scalar_lea.hbm %s1242_s1, 16 }
 0x32a   : > { %p1732_p10 = scmp.ne.s32.totalorder %s1242_s1, %s1731_s29  ;;  %s1735_s20 = scalar_lea.hbm %s2447_s7, 32 }
 0x32b   : > { %p1736_p13 = scmp.lt.u32.totalorder %s1242_s1, %s2447_s7  ;;  %p1737_p0 = scmp.lt.u32.totalorder %s1735_s20, %s1731_s29 }
 0x32c   : > { %p1733_p11 = pnand %p1732_p10, %p1893_p5  ;;  %p1739_p2 = scmp.lt.u32.totalorder %s1731_s29, %s1242_s1 }
 0x32d   : > { %p1738_p1 = por %p1737_p0, %p1736_p13 }
 0x32e   : > { %p1734_p12 = pneg %p1733_p11 }
 0x32f   : > { %p1740_p3 = por %p1739_p2, %p1738_p1 }
 0x331   : > { %p1741_p4 = pnand %p1740_p3, %p1734_p12 }
 0x333   : > { %1744 = shalt.err (!%p1741_p4)
}
 0x334   : > { %1456 = dma.smem_to_hbm (%p1893_p5), %s302_s9, 16, %s1242_s1, %s1191_s2  }
 0x335   : > { %s1229_s15 = scalar_lea.vmem %s2446_s6, %s1876_s28  ;;  %s295_s17 = scalar_lea.smem [#allocation8], %s2325_s22 }
 0x336   : > { %s1231_s0 = sshll.u32 %s1229_s15, 4  ;;  %s1186_s29 = scalar_lea.sflag [#allocation9], %s2299_s19  ;;  %s1232_s0 = int_to_ptr.vmem [resolvable:$true] %s1231_s0 }
 0x337   : > { %s1745_s9 = scalar_lea.vmem %s1232_s0, 16  ;;  %s1749_s21 = sshll.u32 %s2446_s6, 4  ;;  %s1750_s21 = int_to_ptr.vmem [resolvable:$false] %s1749_s21 }
 0x338   : > { %p1746_p7 = scmp.ne.s32.totalorder %s1232_s0, %s1745_s9  ;;  %s1751_s13 = scalar_lea.vmem %s1750_s21, 32 }
 0x339   : > { %p1752_p10 = scmp.lt.s32.totalorder %s1232_s0, %s1750_s21  ;;  %p1753_p11 = scmp.lt.s32.totalorder %s1751_s13, %s1745_s9 }
 0x33a   : > { %p1747_p8 = pnand %p1746_p7, %p1893_p5 }
 0x33b   : > { %p1754_p12 = por %p1753_p11, %p1752_p10 }
 0x33c   : > { %p1748_p9 = pneg %p1747_p8 }
 0x33e   : > { %p1755_p13 = pnand %p1754_p12, %p1748_p9 }
 0x398   : > { %v1165_v62 = vpop.xlane.xlu0 %1164 }
 0x399   : > { %v1166_v3 = vrot.slane %v1165_v62, 4 }
 0x39b   : > { %v1167_v13 = vadd.f32 %v1166_v3, %v1165_v62 }
 0x39d   : > { %v1168_v16 = vrot.slane %v1167_v13, 2 }
 0x39f   : > { %v1169_v17 = vadd.f32 %v1168_v16, %v1167_v13 }
 0x3a1   : > { %v1170_v28 = vrot.slane %v1169_v17, 1 }
 0x3a3   : > { %v1171_v51 = vadd.f32 %v1170_v28, %v1169_v17 }
 0x3a5   : > { %1451 = vpush %v1171_v51 }
 0x3d6   : > { %s1452_s16 = spop %1451 }
 0x3d7   : > { %1174 = sst [smem:[%s295_s17]] %s1452_s16 }
 0x3d8   : > { %1758 = shalt.err (!%p1755_p13)
}
 0x3d9   : > { %1455 = dma.smem_to_vmem (%p1893_p5), %s295_s17, 16, %s1232_s0, %s1186_s29  }
 0x3da PF: > { %p1438_p0 = scmp.lt.s32.totalorder %s1805_s27, 2 }
 0x3db   : > { %s1254_s28 = sand.u32 (!%p1438_p0), 1, %s1793_s24  }
 0x3dc   : > { %1249 = sbr.rel (%p1438_p0) target bundleno = 1004 (0x3ec), region = 56  ;;  %s1255_s19 = scalar_lea.sflag (!%p1438_p0), [#allocation4], %s1254_s28 }
 0x3e3   : > { %1776 = dma.done.wait (%p1897_p6), %s1255_s19, 1024  }
 0x3e4   : > { %1778 = vsyncadd (%p1897_p6), %s1255_s19, 4294966272  ;;  %s1264_s22 = scalar_lea.sflag [#allocation6], %s1254_s28 }
 0x3e5   : > { %1780 = dma.done.wait (%p1897_p6), %s1264_s22, 16  }
 0x3e6   : > { %1782 = vsyncadd (%p1897_p6), %s1264_s22, 4294967280  ;;  %s1273_s11 = scalar_lea.sflag [#allocation9], %s1254_s28 }
 0x3e7   : > { %1784 = dma.done.wait (%p1897_p6), %s1273_s11, 16  }
 0x3e8   : > { %1786 = vsyncadd (%p1897_p6), %s1273_s11, 4294967280  ;;  %s1282_s24 = scalar_lea.sflag [#allocation5], %s1254_s28 }
 0x3e9   : > { %1788 = dma.done.wait (%p1897_p6), %s1282_s24, 16  }
 0x3ea   : > { %1790 = vsyncadd (%p1897_p6), %s1282_s24, 4294967280 }
 0x3eb   : > { %1287 = sfence }
 0x3ec PF: > { %p27_p5 = scmp.ge.s32.totalorder %s1880_s30, 4   ;;  %s2461_s24 = smov %s1797_s25 }
 0x3ed   : > { %s2462_s25 = smov %s1801_s26  ;;  %s2463_s26 = smov %s1891_s10 }
 0x3ee   : > { %s2464_s27 = smov %s1880_s30  ;;  %29 = sbr.rel (!%p27_p5) target bundleno = 13 (0xd), region = 127 }
 0x3f5   :  { %1288 = vsyncpa [#allocation4], 1 }
 0x3f6   :  { %1290 = vsyncpa [#allocation4 + $0x1], 1 }
 0x3f7   :  { %1291 = vsyncpa [#allocation5], 1 }
 0x3f8   :  { %1293 = vsyncpa [#allocation5 + $0x1], 1 }
 0x3f9   :  { %1294 = vsyncpa [#allocation6], 1 }
 0x3fa   :  { %1296 = vsyncpa [#allocation6 + $0x1], 1 }
 0x3fb   :  { %1297 = vsyncpa [#allocation9], 1 }
 0x3fc   :  { %1299 = vsyncpa [#allocation9 + $0x1], 1 }

</bundles_post_ra>
